<compile_context>
chip_gen: v6e
topology: v6e:2x2x1
jax: 0.10.0
libtpu: 0.0.40
codegen_flags: <defaults>
</compile_context>

<pallas_src>
import functools

import jax
import jax.numpy as jnp
from jax.experimental import pallas as pl
from jax.experimental.pallas import tpu as pltpu


# ----------------------------------------------------------------------------
# Per-generation VMEM limit: ~96 MiB on v5e/v6e (128 MiB physical), ~48 MiB on v7x (64 MiB).
# ----------------------------------------------------------------------------
@functools.lru_cache(maxsize=1)
def _vmem_limit_bytes():
    phys = 64 * 1024 * 1024  # conservative fallback (v7x physical size)
    try:
        get_info = getattr(pltpu, "get_tpu_info", None)
        if get_info is not None:
            cap = getattr(get_info(), "vmem_capacity_bytes", None)
            if cap:
                phys = int(cap)
    except Exception:
        pass
    return max(32 * 1024 * 1024, min(phys * 3 // 4, 112 * 1024 * 1024))


# ----------------------------------------------------------------------------
# small helpers (padding / tile selection)
# ----------------------------------------------------------------------------
def _round_up(x, m):
    return ((x + m - 1) // m) * m


def _fit(dim, base, cap, min_tiles=1):
    """Pick a tile size (multiple of `base`, capped, optionally >=min_tiles tiles) + padded dim."""
    d = _round_up(max(int(dim), 1), base)
    t = min(cap, d)
    if min_tiles > 1 and d >= min_tiles * base:
        t = min(t, max(base, (d // min_tiles) // base * base))
    d = _round_up(d, t)
    return d, t


def _pad2(x, rows, cols):
    return jnp.pad(x, ((0, rows - x.shape[0]), (0, cols - x.shape[1])))


# ----------------------------------------------------------------------------
# Row L2-normalize (fallback only; the normalize is normally fused into the matmuls)
# ----------------------------------------------------------------------------
def _l2norm_kernel(x_ref, o_ref):
    x = x_ref[...].astype(jnp.float32)
    nrm = jnp.sqrt(jnp.sum(x * x, axis=-1, keepdims=True))
    o_ref[...] = x / jnp.maximum(nrm, 1e-12)


def l2_normalize_rows(x, tm_cap=1024):
    m, d = x.shape
    mp, tm = _fit(m, 8, tm_cap, min_tiles=2)
    xp = _pad2(x.astype(jnp.float32), mp, d)
    out = pl.pallas_call(
        _l2norm_kernel,
        out_shape=jax.ShapeDtypeStruct((mp, d), jnp.float32),
        grid=(mp // tm,),
        in_specs=[pl.BlockSpec((tm, d), lambda i: (i, 0))],
        out_specs=pl.BlockSpec((tm, d), lambda i: (i, 0)),
        compiler_params=pltpu.CompilerParams(
            dimension_semantics=("parallel",),
            vmem_limit_bytes=_vmem_limit_bytes()),
    )(xp)
    return out[:m]


# ----------------------------------------------------------------------------
# Tiled dense matmul (bf16 streamed operands, f32 accumulation, optional fused
# LHS row L2-normalize when the whole row fits one K tile)
# ----------------------------------------------------------------------------
def _matmul_kernel(a_ref, b_ref, o_ref, acc_ref, *, normalize_lhs):
    @pl.when(pl.program_id(2) == 0)
    def _():
        acc_ref[...] = jnp.zeros_like(acc_ref)

    a = a_ref[...]
    if normalize_lhs:  # full row is in this tile (single K tile enforced by the wrapper)
        af = a.astype(jnp.float32)
        nrm = jnp.sqrt(jnp.sum(af * af, axis=-1, keepdims=True))
        a = (af / jnp.maximum(nrm, 1e-12)).astype(jnp.bfloat16)
    acc_ref[...] += jnp.dot(a, b_ref[...], preferred_element_type=jnp.float32)

    @pl.when(pl.program_id(2) == pl.num_programs(2) - 1)
    def _():
        o_ref[...] = acc_ref[...]


def pallas_matmul(a, b, *, normalize_lhs=False, tm_cap=1024, tn_cap=512, tk_cap=512):
    m, k = a.shape
    k2, n = b.shape
    assert k == k2
    if normalize_lhs and k > 4096:  # row would not fit a single K tile -> pre-normalize
        a = l2_normalize_rows(a)
        normalize_lhs = False
    mp, tm = _fit(m, 8, tm_cap, min_tiles=2)
    if normalize_lhs:
        kp = _round_up(k, 128)
        tk = kp
    else:
        kp, tk = _fit(k, 128, tk_cap)
    np_, tn = _fit(n, 128, tn_cap)
    a_p = _pad2(a.astype(jnp.bfloat16), mp, kp)   # bf16 streamed from HBM
    b_p = _pad2(b.astype(jnp.bfloat16), kp, np_)
    out = pl.pallas_call(
        functools.partial(_matmul_kernel, normalize_lhs=normalize_lhs),
        out_shape=jax.ShapeDtypeStruct((mp, np_), jnp.float32),
        grid=(mp // tm, np_ // tn, kp // tk),
        in_specs=[pl.BlockSpec((tm, tk), lambda i, j, kk: (i, kk)),
                  pl.BlockSpec((tk, tn), lambda i, j, kk: (kk, j))],
        out_specs=pl.BlockSpec((tm, tn), lambda i, j, kk: (i, j)),
        scratch_shapes=[pltpu.VMEM((tm, tn), jnp.float32)],
        compiler_params=pltpu.CompilerParams(
            dimension_semantics=("parallel", "parallel", "arbitrary"),
            vmem_limit_bytes=_vmem_limit_bytes()),
    )(a_p, b_p)
    return out[:m, :n]


# ----------------------------------------------------------------------------
# Fused multi-head attention score + sparse aggregation kernel.
#   grid = (node tiles [parallel], edge blocks [arbitrary / reduction])
#   Edges are sorted by destination; scalar prefetch gives each node tile its
#   edge-block (start, count) so it only streams / scores its own edges.
# ----------------------------------------------------------------------------
def _gat_agg_kernel(sb_ref, nb_ref, idx_ref, em_ref, a2_ref, o_ref,
                    accf_ref, accr_ref, ew_ref, *, alpha, apply_elu, nheads, dpad):
    ni = pl.program_id(0)
    ei = pl.program_id(1)

    @pl.when(ei == 0)
    def _():
        accf_ref[...] = jnp.zeros_like(accf_ref)
        accr_ref[...] = jnp.zeros_like(accr_ref)

    @pl.when(ei < nb_ref[ni])          # skip edge blocks outside this node tile's range
    def _():
        em_b = em_ref[...]                                                   # (TE, H*Dp) bf16
        em_f = em_b.astype(jnp.float32)
        # per-head attention score via block-diagonal a2:  s[:, h] = em[:, hDp:(h+1)Dp] @ a2_h
        s = jnp.dot(em_b, a2_ref[...], preferred_element_type=jnp.float32)   # (TE, H)
        s = jnp.where(s > 0, s, alpha * s)                                   # LeakyReLU(alpha)
        s = jnp.maximum(s, -80.0)                                            # keep exp(-s) finite
        ee = jnp.exp(-s)                                                     # edge_e, (TE, H) f32

        tn = o_ref.shape[0]
        te = em_b.shape[0]
        rows = ni * tn + jax.lax.broadcasted_iota(jnp.int32, (tn, te), 0)
        onehot = jnp.where(rows == idx_ref[...], 1.0, 0.0).astype(jnp.bfloat16)  # (TN, TE)

        # per-head broadcast of edge_e over its feature block (VPU), staged in VMEM
        for h in range(nheads):
            c = h * dpad
            ew_ref[:, c:c + dpad] = (ee[:, h:h + 1] * em_f[:, c:c + dpad]).astype(jnp.bfloat16)

        # segment-sum over destination nodes on the MXU (bf16 operands, f32 accumulation)
        accf_ref[...] += jnp.dot(onehot, ew_ref[...],
                                 preferred_element_type=jnp.float32)         # (TN, H*Dp)
        accr_ref[...] += jnp.dot(onehot, ee.astype(jnp.bfloat16),
                                 preferred_element_type=jnp.float32)         # (TN, H) rowsum

    @pl.when(ei == pl.num_programs(1) - 1)
    def _():
        accf = accf_ref[...]
        rs = accr_ref[...]
        rs = jnp.where(rs == 0.0, 1e-12, rs)                                 # e_rowsum[==0] = 1e-12
        for h in range(nheads):
            c = h * dpad
            blk = accf[:, c:c + dpad] / rs[:, h:h + 1]
            if apply_elu:
                blk = jnp.where(blk > 0.0, blk, jnp.exp(jnp.minimum(blk, 0.0)) - 1.0)   # F.elu
            o_ref[:, c:c + dpad] = blk


def gat_attention_aggregate(idx_sorted, em_sorted, a2_blk, num_nodes, nheads, dpad,
                            alpha, apply_elu, te_cap=1024, tn_cap=1024):
    """idx_sorted: (E,) dst node per edge, ascending; em_sorted: (E, H*Dp) bf16 edge features."""
    e, hdp = em_sorted.shape
    n_pad, tn = _fit(num_nodes, 8, tn_cap, min_tiles=2)
    n_tiles = n_pad // tn

    e_min = _round_up(max(int(e), 1), 128)
    te = min(int(te_cap), e_min)                    # te is a multiple of 128 (lane-dense idx block)
    e_pad = _round_up(e_min, te)
    n_eblk = e_pad // te

    # pad edges: sentinel dst never matches any row; zero features give s=0 (no NaNs) but onehot=0
    idx_p = jnp.full((1, e_pad), jnp.int32(2 ** 30), jnp.int32).at[0, :e].set(
        idx_sorted.astype(jnp.int32))
    em_p = jnp.zeros((e_pad, hdp), jnp.bfloat16).at[:e, :].set(em_sorted.astype(jnp.bfloat16))

    # per-node-tile edge-block ranges from the dst-sorted order (scalar prefetch)
    bounds = jnp.searchsorted(idx_sorted.astype(jnp.int32),
                              jnp.arange(n_tiles + 1, dtype=jnp.int32) * tn,
                              side="left").astype(jnp.int32)
    start_e, end_e = bounds[:-1], bounds[1:]
    start_blk_raw = start_e // te
    end_blk = (end_e + te - 1) // te
    nblk = jnp.where(end_e > start_e, end_blk - start_blk_raw, 0).astype(jnp.int32)
    start_blk = jnp.minimum(start_blk_raw, n_eblk - 1).astype(jnp.int32)

    def _edge_block(ni_, ei_, sb, nb):
        # for ei >= nblk keep revisiting the last valid block -> no re-DMA, body skipped by pl.when
        return sb[ni_] + jnp.minimum(ei_, jnp.maximum(nb[ni_] - 1, 0))

    kern = functools.partial(_gat_agg_kernel, alpha=float(alpha), apply_elu=bool(apply_elu),
                             nheads=int(nheads), dpad=int(dpad))
    out = pl.pallas_call(
        kern,
        out_shape=jax.ShapeDtypeStruct((n_pad, hdp), jnp.float32),
        grid_spec=pltpu.PrefetchScalarGridSpec(
            num_scalar_prefetch=2,
            grid=(n_tiles, n_eblk),
            in_specs=[
                pl.BlockSpec((1, te), lambda ni_, ei_, sb, nb: (0, _edge_block(ni_, ei_, sb, nb))),
                pl.BlockSpec((te, hdp), lambda ni_, ei_, sb, nb: (_edge_block(ni_, ei_, sb, nb), 0)),
                pl.BlockSpec((hdp, nheads), lambda ni_, ei_, sb, nb: (0, 0)),
            ],
            out_specs=pl.BlockSpec((tn, hdp), lambda ni_, ei_, sb, nb: (ni_, 0)),
            scratch_shapes=[pltpu.VMEM((tn, hdp), jnp.float32),       # feature accumulator
                            pltpu.VMEM((tn, nheads), jnp.float32),    # per-head rowsum
                            pltpu.VMEM((te, hdp), jnp.bfloat16)],     # staged weighted edge feats
        ),
        compiler_params=pltpu.CompilerParams(
            dimension_semantics=("parallel", "arbitrary"),
            vmem_limit_bytes=_vmem_limit_bytes()),
    )(start_blk, nblk, idx_p, em_p, a2_blk.astype(jnp.bfloat16))
    return out[:num_nodes]


# ----------------------------------------------------------------------------
# Fused  normalize(ent) @ W_entities  +  mask * out_entity  ->  row L2 normalize
# ----------------------------------------------------------------------------
def _entity_update_kernel(x_ref, w_ref, mask_ref, oe_ref, o_ref, acc_ref, *, normalize_lhs):
    @pl.when(pl.program_id(1) == 0)
    def _():
        acc_ref[...] = jnp.zeros_like(acc_ref)

    x = x_ref[...]
    if normalize_lhs:  # single K tile -> whole row visible
        xf = x.astype(jnp.float32)
        nrm = jnp.sqrt(jnp.sum(xf * xf, axis=-1, keepdims=True))
        x = (xf / jnp.maximum(nrm, 1e-12)).astype(jnp.bfloat16)
    acc_ref[...] += jnp.dot(x, w_ref[...], preferred_element_type=jnp.float32)

    @pl.when(pl.program_id(1) == pl.num_programs(1) - 1)
    def _():
        y = acc_ref[...] + mask_ref[...] * oe_ref[...]
        nrm = jnp.sqrt(jnp.sum(y * y, axis=-1, keepdims=True))
        o_ref[...] = y / jnp.maximum(nrm, 1e-12)                              # F.normalize(p=2)


def entity_update(x, w, mask_col, out_entity, *, normalize_lhs=True, tm_cap=1024, tk_cap=512):
    n, k = x.shape
    _, hd = w.shape
    if normalize_lhs and k > 4096:
        x = l2_normalize_rows(x)
        normalize_lhs = False
    n_pad, tm = _fit(n, 8, tm_cap, min_tiles=2)
    if normalize_lhs:
        k_pad = _round_up(k, 128)
        tk = k_pad
    else:
        k_pad, tk = _fit(k, 128, tk_cap)
    hdp = _round_up(hd, 128)                                # lane-dense output / epilogue
    x_p = _pad2(x.astype(jnp.bfloat16), n_pad, k_pad)
    w_p = _pad2(w.astype(jnp.bfloat16), k_pad, hdp)
    m_p = _pad2(mask_col.astype(jnp.float32), n_pad, 1)
    oe_p = _pad2(out_entity.astype(jnp.float32), n_pad, hdp)
    out = pl.pallas_call(
        functools.partial(_entity_update_kernel, normalize_lhs=normalize_lhs),
        out_shape=jax.ShapeDtypeStruct((n_pad, hdp), jnp.float32),
        grid=(n_pad // tm, k_pad // tk),
        in_specs=[pl.BlockSpec((tm, tk), lambda i, kk: (i, kk)),
                  pl.BlockSpec((tk, hdp), lambda i, kk: (kk, 0)),
                  pl.BlockSpec((tm, 1), lambda i, kk: (i, 0)),
                  pl.BlockSpec((tm, hdp), lambda i, kk: (i, 0))],
        out_specs=pl.BlockSpec((tm, hdp), lambda i, kk: (i, 0)),
        scratch_shapes=[pltpu.VMEM((tm, hdp), jnp.float32)],
        compiler_params=pltpu.CompilerParams(
            dimension_semantics=("parallel", "arbitrary"),
            vmem_limit_bytes=_vmem_limit_bytes()),
    )(x_p, w_p, m_p, oe_p)
    return out[:n, :hd]


# ----------------------------------------------------------------------------
# Model forward (mirrors SpGraphAttentionLayer / SpGAT / SpKBGATModified)
# ----------------------------------------------------------------------------
def _stack_head_weights(heads, nin):
    """Stack per-head (a, a2) into batched, per-head-128-padded weights.

    a_h: (D, 2*nin + rel) = [a_src | a_dst | a_rel];  a2_h: (1, D).
    Returns a_src/a_dst/a_rel with shape (.., H*Dp) and block-diagonal a2 (H*Dp, H).
    """
    d = int(heads[0][0].shape[0])
    nrel = int(heads[0][0].shape[1]) - 2 * nin
    h = len(heads)
    dpad = _round_up(d, 128)
    a_src = jnp.zeros((nin, h * dpad), jnp.float32)
    a_dst = jnp.zeros((nin, h * dpad), jnp.float32)
    a_rel = jnp.zeros((nrel, h * dpad), jnp.float32)
    a2_blk = jnp.zeros((h * dpad, h), jnp.float32)
    for i, (a, a2) in enumerate(heads):
        a = a.astype(jnp.float32)
        c = i * dpad
        a_src = a_src.at[:, c:c + d].set(a[:, :nin].T)
        a_dst = a_dst.at[:, c:c + d].set(a[:, nin:2 * nin].T)
        a_rel = a_rel.at[:, c:c + d].set(a[:, 2 * nin:].T)
        a2_blk = a2_blk.at[c:c + d, i].set(a2[0].astype(jnp.float32))
    return a_src, a_dst, a_rel, a2_blk, d, dpad


def gat_layer_forward(x, relation_table, edge_list, edge_type, edge_list_nhop, edge_type_nhop,
                      heads, alpha, apply_elu, normalize_x=False):
    """All heads of one SpGraphAttentionLayer group, batched (dropout = identity)."""
    n, nin = x.shape
    h = len(heads)
    a_src, a_dst, a_rel, a2_blk, d, dpad = _stack_head_weights(heads, nin)
    hdp = h * dpad

    # edge_h @ a.T  ==  src_proj[e0] + dst_proj[e1] + rel_proj[type]   (edge_h never materialized).
    # The entity-table L2 normalize (first layer only) is fused into this matmul's prologue.
    node_proj = pallas_matmul(x, jnp.concatenate([a_src, a_dst], axis=1),
                              normalize_lhs=normalize_x)                      # (N, 2*hdp)
    src_proj, dst_proj = node_proj[:, :hdp], node_proj[:, hdp:]
    rel_proj = pallas_matmul(relation_table, a_rel)                           # (R, hdp)
    rel_ext = jnp.concatenate([rel_proj, jnp.zeros((1, hdp), jnp.float32)], axis=0)
    zero_rel = rel_proj.shape[0]                        # 1-hop edges use the appended zero row

    # combined edge lists (main + n-hop); aggregation destination is edge[0]
    i0 = jnp.concatenate([edge_list[0], edge_list_nhop[0]]).astype(jnp.int32)
    i1 = jnp.concatenate([edge_list[1], edge_list_nhop[1]]).astype(jnp.int32)
    t1 = jnp.concatenate([edge_type.astype(jnp.int32), edge_type_nhop[:, 0].astype(jnp.int32)])
    t2 = jnp.concatenate([jnp.full(edge_type.shape, zero_rel, jnp.int32),
                          edge_type_nhop[:, 1].astype(jnp.int32)])

    # sort edges by destination so each node tile only streams its own edge blocks
    order = jnp.argsort(i0)
    i0s, i1s, t1s, t2s = i0[order], i1[order], t1[order], t2[order]

    # build the dst-sorted edge features once, directly in bf16
    em = (jnp.take(src_proj, i0s, axis=0) + jnp.take(dst_proj, i1s, axis=0) +
          jnp.take(rel_ext, t1s, axis=0) + jnp.take(rel_ext, t2s, axis=0)).astype(jnp.bfloat16)

    out_pad = gat_attention_aggregate(i0s, em, a2_blk, n, h, dpad, alpha, apply_elu)
    if h == 1:
        return out_pad[:, :d]
    return jnp.concatenate([out_pad[:, i * dpad:i * dpad + d] for i in range(h)], axis=1)


def spgat_forward(p, ent, relation_embed, edge_list, edge_type, edge_list_nhop, edge_type_nhop,
                  alpha):
    # multi-head layer: heads batched into one fused kernel; concat(heads) == stacked blocks
    x = gat_layer_forward(ent, relation_embed, edge_list, edge_type, edge_list_nhop,
                          edge_type_nhop, p["attentions"], alpha, apply_elu=True,
                          normalize_x=True)          # concat=True -> elu inside; L2-norm fused
    # dropout_layer -> identity (eval)
    out_relation_1 = pallas_matmul(relation_embed, p["W"])
    # out_att (concat=False) wrapped in F.elu by SpGAT -> apply_elu=True on the composed result
    x = gat_layer_forward(x, out_relation_1, edge_list, edge_type, edge_list_nhop,
                          edge_type_nhop, [p["out_att"]], alpha, apply_elu=True,
                          normalize_x=False)
    return x, out_relation_1


def spkbgat_forward(params, adj, batch_inputs, train_indices_nhop, alpha):
    edge_list, edge_type = adj
    edge_list_nhop = jnp.stack([train_indices_nhop[:, 3], train_indices_nhop[:, 0]], axis=0)
    edge_type_nhop = jnp.stack([train_indices_nhop[:, 1], train_indices_nhop[:, 2]], axis=1)

    # self.entity_embeddings.data = F.normalize(...): fused into every consuming matmul prologue
    ent = params["entity_embeddings"]

    out_entity_1, out_relation_1 = spgat_forward(
        params["sparse_gat_1"], ent, params["relation_embeddings"],
        edge_list, edge_type, edge_list_nhop, edge_type_nhop, alpha)

    n = ent.shape[0]
    mask = jnp.zeros((n,), jnp.float32).at[batch_inputs[:, 2]].set(1.0)   # unique + assign 1.0

    # normalize(ent) @ W_entities + mask*out_entity -> L2 normalize, fused into one kernel
    out_entity_1 = entity_update(ent, params["W_entities"], mask[:, None], out_entity_1,
                                 normalize_lhs=True)
    return out_entity_1, out_relation_1


# ----------------------------------------------------------------------------
# Deterministic parameter init (shapes per __init__)
# ----------------------------------------------------------------------------
def xavier_uniform(key, shape, gain):
    fan_in, fan_out = shape[1], shape[0]
    std = gain * jnp.sqrt(2.0 / (fan_in + fan_out))
    bound = jnp.sqrt(3.0) * std
    return jax.random.uniform(key, shape, jnp.float32, -bound, bound)


def xavier_normal(key, shape, gain):
    fan_in, fan_out = shape[1], shape[0]
    std = gain * jnp.sqrt(2.0 / (fan_in + fan_out))
    return std * jax.random.normal(key, shape, jnp.float32)


def build_params(key, num_nodes, entity_in_dim, relation_dim, num_relation,
                 entity_out_dim_1, nheads_1):
    keys = jax.random.split(key, 16)
    gain = 1.414
    attentions = []
    for h in range(nheads_1):
        a = xavier_normal(keys[2 * h], (entity_out_dim_1, 2 * entity_in_dim + relation_dim), gain)
        a2 = xavier_normal(keys[2 * h + 1], (1, entity_out_dim_1), gain)
        attentions.append((a, a2))
    hid = nheads_1 * entity_out_dim_1
    a_out = xavier_normal(keys[8], (hid, 2 * hid + hid), gain)
    a2_out = xavier_normal(keys[9], (1, hid), gain)
    sparse_gat_1 = {
        "attentions": attentions,
        "W": xavier_uniform(keys[10], (relation_dim, hid), gain),
        "out_att": (a_out, a2_out),
    }
    return {
        "entity_embeddings": jax.random.normal(keys[11], (num_nodes, entity_in_dim), jnp.float32),
        "relation_embeddings": jax.random.normal(keys[12], (num_relation, relation_dim),
                                                 jnp.float32),
        "W_entities": xavier_uniform(keys[13], (entity_in_dim, hid), gain),
        "sparse_gat_1": sparse_gat_1,
    }


# ----------------------------------------------------------------------------
if __name__ == "__main__":
    key = jax.random.PRNGKey(0)
    k_params, k_edges, k_etype, k_nhop_n, k_nhop_r, k_batch = jax.random.split(key, 6)

    # Small synthetic sizes consistent with SpKBGATModified.__init__
    num_nodes = 16
    entity_in_dim = 32
    relation_dim = 16
    num_relation = 8
    entity_out_dim = [8, 16]
    nheads_GAT = [2, 2]
    drop_GAT = 0.3   # dropout -> identity in this deterministic forward
    alpha = 0.2      # LeakyReLU slope

    params = build_params(k_params, num_nodes, entity_in_dim, relation_dim, num_relation,
                          entity_out_dim[0], nheads_GAT[0])

    n_edges = 24
    n_nhop = 8
    batch = 6

    edge_list = jax.random.randint(k_edges, (2, n_edges), 0, num_nodes, jnp.int32)
    edge_type = jax.random.randint(k_etype, (n_edges,), 0, num_relation, jnp.int32)
    adj = (edge_list, edge_type)

    nhop_nodes = jax.random.randint(k_nhop_n, (n_nhop, 2), 0, num_nodes, jnp.int32)
    nhop_rels = jax.random.randint(k_nhop_r, (n_nhop, 2), 0, num_relation, jnp.int32)
    # columns: [node, rel1, rel2, node]  (cols 0,1,2,3 used as in the torch forward)
    train_indices_nhop = jnp.stack(
        [nhop_nodes[:, 0], nhop_rels[:, 0], nhop_rels[:, 1], nhop_nodes[:, 1]], axis=1)

    batch_inputs = jax.random.randint(k_batch, (batch, 3), 0, num_nodes, jnp.int32)

    fwd = jax.jit(functools.partial(spkbgat_forward, alpha=alpha))
    out_entity_1, out_relation_1 = fwd(params, adj, batch_inputs, train_indices_nhop)
    jax.block_until_ready((out_entity_1, out_relation_1))

    assert out_entity_1.shape == (num_nodes, entity_out_dim[0] * nheads_GAT[0])
    assert out_relation_1.shape == (num_relation, entity_out_dim[0] * nheads_GAT[0])
    assert bool(jnp.all(jnp.isfinite(out_entity_1))) and bool(jnp.all(jnp.isfinite(out_relation_1)))
    print("KERNEL_OK")
</pallas_src>

<mosaic_0001>
module attributes {stable_mosaic.version = 11 : i64} {
  func.func @_matmul_kernel(%arg0: i32, %arg1: i32, %arg2: i32, %arg3: memref<8x128xbf16, #tpu.memory_space<vmem>>, %arg4: memref<128x512xbf16, #tpu.memory_space<vmem>>, %arg5: memref<8x512xf32, #tpu.memory_space<vmem>>, %arg6: memref<8x512xf32, #tpu.memory_space<vmem>>) attributes {dimension_semantics = [#tpu.dimension_semantics<parallel>, #tpu.dimension_semantics<parallel>, #tpu.dimension_semantics<arbitrary>], iteration_bounds = array<i64: 2, 1, 1>, scalar_prefetch = 0 : i64, scratch_operands = 1 : i64, tpu.core_type = #tpu.core_type<tc>, window_params = [{transform_indices = @transform_0, window_bounds = array<i64: 8, 128>}, {transform_indices = @transform_1, window_bounds = array<i64: 128, 512>}, {transform_indices = @transform_2, window_bounds = array<i64: 8, 512>}]} {
    %c0_i32 = arith.constant 0 : i32
    %0 = arith.cmpi eq, %arg2, %c0_i32 : i32
    %1 = arith.extui %0 : i1 to i32
    %c0_i32_0 = arith.constant 0 : i32
    %2 = arith.cmpi ne, %1, %c0_i32_0 : i32
    scf.if %2 {
      %cst_12 = arith.constant 0.000000e+00 : f32
      %22 = vector.broadcast %cst_12 : f32 to vector<8x512xf32>
      %c0_13 = arith.constant 0 : index
      %c0_14 = arith.constant 0 : index
      %23 = vector.load %arg6[%c0_13, %c0_14] : memref<8x512xf32, #tpu.memory_space<vmem>>, vector<8x512xf32>
      tpu.vector_store %arg6[%c0_13, %c0_14], %22 {strides = array<i32>} : memref<8x512xf32, #tpu.memory_space<vmem>>, vector<8x512xf32>,
    } else {
    }
    %c0 = arith.constant 0 : index
    %c0_1 = arith.constant 0 : index
    %3 = vector.load %arg3[%c0, %c0_1] : memref<8x128xbf16, #tpu.memory_space<vmem>>, vector<8x128xbf16>
    %4 = arith.extf %3 : vector<8x128xbf16> to vector<8x128xf32>
    %5 = arith.mulf %4, %4 : vector<8x128xf32>
    %cst = arith.constant dense<0.000000e+00> : vector<8xf32>
    %6 = vector.multi_reduction <add>, %5, %cst [1] : vector<8x128xf32> to vector<8xf32>
    %7 = vector.shape_cast %6 : vector<8xf32> to vector<8x1xf32>
    %8 = math.sqrt %7 : vector<8x1xf32>
    %cst_2 = arith.constant 9.99999996E-13 : f32
    %9 = vector.broadcast %cst_2 : f32 to vector<8x1xf32>
    %10 = arith.maximumf %8, %9 : vector<8x1xf32>
    %11 = vector.broadcast %10 : vector<8x1xf32> to vector<8x128xf32>
    %12 = arith.divf %4, %11 : vector<8x128xf32>
    %13 = arith.truncf %12 : vector<8x128xf32> to vector<8x128xbf16>
    %c0_3 = arith.constant 0 : index
    %c0_4 = arith.constant 0 : index
    %14 = vector.load %arg6[%c0_3, %c0_4] : memref<8x512xf32, #tpu.memory_space<vmem>>, vector<8x512xf32>
    %c0_5 = arith.constant 0 : index
    %c0_6 = arith.constant 0 : index
    %15 = vector.load %arg4[%c0_5, %c0_6] : memref<128x512xbf16, #tpu.memory_space<vmem>>, vector<128x512xbf16>
    %cst_7 = arith.constant dense<0.000000e+00> : vector<8x512xf32>
    %16 = tpu.matmul %13, %15, %cst_7 {dimension_numbers = #tpu.dot_dimension_numbers<[1], [0], [0], [1], [0, 0, 1, 1], [], []>} : vector<8x128xbf16>, vector<128x512xbf16>, vector<8x512xf32> -> vector<8x512xf32>
    %17 = arith.addf %14, %16 : vector<8x512xf32>
    %c0_8 = arith.constant 0 : index
    %c0_9 = arith.constant 0 : index
    %18 = vector.load %arg6[%c0_8, %c0_9] : memref<8x512xf32, #tpu.memory_space<vmem>>, vector<8x512xf32>
    tpu.vector_store %arg6[%c0_8, %c0_9], %17 {strides = array<i32>} : memref<8x512xf32, #tpu.memory_space<vmem>>, vector<8x512xf32>,
    %c0_i32_10 = arith.constant 0 : i32
    %19 = arith.cmpi eq, %arg2, %c0_i32_10 : i32
    %20 = arith.extui %19 : i1 to i32
    %c0_i32_11 = arith.constant 0 : i32
    %21 = arith.cmpi ne, %20, %c0_i32_11 : i32
    scf.if %21 {
      %c0_12 = arith.constant 0 : index
      %c0_13 = arith.constant 0 : index
      %22 = vector.load %arg6[%c0_12, %c0_13] : memref<8x512xf32, #tpu.memory_space<vmem>>, vector<8x512xf32>
      %c0_14 = arith.constant 0 : index
      %c0_15 = arith.constant 0 : index
      %23 = vector.load %arg5[%c0_14, %c0_15] : memref<8x512xf32, #tpu.memory_space<vmem>>, vector<8x512xf32>
      tpu.vector_store %arg5[%c0_14, %c0_15], %22 {strides = array<i32>} : memref<8x512xf32, #tpu.memory_space<vmem>>, vector<8x512xf32>,
    } else {
    }
    return
  }
  func.func @transform_0(%arg0: i32, %arg1: i32, %arg2: i32) -> (i32, i32) {
    %c0_i32 = arith.constant 0 : i32
    return %arg0, %arg2 : i32, i32
  }
  func.func @transform_1(%arg0: i32, %arg1: i32, %arg2: i32) -> (i32, i32) {
    %c0_i32 = arith.constant 0 : i32
    return %arg2, %arg1 : i32, i32
  }
  func.func @transform_2(%arg0: i32, %arg1: i32, %arg2: i32) -> (i32, i32) {
    %c0_i32 = arith.constant 0 : i32
    return %arg0, %arg1 : i32, i32
  }
}

module attributes {stable_mosaic.version = 11 : i64} {
  func.func @_matmul_kernel(%arg0: i32, %arg1: i32, %arg2: i32, %arg3: memref<8x128xbf16, #tpu.memory_space<vmem>>, %arg4: memref<128x256xbf16, #tpu.memory_space<vmem>>, %arg5: memref<8x256xf32, #tpu.memory_space<vmem>>, %arg6: memref<8x256xf32, #tpu.memory_space<vmem>>) attributes {dimension_semantics = [#tpu.dimension_semantics<parallel>, #tpu.dimension_semantics<parallel>, #tpu.dimension_semantics<arbitrary>], iteration_bounds = array<i64: 1, 1, 1>, scalar_prefetch = 0 : i64, scratch_operands = 1 : i64, tpu.core_type = #tpu.core_type<tc>, window_params = [{transform_indices = @transform_0, window_bounds = array<i64: 8, 128>}, {transform_indices = @transform_1, window_bounds = array<i64: 128, 256>}, {transform_indices = @transform_2, window_bounds = array<i64: 8, 256>}]} {
    %c0_i32 = arith.constant 0 : i32
    %0 = arith.cmpi eq, %arg2, %c0_i32 : i32
    %1 = arith.extui %0 : i1 to i32
    %c0_i32_0 = arith.constant 0 : i32
    %2 = arith.cmpi ne, %1, %c0_i32_0 : i32
    scf.if %2 {
      %cst_10 = arith.constant 0.000000e+00 : f32
      %12 = vector.broadcast %cst_10 : f32 to vector<8x256xf32>
      %c0_11 = arith.constant 0 : index
      %c0_12 = arith.constant 0 : index
      %13 = vector.load %arg6[%c0_11, %c0_12] : memref<8x256xf32, #tpu.memory_space<vmem>>, vector<8x256xf32>
      tpu.vector_store %arg6[%c0_11, %c0_12], %12 {strides = array<i32>} : memref<8x256xf32, #tpu.memory_space<vmem>>, vector<8x256xf32>,
    } else {
    }
    %c0 = arith.constant 0 : index
    %c0_1 = arith.constant 0 : index
    %3 = vector.load %arg3[%c0, %c0_1] : memref<8x128xbf16, #tpu.memory_space<vmem>>, vector<8x128xbf16>
    %c0_2 = arith.constant 0 : index
    %c0_3 = arith.constant 0 : index
    %4 = vector.load %arg6[%c0_2, %c0_3] : memref<8x256xf32, #tpu.memory_space<vmem>>, vector<8x256xf32>
    %c0_4 = arith.constant 0 : index
    %c0_5 = arith.constant 0 : index
    %5 = vector.load %arg4[%c0_4, %c0_5] : memref<128x256xbf16, #tpu.memory_space<vmem>>, vector<128x256xbf16>
    %cst = arith.constant dense<0.000000e+00> : vector<8x256xf32>
    %6 = tpu.matmul %3, %5, %cst {dimension_numbers = #tpu.dot_dimension_numbers<[1], [0], [0], [1], [0, 0, 1, 1], [], []>} : vector<8x128xbf16>, vector<128x256xbf16>, vector<8x256xf32> -> vector<8x256xf32>
    %7 = arith.addf %4, %6 : vector<8x256xf32>
    %c0_6 = arith.constant 0 : index
    %c0_7 = arith.constant 0 : index
    %8 = vector.load %arg6[%c0_6, %c0_7] : memref<8x256xf32, #tpu.memory_space<vmem>>, vector<8x256xf32>
    tpu.vector_store %arg6[%c0_6, %c0_7], %7 {strides = array<i32>} : memref<8x256xf32, #tpu.memory_space<vmem>>, vector<8x256xf32>,
    %c0_i32_8 = arith.constant 0 : i32
    %9 = arith.cmpi eq, %arg2, %c0_i32_8 : i32
    %10 = arith.extui %9 : i1 to i32
    %c0_i32_9 = arith.constant 0 : i32
    %11 = arith.cmpi ne, %10, %c0_i32_9 : i32
    scf.if %11 {
      %c0_10 = arith.constant 0 : index
      %c0_11 = arith.constant 0 : index
      %12 = vector.load %arg6[%c0_10, %c0_11] : memref<8x256xf32, #tpu.memory_space<vmem>>, vector<8x256xf32>
      %c0_12 = arith.constant 0 : index
      %c0_13 = arith.constant 0 : index
      %13 = vector.load %arg5[%c0_12, %c0_13] : memref<8x256xf32, #tpu.memory_space<vmem>>, vector<8x256xf32>
      tpu.vector_store %arg5[%c0_12, %c0_13], %12 {strides = array<i32>} : memref<8x256xf32, #tpu.memory_space<vmem>>, vector<8x256xf32>,
    } else {
    }
    return
  }
  func.func @transform_0(%arg0: i32, %arg1: i32, %arg2: i32) -> (i32, i32) {
    %c0_i32 = arith.constant 0 : i32
    return %arg0, %arg2 : i32, i32
  }
  func.func @transform_1(%arg0: i32, %arg1: i32, %arg2: i32) -> (i32, i32) {
    %c0_i32 = arith.constant 0 : i32
    return %arg2, %arg1 : i32, i32
  }
  func.func @transform_2(%arg0: i32, %arg1: i32, %arg2: i32) -> (i32, i32) {
    %c0_i32 = arith.constant 0 : i32
    return %arg0, %arg1 : i32, i32
  }
}

module attributes {stable_mosaic.version = 11 : i64} {
  func.func @_matmul_kernel(%arg0: i32, %arg1: i32, %arg2: i32, %arg3: memref<8x128xbf16, #tpu.memory_space<vmem>>, %arg4: memref<128x256xbf16, #tpu.memory_space<vmem>>, %arg5: memref<8x256xf32, #tpu.memory_space<vmem>>, %arg6: memref<8x256xf32, #tpu.memory_space<vmem>>) attributes {dimension_semantics = [#tpu.dimension_semantics<parallel>, #tpu.dimension_semantics<parallel>, #tpu.dimension_semantics<arbitrary>], iteration_bounds = array<i64: 2, 1, 1>, scalar_prefetch = 0 : i64, scratch_operands = 1 : i64, tpu.core_type = #tpu.core_type<tc>, window_params = [{transform_indices = @transform_0, window_bounds = array<i64: 8, 128>}, {transform_indices = @transform_1, window_bounds = array<i64: 128, 256>}, {transform_indices = @transform_2, window_bounds = array<i64: 8, 256>}]} {
    %c0_i32 = arith.constant 0 : i32
    %0 = arith.cmpi eq, %arg2, %c0_i32 : i32
    %1 = arith.extui %0 : i1 to i32
    %c0_i32_0 = arith.constant 0 : i32
    %2 = arith.cmpi ne, %1, %c0_i32_0 : i32
    scf.if %2 {
      %cst_10 = arith.constant 0.000000e+00 : f32
      %12 = vector.broadcast %cst_10 : f32 to vector<8x256xf32>
      %c0_11 = arith.constant 0 : index
      %c0_12 = arith.constant 0 : index
      %13 = vector.load %arg6[%c0_11, %c0_12] : memref<8x256xf32, #tpu.memory_space<vmem>>, vector<8x256xf32>
      tpu.vector_store %arg6[%c0_11, %c0_12], %12 {strides = array<i32>} : memref<8x256xf32, #tpu.memory_space<vmem>>, vector<8x256xf32>,
    } else {
    }
    %c0 = arith.constant 0 : index
    %c0_1 = arith.constant 0 : index
    %3 = vector.load %arg3[%c0, %c0_1] : memref<8x128xbf16, #tpu.memory_space<vmem>>, vector<8x128xbf16>
    %c0_2 = arith.constant 0 : index
    %c0_3 = arith.constant 0 : index
    %4 = vector.load %arg6[%c0_2, %c0_3] : memref<8x256xf32, #tpu.memory_space<vmem>>, vector<8x256xf32>
    %c0_4 = arith.constant 0 : index
    %c0_5 = arith.constant 0 : index
    %5 = vector.load %arg4[%c0_4, %c0_5] : memref<128x256xbf16, #tpu.memory_space<vmem>>, vector<128x256xbf16>
    %cst = arith.constant dense<0.000000e+00> : vector<8x256xf32>
    %6 = tpu.matmul %3, %5, %cst {dimension_numbers = #tpu.dot_dimension_numbers<[1], [0], [0], [1], [0, 0, 1, 1], [], []>} : vector<8x128xbf16>, vector<128x256xbf16>, vector<8x256xf32> -> vector<8x256xf32>
    %7 = arith.addf %4, %6 : vector<8x256xf32>
    %c0_6 = arith.constant 0 : index
    %c0_7 = arith.constant 0 : index
    %8 = vector.load %arg6[%c0_6, %c0_7] : memref<8x256xf32, #tpu.memory_space<vmem>>, vector<8x256xf32>
    tpu.vector_store %arg6[%c0_6, %c0_7], %7 {strides = array<i32>} : memref<8x256xf32, #tpu.memory_space<vmem>>, vector<8x256xf32>,
    %c0_i32_8 = arith.constant 0 : i32
    %9 = arith.cmpi eq, %arg2, %c0_i32_8 : i32
    %10 = arith.extui %9 : i1 to i32
    %c0_i32_9 = arith.constant 0 : i32
    %11 = arith.cmpi ne, %10, %c0_i32_9 : i32
    scf.if %11 {
      %c0_10 = arith.constant 0 : index
      %c0_11 = arith.constant 0 : index
      %12 = vector.load %arg6[%c0_10, %c0_11] : memref<8x256xf32, #tpu.memory_space<vmem>>, vector<8x256xf32>
      %c0_12 = arith.constant 0 : index
      %c0_13 = arith.constant 0 : index
      %13 = vector.load %arg5[%c0_12, %c0_13] : memref<8x256xf32, #tpu.memory_space<vmem>>, vector<8x256xf32>
      tpu.vector_store %arg5[%c0_12, %c0_13], %12 {strides = array<i32>} : memref<8x256xf32, #tpu.memory_space<vmem>>, vector<8x256xf32>,
    } else {
    }
    return
  }
  func.func @transform_0(%arg0: i32, %arg1: i32, %arg2: i32) -> (i32, i32) {
    %c0_i32 = arith.constant 0 : i32
    return %arg0, %arg2 : i32, i32
  }
  func.func @transform_1(%arg0: i32, %arg1: i32, %arg2: i32) -> (i32, i32) {
    %c0_i32 = arith.constant 0 : i32
    return %arg2, %arg1 : i32, i32
  }
  func.func @transform_2(%arg0: i32, %arg1: i32, %arg2: i32) -> (i32, i32) {
    %c0_i32 = arith.constant 0 : i32
    return %arg0, %arg1 : i32, i32
  }
}

module attributes {stable_mosaic.version = 11 : i64} {
  func.func @_gat_agg_kernel(%arg0: i32, %arg1: i32, %arg2: memref<2xi32, #tpu.memory_space<smem>>, %arg3: memref<2xi32, #tpu.memory_space<smem>>, %arg4: memref<1x128xi32, #tpu.memory_space<vmem>>, %arg5: memref<128x256xbf16, #tpu.memory_space<vmem>>, %arg6: memref<256x2xbf16, #tpu.memory_space<vmem>>, %arg7: memref<8x256xf32, #tpu.memory_space<vmem>>, %arg8: memref<8x256xf32, #tpu.memory_space<vmem>>, %arg9: memref<8x2xf32, #tpu.memory_space<vmem>>, %arg10: memref<128x256xbf16, #tpu.memory_space<vmem>>) attributes {dimension_semantics = [#tpu.dimension_semantics<parallel>, #tpu.dimension_semantics<arbitrary>], iteration_bounds = array<i64: 2, 1>, scalar_prefetch = 2 : i64, scratch_operands = 3 : i64, tpu.core_type = #tpu.core_type<tc>, window_params = [{transform_indices = @transform_0, window_bounds = array<i64: 1, 128>}, {transform_indices = @transform_1, window_bounds = array<i64: 128, 256>}, {pipeline_mode = #tpu.pipeline_mode<synchronous>, transform_indices = @transform_2, window_bounds = array<i64: 256, 2>}, {transform_indices = @transform_3, window_bounds = array<i64: 8, 256>}]} {
    %c0_i32 = arith.constant 0 : i32
    %0 = arith.cmpi eq, %arg1, %c0_i32 : i32
    %1 = arith.extui %0 : i1 to i32
    %c0_i32_0 = arith.constant 0 : i32
    %2 = arith.cmpi ne, %1, %c0_i32_0 : i32
    scf.if %2 {
      %cst = arith.constant 0.000000e+00 : f32
      %11 = vector.broadcast %cst : f32 to vector<8x256xf32>
      %c0 = arith.constant 0 : index
      %c0_4 = arith.constant 0 : index
      %12 = vector.load %arg8[%c0, %c0_4] : memref<8x256xf32, #tpu.memory_space<vmem>>, vector<8x256xf32>
      tpu.vector_store %arg8[%c0, %c0_4], %11 {strides = array<i32>} : memref<8x256xf32, #tpu.memory_space<vmem>>, vector<8x256xf32>,
      %cst_5 = arith.constant 0.000000e+00 : f32
      %13 = vector.broadcast %cst_5 : f32 to vector<8x2xf32>
      %c0_6 = arith.constant 0 : index
      %c0_7 = arith.constant 0 : index
      %14 = vector.load %arg9[%c0_6, %c0_7] : memref<8x2xf32, #tpu.memory_space<vmem>>, vector<8x2xf32>
      tpu.vector_store %arg9[%c0_6, %c0_7], %13 {strides = array<i32>} : memref<8x2xf32, #tpu.memory_space<vmem>>, vector<8x2xf32>,
    } else {
    }
    %3 = arith.index_cast %arg0 : i32 to index
    %4 = memref.load %arg3[%3] : memref<2xi32, #tpu.memory_space<smem>>
    %5 = arith.cmpi slt, %arg1, %4 : i32
    %6 = arith.extui %5 : i1 to i32
    %c0_i32_1 = arith.constant 0 : i32
    %7 = arith.cmpi ne, %6, %c0_i32_1 : i32
    scf.if %7 {
      %c0 = arith.constant 0 : index
      %c0_4 = arith.constant 0 : index
      %11 = vector.load %arg5[%c0, %c0_4] : memref<128x256xbf16, #tpu.memory_space<vmem>>, vector<128x256xbf16>
      %12 = arith.extf %11 : vector<128x256xbf16> to vector<128x256xf32>
      %c0_5 = arith.constant 0 : index
      %c0_6 = arith.constant 0 : index
      %13 = vector.load %arg6[%c0_5, %c0_6] : memref<256x2xbf16, #tpu.memory_space<vmem>>, vector<256x2xbf16>
      %cst = arith.constant dense<0.000000e+00> : vector<128x2xf32>
      %14 = tpu.matmul %11, %13, %cst {dimension_numbers = #tpu.dot_dimension_numbers<[1], [0], [0], [1], [0, 0, 1, 1], [], []>} : vector<128x256xbf16>, vector<256x2xbf16>, vector<128x2xf32> -> vector<128x2xf32>
      %cst_7 = arith.constant 0.000000e+00 : f32
      %15 = vector.broadcast %cst_7 : f32 to vector<128x2xf32>
      %16 = arith.cmpf ogt, %14, %15 : vector<128x2xf32>
      %cst_8 = arith.constant 2.000000e-01 : f32
      %17 = vector.broadcast %cst_8 : f32 to vector<128x2xf32>
      %18 = arith.mulf %17, %14 : vector<128x2xf32>
      %19 = arith.select %16, %14, %18 : vector<128x2xi1>, vector<128x2xf32>
      %cst_9 = arith.constant -8.000000e+01 : f32
      %20 = vector.broadcast %cst_9 : f32 to vector<128x2xf32>
      %21 = arith.maximumf %19, %20 : vector<128x2xf32>
      %cst_10 = arith.constant 0.000000e+00 : f32
      %22 = vector.broadcast %cst_10 : f32 to vector<128x2xf32>
      %23 = arith.subf %22, %21 : vector<128x2xf32>
      %24 = math.exp %23 : vector<128x2xf32>
      %c8_i32 = arith.constant 8 : i32
      %25 = arith.muli %arg0, %c8_i32 : i32
      %26 = tpu.iota {dimensions = array<i32: 0>} : vector<8x128xi32>
      %27 = vector.broadcast %25 : i32 to vector<8x128xi32>
      %28 = arith.addi %27, %26 : vector<8x128xi32>
      %c0_11 = arith.constant 0 : index
      %c0_12 = arith.constant 0 : index
      %29 = vector.load %arg4[%c0_11, %c0_12] : memref<1x128xi32, #tpu.memory_space<vmem>>, vector<1x128xi32>
      %30 = vector.broadcast %29 : vector<1x128xi32> to vector<8x128xi32>
      %31 = arith.cmpi eq, %28, %30 : vector<8x128xi32>
      %cst_13 = arith.constant 1.000000e+00 : f32
      %cst_14 = arith.constant 0.000000e+00 : f32
      %32 = vector.broadcast %cst_13 : f32 to vector<8x128xf32>
      %33 = vector.broadcast %cst_14 : f32 to vector<8x128xf32>
      %34 = arith.select %31, %32, %33 : vector<8x128xi1>, vector<8x128xf32>
      %35 = arith.truncf %34 : vector<8x128xf32> to vector<8x128xbf16>
      %36 = vector.extract_strided_slice %24 {offsets = [0, 0], sizes = [128, 1], strides = [1, 1]} : vector<128x2xf32> to vector<128x1xf32>
      %37 = vector.extract_strided_slice %12 {offsets = [0, 0], sizes = [128, 128], strides = [1, 1]} : vector<128x256xf32> to vector<128x128xf32>
      %38 = vector.broadcast %36 : vector<128x1xf32> to vector<128x128xf32>
      %39 = arith.mulf %38, %37 : vector<128x128xf32>
      %40 = arith.truncf %39 : vector<128x128xf32> to vector<128x128xbf16>
      %c0_15 = arith.constant 0 : index
      %c0_16 = arith.constant 0 : index
      %41 = vector.load %arg10[%c0_15, %c0_16] : memref<128x256xbf16, #tpu.memory_space<vmem>>, vector<128x128xbf16>
      tpu.vector_store %arg10[%c0_15, %c0_16], %40 {strides = array<i32>} : memref<128x256xbf16, #tpu.memory_space<vmem>>, vector<128x128xbf16>,
      %42 = vector.extract_strided_slice %24 {offsets = [0, 1], sizes = [128, 1], strides = [1, 1]} : vector<128x2xf32> to vector<128x1xf32>
      %43 = vector.extract_strided_slice %12 {offsets = [0, 128], sizes = [128, 128], strides = [1, 1]} : vector<128x256xf32> to vector<128x128xf32>
      %44 = vector.broadcast %42 : vector<128x1xf32> to vector<128x128xf32>
      %45 = arith.mulf %44, %43 : vector<128x128xf32>
      %46 = arith.truncf %45 : vector<128x128xf32> to vector<128x128xbf16>
      %c0_17 = arith.constant 0 : index
      %c128 = arith.constant 128 : index
      %47 = vector.load %arg10[%c0_17, %c128] : memref<128x256xbf16, #tpu.memory_space<vmem>>, vector<128x128xbf16>
      tpu.vector_store %arg10[%c0_17, %c128], %46 {strides = array<i32>} : memref<128x256xbf16, #tpu.memory_space<vmem>>, vector<128x128xbf16>,
      %c0_18 = arith.constant 0 : index
      %c0_19 = arith.constant 0 : index
      %48 = vector.load %arg8[%c0_18, %c0_19] : memref<8x256xf32, #tpu.memory_space<vmem>>, vector<8x256xf32>
      %c0_20 = arith.constant 0 : index
      %c0_21 = arith.constant 0 : index
      %49 = vector.load %arg10[%c0_20, %c0_21] : memref<128x256xbf16, #tpu.memory_space<vmem>>, vector<128x256xbf16>
      %cst_22 = arith.constant dense<0.000000e+00> : vector<8x256xf32>
      %50 = tpu.matmul %35, %49, %cst_22 {dimension_numbers = #tpu.dot_dimension_numbers<[1], [0], [0], [1], [0, 0, 1, 1], [], []>} : vector<8x128xbf16>, vector<128x256xbf16>, vector<8x256xf32> -> vector<8x256xf32>
      %51 = arith.addf %48, %50 : vector<8x256xf32>
      %c0_23 = arith.constant 0 : index
      %c0_24 = arith.constant 0 : index
      %52 = vector.load %arg8[%c0_23, %c0_24] : memref<8x256xf32, #tpu.memory_space<vmem>>, vector<8x256xf32>
      tpu.vector_store %arg8[%c0_23, %c0_24], %51 {strides = array<i32>} : memref<8x256xf32, #tpu.memory_space<vmem>>, vector<8x256xf32>,
      %c0_25 = arith.constant 0 : index
      %c0_26 = arith.constant 0 : index
      %53 = vector.load %arg9[%c0_25, %c0_26] : memref<8x2xf32, #tpu.memory_space<vmem>>, vector<8x2xf32>
      %54 = arith.truncf %24 : vector<128x2xf32> to vector<128x2xbf16>
      %cst_27 = arith.constant dense<0.000000e+00> : vector<8x2xf32>
      %55 = tpu.matmul %35, %54, %cst_27 {dimension_numbers = #tpu.dot_dimension_numbers<[1], [0], [0], [1], [0, 0, 1, 1], [], []>} : vector<8x128xbf16>, vector<128x2xbf16>, vector<8x2xf32> -> vector<8x2xf32>
      %56 = arith.addf %53, %55 : vector<8x2xf32>
      %c0_28 = arith.constant 0 : index
      %c0_29 = arith.constant 0 : index
      %57 = vector.load %arg9[%c0_28, %c0_29] : memref<8x2xf32, #tpu.memory_space<vmem>>, vector<8x2xf32>
      tpu.vector_store %arg9[%c0_28, %c0_29], %56 {strides = array<i32>} : memref<8x2xf32, #tpu.memory_space<vmem>>, vector<8x2xf32>,
    } else {
    }
    %c0_i32_2 = arith.constant 0 : i32
    %8 = arith.cmpi eq, %arg1, %c0_i32_2 : i32
    %9 = arith.extui %8 : i1 to i32
    %c0_i32_3 = arith.constant 0 : i32
    %10 = arith.cmpi ne, %9, %c0_i32_3 : i32
    scf.if %10 {
      %c0 = arith.constant 0 : index
      %c0_4 = arith.constant 0 : index
      %11 = vector.load %arg8[%c0, %c0_4] : memref<8x256xf32, #tpu.memory_space<vmem>>, vector<8x256xf32>
      %c0_5 = arith.constant 0 : index
      %c0_6 = arith.constant 0 : index
      %12 = vector.load %arg9[%c0_5, %c0_6] : memref<8x2xf32, #tpu.memory_space<vmem>>, vector<8x2xf32>
      %cst = arith.constant 0.000000e+00 : f32
      %13 = vector.broadcast %cst : f32 to vector<8x2xf32>
      %14 = arith.cmpf oeq, %12, %13 : vector<8x2xf32>
      %cst_7 = arith.constant 9.99999996E-13 : f32
      %15 = vector.broadcast %cst_7 : f32 to vector<8x2xf32>
      %16 = arith.select %14, %15, %12 : vector<8x2xi1>, vector<8x2xf32>
      %17 = vector.extract_strided_slice %11 {offsets = [0, 0], sizes = [8, 128], strides = [1, 1]} : vector<8x256xf32> to vector<8x128xf32>
      %18 = vector.extract_strided_slice %16 {offsets = [0, 0], sizes = [8, 1], strides = [1, 1]} : vector<8x2xf32> to vector<8x1xf32>
      %19 = vector.broadcast %18 : vector<8x1xf32> to vector<8x128xf32>
      %20 = arith.divf %17, %19 : vector<8x128xf32>
      %cst_8 = arith.constant 0.000000e+00 : f32
      %21 = vector.broadcast %cst_8 : f32 to vector<8x128xf32>
      %22 = arith.cmpf ogt, %20, %21 : vector<8x128xf32>
      %cst_9 = arith.constant 0.000000e+00 : f32
      %23 = vector.broadcast %cst_9 : f32 to vector<8x128xf32>
      %24 = arith.minimumf %20, %23 : vector<8x128xf32>
      %25 = math.exp %24 : vector<8x128xf32>
      %cst_10 = arith.constant 1.000000e+00 : f32
      %26 = vector.broadcast %cst_10 : f32 to vector<8x128xf32>
      %27 = arith.subf %25, %26 : vector<8x128xf32>
      %28 = arith.select %22, %20, %27 : vector<8x128xi1>, vector<8x128xf32>
      %c0_11 = arith.constant 0 : index
      %c0_12 = arith.constant 0 : index
      %29 = vector.load %arg7[%c0_11, %c0_12] : memref<8x256xf32, #tpu.memory_space<vmem>>, vector<8x128xf32>
      tpu.vector_store %arg7[%c0_11, %c0_12], %28 {strides = array<i32>} : memref<8x256xf32, #tpu.memory_space<vmem>>, vector<8x128xf32>,
      %30 = vector.extract_strided_slice %11 {offsets = [0, 128], sizes = [8, 128], strides = [1, 1]} : vector<8x256xf32> to vector<8x128xf32>
      %31 = vector.extract_strided_slice %16 {offsets = [0, 1], sizes = [8, 1], strides = [1, 1]} : vector<8x2xf32> to vector<8x1xf32>
      %32 = vector.broadcast %31 : vector<8x1xf32> to vector<8x128xf32>
      %33 = arith.divf %30, %32 : vector<8x128xf32>
      %cst_13 = arith.constant 0.000000e+00 : f32
      %34 = vector.broadcast %cst_13 : f32 to vector<8x128xf32>
      %35 = arith.cmpf ogt, %33, %34 : vector<8x128xf32>
      %cst_14 = arith.constant 0.000000e+00 : f32
      %36 = vector.broadcast %cst_14 : f32 to vector<8x128xf32>
      %37 = arith.minimumf %33, %36 : vector<8x128xf32>
      %38 = math.exp %37 : vector<8x128xf32>
      %cst_15 = arith.constant 1.000000e+00 : f32
      %39 = vector.broadcast %cst_15 : f32 to vector<8x128xf32>
      %40 = arith.subf %38, %39 : vector<8x128xf32>
      %41 = arith.select %35, %33, %40 : vector<8x128xi1>, vector<8x128xf32>
      %c0_16 = arith.constant 0 : index
      %c128 = arith.constant 128 : index
      %42 = vector.load %arg7[%c0_16, %c128] : memref<8x256xf32, #tpu.memory_space<vmem>>, vector<8x128xf32>
      tpu.vector_store %arg7[%c0_16, %c128], %41 {strides = array<i32>} : memref<8x256xf32, #tpu.memory_space<vmem>>, vector<8x128xf32>,
    } else {
    }
    return
  }
  func.func @transform_0(%arg0: i32, %arg1: i32, %arg2: memref<2xi32, #tpu.memory_space<smem>>, %arg3: memref<2xi32, #tpu.memory_space<smem>>) -> (i32, i32) {
    %0 = arith.index_cast %arg0 : i32 to index
    %1 = memref.load %arg2[%0] : memref<2xi32, #tpu.memory_space<smem>>
    %2 = arith.index_cast %arg0 : i32 to index
    %3 = memref.load %arg3[%2] : memref<2xi32, #tpu.memory_space<smem>>
    %c1_i32 = arith.constant 1 : i32
    %4 = arith.subi %3, %c1_i32 : i32
    %c0_i32 = arith.constant 0 : i32
    %5 = arith.maxsi %4, %c0_i32 : i32
    %6 = arith.minsi %arg1, %5 : i32
    %7 = arith.addi %1, %6 : i32
    %c0_i32_0 = arith.constant 0 : i32
    %c0_i32_1 = arith.constant 0 : i32
    return %c0_i32_0, %7 : i32, i32
  }
  func.func @transform_1(%arg0: i32, %arg1: i32, %arg2: memref<2xi32, #tpu.memory_space<smem>>, %arg3: memref<2xi32, #tpu.memory_space<smem>>) -> (i32, i32) {
    %0 = arith.index_cast %arg0 : i32 to index
    %1 = memref.load %arg2[%0] : memref<2xi32, #tpu.memory_space<smem>>
    %2 = arith.index_cast %arg0 : i32 to index
    %3 = memref.load %arg3[%2] : memref<2xi32, #tpu.memory_space<smem>>
    %c1_i32 = arith.constant 1 : i32
    %4 = arith.subi %3, %c1_i32 : i32
    %c0_i32 = arith.constant 0 : i32
    %5 = arith.maxsi %4, %c0_i32 : i32
    %6 = arith.minsi %arg1, %5 : i32
    %7 = arith.addi %1, %6 : i32
    %c0_i32_0 = arith.constant 0 : i32
    %c0_i32_1 = arith.constant 0 : i32
    return %7, %c0_i32_0 : i32, i32
  }
  func.func @transform_2(%arg0: i32, %arg1: i32, %arg2: memref<2xi32, #tpu.memory_space<smem>>, %arg3: memref<2xi32, #tpu.memory_space<smem>>) -> (i32, i32) {
    %c0_i32 = arith.constant 0 : i32
    %c0_i32_0 = arith.constant 0 : i32
    %c0_i32_1 = arith.constant 0 : i32
    return %c0_i32, %c0_i32_0 : i32, i32
  }
  func.func @transform_3(%arg0: i32, %arg1: i32, %arg2: memref<2xi32, #tpu.memory_space<smem>>, %arg3: memref<2xi32, #tpu.memory_space<smem>>) -> (i32, i32) {
    %c0_i32 = arith.constant 0 : i32
    %c0_i32_0 = arith.constant 0 : i32
    return %arg0, %c0_i32 : i32, i32
  }
}

module attributes {stable_mosaic.version = 11 : i64} {
  func.func @_matmul_kernel(%arg0: i32, %arg1: i32, %arg2: i32, %arg3: memref<8x128xbf16, #tpu.memory_space<vmem>>, %arg4: memref<128x128xbf16, #tpu.memory_space<vmem>>, %arg5: memref<8x128xf32, #tpu.memory_space<vmem>>, %arg6: memref<8x128xf32, #tpu.memory_space<vmem>>) attributes {dimension_semantics = [#tpu.dimension_semantics<parallel>, #tpu.dimension_semantics<parallel>, #tpu.dimension_semantics<arbitrary>], iteration_bounds = array<i64: 1, 1, 1>, scalar_prefetch = 0 : i64, scratch_operands = 1 : i64, tpu.core_type = #tpu.core_type<tc>, window_params = [{transform_indices = @transform_0, window_bounds = array<i64: 8, 128>}, {transform_indices = @transform_1, window_bounds = array<i64: 128, 128>}, {transform_indices = @transform_2, window_bounds = array<i64: 8, 128>}]} {
    %c0_i32 = arith.constant 0 : i32
    %0 = arith.cmpi eq, %arg2, %c0_i32 : i32
    %1 = arith.extui %0 : i1 to i32
    %c0_i32_0 = arith.constant 0 : i32
    %2 = arith.cmpi ne, %1, %c0_i32_0 : i32
    scf.if %2 {
      %cst_10 = arith.constant 0.000000e+00 : f32
      %12 = vector.broadcast %cst_10 : f32 to vector<8x128xf32>
      %c0_11 = arith.constant 0 : index
      %c0_12 = arith.constant 0 : index
      %13 = vector.load %arg6[%c0_11, %c0_12] : memref<8x128xf32, #tpu.memory_space<vmem>>, vector<8x128xf32>
      tpu.vector_store %arg6[%c0_11, %c0_12], %12 {strides = array<i32>} : memref<8x128xf32, #tpu.memory_space<vmem>>, vector<8x128xf32>,
    } else {
    }
    %c0 = arith.constant 0 : index
    %c0_1 = arith.constant 0 : index
    %3 = vector.load %arg3[%c0, %c0_1] : memref<8x128xbf16, #tpu.memory_space<vmem>>, vector<8x128xbf16>
    %c0_2 = arith.constant 0 : index
    %c0_3 = arith.constant 0 : index
    %4 = vector.load %arg6[%c0_2, %c0_3] : memref<8x128xf32, #tpu.memory_space<vmem>>, vector<8x128xf32>
    %c0_4 = arith.constant 0 : index
    %c0_5 = arith.constant 0 : index
    %5 = vector.load %arg4[%c0_4, %c0_5] : memref<128x128xbf16, #tpu.memory_space<vmem>>, vector<128x128xbf16>
    %cst = arith.constant dense<0.000000e+00> : vector<8x128xf32>
    %6 = tpu.matmul %3, %5, %cst {dimension_numbers = #tpu.dot_dimension_numbers<[1], [0], [0], [1], [0, 0, 1, 1], [], []>} : vector<8x128xbf16>, vector<128x128xbf16>, vector<8x128xf32> -> vector<8x128xf32>
    %7 = arith.addf %4, %6 : vector<8x128xf32>
    %c0_6 = arith.constant 0 : index
    %c0_7 = arith.constant 0 : index
    %8 = vector.load %arg6[%c0_6, %c0_7] : memref<8x128xf32, #tpu.memory_space<vmem>>, vector<8x128xf32>
    tpu.vector_store %arg6[%c0_6, %c0_7], %7 {strides = array<i32>} : memref<8x128xf32, #tpu.memory_space<vmem>>, vector<8x128xf32>,
    %c0_i32_8 = arith.constant 0 : i32
    %9 = arith.cmpi eq, %arg2, %c0_i32_8 : i32
    %10 = arith.extui %9 : i1 to i32
    %c0_i32_9 = arith.constant 0 : i32
    %11 = arith.cmpi ne, %10, %c0_i32_9 : i32
    scf.if %11 {
      %c0_10 = arith.constant 0 : index
      %c0_11 = arith.constant 0 : index
      %12 = vector.load %arg6[%c0_10, %c0_11] : memref<8x128xf32, #tpu.memory_space<vmem>>, vector<8x128xf32>
      %c0_12 = arith.constant 0 : index
      %c0_13 = arith.constant 0 : index
      %13 = vector.load %arg5[%c0_12, %c0_13] : memref<8x128xf32, #tpu.memory_space<vmem>>, vector<8x128xf32>
      tpu.vector_store %arg5[%c0_12, %c0_13], %12 {strides = array<i32>} : memref<8x128xf32, #tpu.memory_space<vmem>>, vector<8x128xf32>,
    } else {
    }
    return
  }
  func.func @transform_0(%arg0: i32, %arg1: i32, %arg2: i32) -> (i32, i32) {
    %c0_i32 = arith.constant 0 : i32
    return %arg0, %arg2 : i32, i32
  }
  func.func @transform_1(%arg0: i32, %arg1: i32, %arg2: i32) -> (i32, i32) {
    %c0_i32 = arith.constant 0 : i32
    return %arg2, %arg1 : i32, i32
  }
  func.func @transform_2(%arg0: i32, %arg1: i32, %arg2: i32) -> (i32, i32) {
    %c0_i32 = arith.constant 0 : i32
    return %arg0, %arg1 : i32, i32
  }
}

module attributes {stable_mosaic.version = 11 : i64} {
  func.func @_gat_agg_kernel(%arg0: i32, %arg1: i32, %arg2: memref<2xi32, #tpu.memory_space<smem>>, %arg3: memref<2xi32, #tpu.memory_space<smem>>, %arg4: memref<1x128xi32, #tpu.memory_space<vmem>>, %arg5: memref<128x128xbf16, #tpu.memory_space<vmem>>, %arg6: memref<128x1xbf16, #tpu.memory_space<vmem>>, %arg7: memref<8x128xf32, #tpu.memory_space<vmem>>, %arg8: memref<8x128xf32, #tpu.memory_space<vmem>>, %arg9: memref<8x1xf32, #tpu.memory_space<vmem>>, %arg10: memref<128x128xbf16, #tpu.memory_space<vmem>>) attributes {dimension_semantics = [#tpu.dimension_semantics<parallel>, #tpu.dimension_semantics<arbitrary>], iteration_bounds = array<i64: 2, 1>, scalar_prefetch = 2 : i64, scratch_operands = 3 : i64, tpu.core_type = #tpu.core_type<tc>, window_params = [{transform_indices = @transform_0, window_bounds = array<i64: 1, 128>}, {transform_indices = @transform_1, window_bounds = array<i64: 128, 128>}, {pipeline_mode = #tpu.pipeline_mode<synchronous>, transform_indices = @transform_2, window_bounds = array<i64: 128, 1>}, {transform_indices = @transform_3, window_bounds = array<i64: 8, 128>}]} {
    %c0_i32 = arith.constant 0 : i32
    %0 = arith.cmpi eq, %arg1, %c0_i32 : i32
    %1 = arith.extui %0 : i1 to i32
    %c0_i32_0 = arith.constant 0 : i32
    %2 = arith.cmpi ne, %1, %c0_i32_0 : i32
    scf.if %2 {
      %cst = arith.constant 0.000000e+00 : f32
      %11 = vector.broadcast %cst : f32 to vector<8x128xf32>
      %c0 = arith.constant 0 : index
      %c0_4 = arith.constant 0 : index
      %12 = vector.load %arg8[%c0, %c0_4] : memref<8x128xf32, #tpu.memory_space<vmem>>, vector<8x128xf32>
      tpu.vector_store %arg8[%c0, %c0_4], %11 {strides = array<i32>} : memref<8x128xf32, #tpu.memory_space<vmem>>, vector<8x128xf32>,
      %cst_5 = arith.constant 0.000000e+00 : f32
      %13 = vector.broadcast %cst_5 : f32 to vector<8x1xf32>
      %c0_6 = arith.constant 0 : index
      %c0_7 = arith.constant 0 : index
      %14 = vector.load %arg9[%c0_6, %c0_7] : memref<8x1xf32, #tpu.memory_space<vmem>>, vector<8x1xf32>
      tpu.vector_store %arg9[%c0_6, %c0_7], %13 {strides = array<i32>} : memref<8x1xf32, #tpu.memory_space<vmem>>, vector<8x1xf32>,
    } else {
    }
    %3 = arith.index_cast %arg0 : i32 to index
    %4 = memref.load %arg3[%3] : memref<2xi32, #tpu.memory_space<smem>>
    %5 = arith.cmpi slt, %arg1, %4 : i32
    %6 = arith.extui %5 : i1 to i32
    %c0_i32_1 = arith.constant 0 : i32
    %7 = arith.cmpi ne, %6, %c0_i32_1 : i32
    scf.if %7 {
      %c0 = arith.constant 0 : index
      %c0_4 = arith.constant 0 : index
      %11 = vector.load %arg5[%c0, %c0_4] : memref<128x128xbf16, #tpu.memory_space<vmem>>, vector<128x128xbf16>
      %12 = arith.extf %11 : vector<128x128xbf16> to vector<128x128xf32>
      %c0_5 = arith.constant 0 : index
      %c0_6 = arith.constant 0 : index
      %13 = vector.load %arg6[%c0_5, %c0_6] : memref<128x1xbf16, #tpu.memory_space<vmem>>, vector<128x1xbf16>
      %cst = arith.constant dense<0.000000e+00> : vector<128x1xf32>
      %14 = tpu.matmul %11, %13, %cst {dimension_numbers = #tpu.dot_dimension_numbers<[1], [0], [0], [1], [0, 0, 1, 1], [], []>} : vector<128x128xbf16>, vector<128x1xbf16>, vector<128x1xf32> -> vector<128x1xf32>
      %cst_7 = arith.constant 0.000000e+00 : f32
      %15 = vector.broadcast %cst_7 : f32 to vector<128x1xf32>
      %16 = arith.cmpf ogt, %14, %15 : vector<128x1xf32>
      %cst_8 = arith.constant 2.000000e-01 : f32
      %17 = vector.broadcast %cst_8 : f32 to vector<128x1xf32>
      %18 = arith.mulf %17, %14 : vector<128x1xf32>
      %19 = arith.select %16, %14, %18 : vector<128x1xi1>, vector<128x1xf32>
      %cst_9 = arith.constant -8.000000e+01 : f32
      %20 = vector.broadcast %cst_9 : f32 to vector<128x1xf32>
      %21 = arith.maximumf %19, %20 : vector<128x1xf32>
      %cst_10 = arith.constant 0.000000e+00 : f32
      %22 = vector.broadcast %cst_10 : f32 to vector<128x1xf32>
      %23 = arith.subf %22, %21 : vector<128x1xf32>
      %24 = math.exp %23 : vector<128x1xf32>
      %c8_i32 = arith.constant 8 : i32
      %25 = arith.muli %arg0, %c8_i32 : i32
      %26 = tpu.iota {dimensions = array<i32: 0>} : vector<8x128xi32>
      %27 = vector.broadcast %25 : i32 to vector<8x128xi32>
      %28 = arith.addi %27, %26 : vector<8x128xi32>
      %c0_11 = arith.constant 0 : index
      %c0_12 = arith.constant 0 : index
      %29 = vector.load %arg4[%c0_11, %c0_12] : memref<1x128xi32, #tpu.memory_space<vmem>>, vector<1x128xi32>
      %30 = vector.broadcast %29 : vector<1x128xi32> to vector<8x128xi32>
      %31 = arith.cmpi eq, %28, %30 : vector<8x128xi32>
      %cst_13 = arith.constant 1.000000e+00 : f32
      %cst_14 = arith.constant 0.000000e+00 : f32
      %32 = vector.broadcast %cst_13 : f32 to vector<8x128xf32>
      %33 = vector.broadcast %cst_14 : f32 to vector<8x128xf32>
      %34 = arith.select %31, %32, %33 : vector<8x128xi1>, vector<8x128xf32>
      %35 = arith.truncf %34 : vector<8x128xf32> to vector<8x128xbf16>
      %36 = vector.broadcast %24 : vector<128x1xf32> to vector<128x128xf32>
      %37 = arith.mulf %36, %12 : vector<128x128xf32>
      %38 = arith.truncf %37 : vector<128x128xf32> to vector<128x128xbf16>
      %c0_15 = arith.constant 0 : index
      %c0_16 = arith.constant 0 : index
      %39 = vector.load %arg10[%c0_15, %c0_16] : memref<128x128xbf16, #tpu.memory_space<vmem>>, vector<128x128xbf16>
      tpu.vector_store %arg10[%c0_15, %c0_16], %38 {strides = array<i32>} : memref<128x128xbf16, #tpu.memory_space<vmem>>, vector<128x128xbf16>,
      %c0_17 = arith.constant 0 : index
      %c0_18 = arith.constant 0 : index
      %40 = vector.load %arg8[%c0_17, %c0_18] : memref<8x128xf32, #tpu.memory_space<vmem>>, vector<8x128xf32>
      %c0_19 = arith.constant 0 : index
      %c0_20 = arith.constant 0 : index
      %41 = vector.load %arg10[%c0_19, %c0_20] : memref<128x128xbf16, #tpu.memory_space<vmem>>, vector<128x128xbf16>
      %cst_21 = arith.constant dense<0.000000e+00> : vector<8x128xf32>
      %42 = tpu.matmul %35, %41, %cst_21 {dimension_numbers = #tpu.dot_dimension_numbers<[1], [0], [0], [1], [0, 0, 1, 1], [], []>} : vector<8x128xbf16>, vector<128x128xbf16>, vector<8x128xf32> -> vector<8x128xf32>
      %43 = arith.addf %40, %42 : vector<8x128xf32>
      %c0_22 = arith.constant 0 : index
      %c0_23 = arith.constant 0 : index
      %44 = vector.load %arg8[%c0_22, %c0_23] : memref<8x128xf32, #tpu.memory_space<vmem>>, vector<8x128xf32>
      tpu.vector_store %arg8[%c0_22, %c0_23], %43 {strides = array<i32>} : memref<8x128xf32, #tpu.memory_space<vmem>>, vector<8x128xf32>,
      %c0_24 = arith.constant 0 : index
      %c0_25 = arith.constant 0 : index
      %45 = vector.load %arg9[%c0_24, %c0_25] : memref<8x1xf32, #tpu.memory_space<vmem>>, vector<8x1xf32>
      %46 = arith.truncf %24 : vector<128x1xf32> to vector<128x1xbf16>
      %cst_26 = arith.constant dense<0.000000e+00> : vector<8x1xf32>
      %47 = tpu.matmul %35, %46, %cst_26 {dimension_numbers = #tpu.dot_dimension_numbers<[1], [0], [0], [1], [0, 0, 1, 1], [], []>} : vector<8x128xbf16>, vector<128x1xbf16>, vector<8x1xf32> -> vector<8x1xf32>
      %48 = arith.addf %45, %47 : vector<8x1xf32>
      %c0_27 = arith.constant 0 : index
      %c0_28 = arith.constant 0 : index
      %49 = vector.load %arg9[%c0_27, %c0_28] : memref<8x1xf32, #tpu.memory_space<vmem>>, vector<8x1xf32>
      tpu.vector_store %arg9[%c0_27, %c0_28], %48 {strides = array<i32>} : memref<8x1xf32, #tpu.memory_space<vmem>>, vector<8x1xf32>,
    } else {
    }
    %c0_i32_2 = arith.constant 0 : i32
    %8 = arith.cmpi eq, %arg1, %c0_i32_2 : i32
    %9 = arith.extui %8 : i1 to i32
    %c0_i32_3 = arith.constant 0 : i32
    %10 = arith.cmpi ne, %9, %c0_i32_3 : i32
    scf.if %10 {
      %c0 = arith.constant 0 : index
      %c0_4 = arith.constant 0 : index
      %11 = vector.load %arg8[%c0, %c0_4] : memref<8x128xf32, #tpu.memory_space<vmem>>, vector<8x128xf32>
      %c0_5 = arith.constant 0 : index
      %c0_6 = arith.constant 0 : index
      %12 = vector.load %arg9[%c0_5, %c0_6] : memref<8x1xf32, #tpu.memory_space<vmem>>, vector<8x1xf32>
      %cst = arith.constant 0.000000e+00 : f32
      %13 = vector.broadcast %cst : f32 to vector<8x1xf32>
      %14 = arith.cmpf oeq, %12, %13 : vector<8x1xf32>
      %cst_7 = arith.constant 9.99999996E-13 : f32
      %15 = vector.broadcast %cst_7 : f32 to vector<8x1xf32>
      %16 = arith.select %14, %15, %12 : vector<8x1xi1>, vector<8x1xf32>
      %17 = vector.broadcast %16 : vector<8x1xf32> to vector<8x128xf32>
      %18 = arith.divf %11, %17 : vector<8x128xf32>
      %cst_8 = arith.constant 0.000000e+00 : f32
      %19 = vector.broadcast %cst_8 : f32 to vector<8x128xf32>
      %20 = arith.cmpf ogt, %18, %19 : vector<8x128xf32>
      %cst_9 = arith.constant 0.000000e+00 : f32
      %21 = vector.broadcast %cst_9 : f32 to vector<8x128xf32>
      %22 = arith.minimumf %18, %21 : vector<8x128xf32>
      %23 = math.exp %22 : vector<8x128xf32>
      %cst_10 = arith.constant 1.000000e+00 : f32
      %24 = vector.broadcast %cst_10 : f32 to vector<8x128xf32>
      %25 = arith.subf %23, %24 : vector<8x128xf32>
      %26 = arith.select %20, %18, %25 : vector<8x128xi1>, vector<8x128xf32>
      %c0_11 = arith.constant 0 : index
      %c0_12 = arith.constant 0 : index
      %27 = vector.load %arg7[%c0_11, %c0_12] : memref<8x128xf32, #tpu.memory_space<vmem>>, vector<8x128xf32>
      tpu.vector_store %arg7[%c0_11, %c0_12], %26 {strides = array<i32>} : memref<8x128xf32, #tpu.memory_space<vmem>>, vector<8x128xf32>,
    } else {
    }
    return
  }
  func.func @transform_0(%arg0: i32, %arg1: i32, %arg2: memref<2xi32, #tpu.memory_space<smem>>, %arg3: memref<2xi32, #tpu.memory_space<smem>>) -> (i32, i32) {
    %0 = arith.index_cast %arg0 : i32 to index
    %1 = memref.load %arg2[%0] : memref<2xi32, #tpu.memory_space<smem>>
    %2 = arith.index_cast %arg0 : i32 to index
    %3 = memref.load %arg3[%2] : memref<2xi32, #tpu.memory_space<smem>>
    %c1_i32 = arith.constant 1 : i32
    %4 = arith.subi %3, %c1_i32 : i32
    %c0_i32 = arith.constant 0 : i32
    %5 = arith.maxsi %4, %c0_i32 : i32
    %6 = arith.minsi %arg1, %5 : i32
    %7 = arith.addi %1, %6 : i32
    %c0_i32_0 = arith.constant 0 : i32
    %c0_i32_1 = arith.constant 0 : i32
    return %c0_i32_0, %7 : i32, i32
  }
  func.func @transform_1(%arg0: i32, %arg1: i32, %arg2: memref<2xi32, #tpu.memory_space<smem>>, %arg3: memref<2xi32, #tpu.memory_space<smem>>) -> (i32, i32) {
    %0 = arith.index_cast %arg0 : i32 to index
    %1 = memref.load %arg2[%0] : memref<2xi32, #tpu.memory_space<smem>>
    %2 = arith.index_cast %arg0 : i32 to index
    %3 = memref.load %arg3[%2] : memref<2xi32, #tpu.memory_space<smem>>
    %c1_i32 = arith.constant 1 : i32
    %4 = arith.subi %3, %c1_i32 : i32
    %c0_i32 = arith.constant 0 : i32
    %5 = arith.maxsi %4, %c0_i32 : i32
    %6 = arith.minsi %arg1, %5 : i32
    %7 = arith.addi %1, %6 : i32
    %c0_i32_0 = arith.constant 0 : i32
    %c0_i32_1 = arith.constant 0 : i32
    return %7, %c0_i32_0 : i32, i32
  }
  func.func @transform_2(%arg0: i32, %arg1: i32, %arg2: memref<2xi32, #tpu.memory_space<smem>>, %arg3: memref<2xi32, #tpu.memory_space<smem>>) -> (i32, i32) {
    %c0_i32 = arith.constant 0 : i32
    %c0_i32_0 = arith.constant 0 : i32
    %c0_i32_1 = arith.constant 0 : i32
    return %c0_i32, %c0_i32_0 : i32, i32
  }
  func.func @transform_3(%arg0: i32, %arg1: i32, %arg2: memref<2xi32, #tpu.memory_space<smem>>, %arg3: memref<2xi32, #tpu.memory_space<smem>>) -> (i32, i32) {
    %c0_i32 = arith.constant 0 : i32
    %c0_i32_0 = arith.constant 0 : i32
    return %arg0, %c0_i32 : i32, i32
  }
}

module attributes {stable_mosaic.version = 11 : i64} {
  func.func @_entity_update_kernel(%arg0: i32, %arg1: i32, %arg2: memref<8x128xbf16, #tpu.memory_space<vmem>>, %arg3: memref<128x128xbf16, #tpu.memory_space<vmem>>, %arg4: memref<8x1xf32, #tpu.memory_space<vmem>>, %arg5: memref<8x128xf32, #tpu.memory_space<vmem>>, %arg6: memref<8x128xf32, #tpu.memory_space<vmem>>, %arg7: memref<8x128xf32, #tpu.memory_space<vmem>>) attributes {dimension_semantics = [#tpu.dimension_semantics<parallel>, #tpu.dimension_semantics<arbitrary>], iteration_bounds = array<i64: 2, 1>, scalar_prefetch = 0 : i64, scratch_operands = 1 : i64, tpu.core_type = #tpu.core_type<tc>, window_params = [{transform_indices = @transform_0, window_bounds = array<i64: 8, 128>}, {transform_indices = @transform_1, window_bounds = array<i64: 128, 128>}, {transform_indices = @transform_2, window_bounds = array<i64: 8, 1>}, {transform_indices = @transform_3, window_bounds = array<i64: 8, 128>}, {transform_indices = @transform_4, window_bounds = array<i64: 8, 128>}]} {
    %c0_i32 = arith.constant 0 : i32
    %0 = arith.cmpi eq, %arg1, %c0_i32 : i32
    %1 = arith.extui %0 : i1 to i32
    %c0_i32_0 = arith.constant 0 : i32
    %2 = arith.cmpi ne, %1, %c0_i32_0 : i32
    scf.if %2 {
      %cst_12 = arith.constant 0.000000e+00 : f32
      %22 = vector.broadcast %cst_12 : f32 to vector<8x128xf32>
      %c0_13 = arith.constant 0 : index
      %c0_14 = arith.constant 0 : index
      %23 = vector.load %arg7[%c0_13, %c0_14] : memref<8x128xf32, #tpu.memory_space<vmem>>, vector<8x128xf32>
      tpu.vector_store %arg7[%c0_13, %c0_14], %22 {strides = array<i32>} : memref<8x128xf32, #tpu.memory_space<vmem>>, vector<8x128xf32>,
    } else {
    }
    %c0 = arith.constant 0 : index
    %c0_1 = arith.constant 0 : index
    %3 = vector.load %arg2[%c0, %c0_1] : memref<8x128xbf16, #tpu.memory_space<vmem>>, vector<8x128xbf16>
    %4 = arith.extf %3 : vector<8x128xbf16> to vector<8x128xf32>
    %5 = arith.mulf %4, %4 : vector<8x128xf32>
    %cst = arith.constant dense<0.000000e+00> : vector<8xf32>
    %6 = vector.multi_reduction <add>, %5, %cst [1] : vector<8x128xf32> to vector<8xf32>
    %7 = vector.shape_cast %6 : vector<8xf32> to vector<8x1xf32>
    %8 = math.sqrt %7 : vector<8x1xf32>
    %cst_2 = arith.constant 9.99999996E-13 : f32
    %9 = vector.broadcast %cst_2 : f32 to vector<8x1xf32>
    %10 = arith.maximumf %8, %9 : vector<8x1xf32>
    %11 = vector.broadcast %10 : vector<8x1xf32> to vector<8x128xf32>
    %12 = arith.divf %4, %11 : vector<8x128xf32>
    %13 = arith.truncf %12 : vector<8x128xf32> to vector<8x128xbf16>
    %c0_3 = arith.constant 0 : index
    %c0_4 = arith.constant 0 : index
    %14 = vector.load %arg7[%c0_3, %c0_4] : memref<8x128xf32, #tpu.memory_space<vmem>>, vector<8x128xf32>
    %c0_5 = arith.constant 0 : index
    %c0_6 = arith.constant 0 : index
    %15 = vector.load %arg3[%c0_5, %c0_6] : memref<128x128xbf16, #tpu.memory_space<vmem>>, vector<128x128xbf16>
    %cst_7 = arith.constant dense<0.000000e+00> : vector<8x128xf32>
    %16 = tpu.matmul %13, %15, %cst_7 {dimension_numbers = #tpu.dot_dimension_numbers<[1], [0], [0], [1], [0, 0, 1, 1], [], []>} : vector<8x128xbf16>, vector<128x128xbf16>, vector<8x128xf32> -> vector<8x128xf32>
    %17 = arith.addf %14, %16 : vector<8x128xf32>
    %c0_8 = arith.constant 0 : index
    %c0_9 = arith.constant 0 : index
    %18 = vector.load %arg7[%c0_8, %c0_9] : memref<8x128xf32, #tpu.memory_space<vmem>>, vector<8x128xf32>
    tpu.vector_store %arg7[%c0_8, %c0_9], %17 {strides = array<i32>} : memref<8x128xf32, #tpu.memory_space<vmem>>, vector<8x128xf32>,
    %c0_i32_10 = arith.constant 0 : i32
    %19 = arith.cmpi eq, %arg1, %c0_i32_10 : i32
    %20 = arith.extui %19 : i1 to i32
    %c0_i32_11 = arith.constant 0 : i32
    %21 = arith.cmpi ne, %20, %c0_i32_11 : i32
    scf.if %21 {
      %c0_12 = arith.constant 0 : index
      %c0_13 = arith.constant 0 : index
      %22 = vector.load %arg7[%c0_12, %c0_13] : memref<8x128xf32, #tpu.memory_space<vmem>>, vector<8x128xf32>
      %c0_14 = arith.constant 0 : index
      %c0_15 = arith.constant 0 : index
      %23 = vector.load %arg4[%c0_14, %c0_15] : memref<8x1xf32, #tpu.memory_space<vmem>>, vector<8x1xf32>
      %c0_16 = arith.constant 0 : index
      %c0_17 = arith.constant 0 : index
      %24 = vector.load %arg5[%c0_16, %c0_17] : memref<8x128xf32, #tpu.memory_space<vmem>>, vector<8x128xf32>
      %25 = vector.broadcast %23 : vector<8x1xf32> to vector<8x128xf32>
      %26 = arith.mulf %25, %24 : vector<8x128xf32>
      %27 = arith.addf %22, %26 : vector<8x128xf32>
      %28 = arith.mulf %27, %27 : vector<8x128xf32>
      %cst_18 = arith.constant dense<0.000000e+00> : vector<8xf32>
      %29 = vector.multi_reduction <add>, %28, %cst_18 [1] : vector<8x128xf32> to vector<8xf32>
      %30 = vector.shape_cast %29 : vector<8xf32> to vector<8x1xf32>
      %31 = math.sqrt %30 : vector<8x1xf32>
      %cst_19 = arith.constant 9.99999996E-13 : f32
      %32 = vector.broadcast %cst_19 : f32 to vector<8x1xf32>
      %33 = arith.maximumf %31, %32 : vector<8x1xf32>
      %34 = vector.broadcast %33 : vector<8x1xf32> to vector<8x128xf32>
      %35 = arith.divf %27, %34 : vector<8x128xf32>
      %c0_20 = arith.constant 0 : index
      %c0_21 = arith.constant 0 : index
      %36 = vector.load %arg6[%c0_20, %c0_21] : memref<8x128xf32, #tpu.memory_space<vmem>>, vector<8x128xf32>
      tpu.vector_store %arg6[%c0_20, %c0_21], %35 {strides = array<i32>} : memref<8x128xf32, #tpu.memory_space<vmem>>, vector<8x128xf32>,
    } else {
    }
    return
  }
  func.func @transform_0(%arg0: i32, %arg1: i32) -> (i32, i32) {
    %c0_i32 = arith.constant 0 : i32
    return %arg0, %arg1 : i32, i32
  }
  func.func @transform_1(%arg0: i32, %arg1: i32) -> (i32, i32) {
    %c0_i32 = arith.constant 0 : i32
    %c0_i32_0 = arith.constant 0 : i32
    return %arg1, %c0_i32 : i32, i32
  }
  func.func @transform_2(%arg0: i32, %arg1: i32) -> (i32, i32) {
    %c0_i32 = arith.constant 0 : i32
    %c0_i32_0 = arith.constant 0 : i32
    return %arg0, %c0_i32 : i32, i32
  }
  func.func @transform_3(%arg0: i32, %arg1: i32) -> (i32, i32) {
    %c0_i32 = arith.constant 0 : i32
    %c0_i32_0 = arith.constant 0 : i32
    return %arg0, %c0_i32 : i32, i32
  }
  func.func @transform_4(%arg0: i32, %arg1: i32) -> (i32, i32) {
    %c0_i32 = arith.constant 0 : i32
    %c0_i32_0 = arith.constant 0 : i32
    return %arg0, %c0_i32 : i32, i32
  }
}

</mosaic_0001>

<bundles_post_ra>
// kernel: custom-call
= control target key start
LH: loop header
LB: loop body
LE: loop exit
PB: predicated region body
PF: predicated region fallthrough
CT: control target
= control target key end

     0   :  { %s6_s0 = inlined_call_operand.vmem [shape: u32[3], index: 0, kind: output, shape index: {}]  }

// kernel: spkbgat_forward.8
= control target key start
LH: loop header
LB: loop body
LE: loop exit
PB: predicated region body
PF: predicated region fallthrough
CT: control target
= control target key end

     0   :  { %s814_s9 = smov 0   ;;  %s816_s10 = smov 0   ;;  %s952_s0 = inlined_call_operand.vmem [shape: bf16[16,128], index: 0, kind: input, shape index: {}]   ;;  %s953_s1 = inlined_call_operand.vmem [shape: bf16[128,512], index: 1, kind: input, shape index: {}]   ;;  %s954_s2 = inlined_call_operand.vmem [shape: f32[16,512], index: 2, kind: output, shape index: {}]  }
   0x1   :  { %s818_s11 = smov 0  }
   0x2 LB: > { %s31_s12 = sadd.s32 1, %s792_s10  ;;  %p658_p0 = scmp.ge.s32.totalorder %s796_s11, 1  ;;  %s796_s11 = sphi %s818_s11, %s12_s11   ;;  %s792_s10 = sphi %s816_s10, %s956_s10   ;;  %s788_s9 = sphi %s814_s9, %s955_s9  }
   0x3   : > { %p33_p1 = scmp.ge.s32.totalorder %s31_s12, 2  ;;  %p156_p2 = scmp.lt.s32.totalorder %s796_s11, 3 }
   0x5   : > { %s958_s12 = smov (%p33_p1, %s31_s12), 0  ;;  %p157_p3 = pnand %p658_p0, %p156_p2 }
   0x6   : > { %p194_p4 = scmp.lt.s32.totalorder (!%p157_p3), %s788_s9, 1 }
   0x7   : > { %160 = sbr.rel (%p157_p3) target bundleno = 395 (0x18b), region = 28 }
   0xc   : > { %s960_s9 = smov (!%p194_p4, %s788_s9), 1  ;;  %v722_v3 = vld [vmem:[%s953_s1 + $0xe4] ss:$16 sps:$4 sm:$0xff]   ;;  %v724_v4 = vld [vmem:[%s953_s1 + $0xec] ss:$16 sps:$4 sm:$0xff]   ;;  %v798_v29 = vmov 0  }
   0xd   : > { %s659_s13 = sshll.u32 %s960_s9, 2  ;;  %v726_v5 = vld [vmem:[%s953_s1 + $0xe0] ss:$16 sps:$4 sm:$0xff]   ;;  %v727_v6 = vld [vmem:[%s953_s1 + $0xe8] ss:$16 sps:$4 sm:$0xff]   ;;  %444 = vmatprep.subr.bf16.mxu0 %v722_v3  ;;  %485 = vmatprep.subr.bf16.mxu1 %v724_v4  ;;  %s696_s5 = sshll.u32 %s960_s9, 5 }
   0xe   : > { %s200_s16 = scalar_lea.vmem %s952_s0, %s659_s13  ;;  %445 = vmatpush1.bf16.msra.mxu0 %v726_v5  ;;  %486 = vmatpush1.bf16.msra.mxu1 %v727_v6  ;;  %v728_v7 = vld [vmem:[%s953_s1 + $0xc4] ss:$16 sps:$4 sm:$0xff]   ;;  %v730_v8 = vld [vmem:[%s953_s1 + $0xcc] ss:$16 sps:$4 sm:$0xff]   ;;  %v732_v9 = vld [vmem:[%s953_s1 + $0xc0] ss:$16 sps:$4 sm:$0xff]   ;;  %s221_s8 = scalar_lea.vmem %s954_s2, %s696_s5 }
   0xf   : > { %v232_v0 = vld [vmem:[%s200_s16] sm:$0xf]  ;;  %v733_v10 = vld [vmem:[%s953_s1 + $0xc8] ss:$16 sps:$4 sm:$0xff]   ;;  %446 = vmatprep.subr.bf16.mxu0 %v728_v7  ;;  %487 = vmatprep.subr.bf16.mxu1 %v730_v8  ;;  %v734_v11 = vld [vmem:[%s953_s1 + $0xa4] ss:$16 sps:$4 sm:$0xff]  }
  0x10   : > { %v838_v1 = vunpack.c.l.bf16 %v232_v0  ;;  %v736_v12 = vld [vmem:[%s953_s1 + $0xac] ss:$16 sps:$4 sm:$0xff]   ;;  %v738_v13 = vld [vmem:[%s953_s1 + $0xa0] ss:$16 sps:$4 sm:$0xff]   ;;  %v739_v14 = vld [vmem:[%s953_s1 + $0xa8] ss:$16 sps:$4 sm:$0xff]   ;;  %476 = vmatprep.mubr.bf16.mxu0 %v798_v29  ;;  %517 = vmatprep.mubr.bf16.mxu1 %v798_v29 }
  0x11   : > { %v740_v15 = vld [vmem:[%s953_s1 + $0x84] ss:$16 sps:$4 sm:$0xff]   ;;  %v742_v16 = vld [vmem:[%s953_s1 + $0x8c] ss:$16 sps:$4 sm:$0xff]   ;;  %v744_v17 = vld [vmem:[%s953_s1 + $0x80] ss:$16 sps:$4 sm:$0xff]  }
  0x12   : > { %v234_v2 = vmul.f32 %v838_v1, %v838_v1  ;;  %447 = vmatpush1.bf16.msra.mxu0 %v732_v9  ;;  %488 = vmatpush1.bf16.msra.mxu1 %v733_v10  ;;  %v745_v18 = vld [vmem:[%s953_s1 + $0x88] ss:$16 sps:$4 sm:$0xff]   ;;  %v746_v19 = vld [vmem:[%s953_s1 + $0x64] ss:$16 sps:$4 sm:$0xff]   ;;  %v748_v20 = vld [vmem:[%s953_s1 + $0x6c] ss:$16 sps:$4 sm:$0xff]  }
  0x13   : > { %448 = vmatprep.subr.bf16.mxu0 %v734_v11  ;;  %489 = vmatprep.subr.bf16.mxu1 %v736_v12  ;;  %v750_v21 = vld [vmem:[%s953_s1 + $0x60] ss:$16 sps:$4 sm:$0xff]   ;;  %v751_v22 = vld [vmem:[%s953_s1 + $0x68] ss:$16 sps:$4 sm:$0xff]   ;;  %v752_v23 = vld [vmem:[%s953_s1 + $0x44] ss:$16 sps:$4 sm:$0xff]  }
  0x14   : > { %235 = vadd.xlane.f32.xlu0 %v234_v2  ;;  %v754_v24 = vld [vmem:[%s953_s1 + $0x4c] ss:$16 sps:$4 sm:$0xff]   ;;  %v756_v25 = vld [vmem:[%s953_s1 + $0x40] ss:$16 sps:$4 sm:$0xff]   ;;  %v757_v26 = vld [vmem:[%s953_s1 + $0x48] ss:$16 sps:$4 sm:$0xff]  }
  0x15   : > { %v758_v27 = vld [vmem:[%s953_s1 + $0x24] ss:$16 sps:$4 sm:$0xff]   ;;  %v760_v28 = vld [vmem:[%s953_s1 + $0x2c] ss:$16 sps:$4 sm:$0xff]   ;;  %v762_v30 = vld [vmem:[%s953_s1 + $0x20] ss:$16 sps:$4 sm:$0xff]  }
  0x16   : > { %449 = vmatpush1.bf16.msra.mxu0 %v738_v13  ;;  %490 = vmatpush1.bf16.msra.mxu1 %v739_v14  ;;  %v763_v31 = vld [vmem:[%s953_s1 + $0x28] ss:$16 sps:$4 sm:$0xff]   ;;  %v764_v32 = vld [vmem:[%s953_s1 + $0x4] ss:$16 sps:$4 sm:$0xff]   ;;  %v766_v33 = vld [vmem:[%s953_s1 + $0xc] ss:$16 sps:$4 sm:$0xff]  }
  0x17   : > { %450 = vmatprep.subr.bf16.mxu0 %v740_v15  ;;  %491 = vmatprep.subr.bf16.mxu1 %v742_v16  ;;  %v768_v34 = vld [vmem:[%s953_s1] ss:$16 sps:$4 sm:$0xff]   ;;  %v769_v35 = vld [vmem:[%s953_s1 + $0x8] ss:$16 sps:$4 sm:$0xff]  }
  0x1a   : > { %451 = vmatpush1.bf16.msra.mxu0 %v744_v17  ;;  %492 = vmatpush1.bf16.msra.mxu1 %v745_v18 }
  0x1b   : > { %452 = vmatprep.subr.bf16.mxu0 %v746_v19  ;;  %493 = vmatprep.subr.bf16.mxu1 %v748_v20 }
  0x1e   : > { %453 = vmatpush1.bf16.msra.mxu0 %v750_v21  ;;  %494 = vmatpush1.bf16.msra.mxu1 %v751_v22 }
  0x1f   : > { %454 = vmatprep.subr.bf16.mxu0 %v752_v23  ;;  %495 = vmatprep.subr.bf16.mxu1 %v754_v24 }
  0x22   : > { %455 = vmatpush1.bf16.msra.mxu0 %v756_v25  ;;  %496 = vmatpush1.bf16.msra.mxu1 %v757_v26 }
  0x23   : > { %456 = vmatprep.subr.bf16.mxu0 %v758_v27  ;;  %497 = vmatprep.subr.bf16.mxu1 %v760_v28 }
  0x26   : > { %457 = vmatpush1.bf16.msra.mxu0 %v762_v30  ;;  %498 = vmatpush1.bf16.msra.mxu1 %v763_v31 }
  0x27   : > { %458 = vmatprep.subr.bf16.mxu0 %v764_v32  ;;  %499 = vmatprep.subr.bf16.mxu1 %v766_v33 }
  0x2a   : > { %459 = vmatpush1.bf16.msra.mxu0 %v768_v34  ;;  %500 = vmatpush1.bf16.msra.mxu1 %v769_v35 }
  0x9d   : > { %v236_v36 = vpop.xlane.xlu0 %235 }
  0x9e   : > { %770 = vrsqrt.f32 %v236_v36  ;;  %vm239_vm0 = vcmp.eq.f32.partialorder %v236_v36, inf  ;;  %v242_v39 = vand.u32 2147483648, %v236_v36  ;;  %vm241_vm1 = vcmp.eq.f32.partialorder %v236_v36, 0.0 }
  0xab   : > { %v771_v37 = vpop.eup %770 }
  0xac   : > { %v238_v38 = vmul.f32 %v771_v37, %v236_v36 }
  0xae   : > { %v240_v40 = vsel %vm239_vm0, %v236_v36, %v238_v38 }
  0xaf   : > { %v243_v41 = vsel %vm241_vm1, %v242_v39, %v240_v40 }
  0xb0   : > { %v244_v42 = vmax.f32 %v243_v41, 1e-12 }
  0xb2   : > { %772 = vrcp.f32 %v244_v42 }
  0xbf   : > { %v773_v43 = vpop.eup %772 }
  0xc0   : > { %v246_v44 = vmul.f32 %v773_v43, %v838_v1 }
  0xc2   : > { %v247_v45 = vpack.c.bf16 %v246_v44, %v246_v44 }
  0xc4   : > { %477 = vmatmul.mubr.bf16.vlgmr.msra.gmra.mxu0 %v247_v45  ;;  %518 = vmatmul.mubr.bf16.vlgmr.msra.gmra.mxu1 %v247_v45 }
 0x184   : > { %v478_v46 = vpop.f32.mrf.mxu0  ;;  %v519_v47 = vpop.f32.mrf.mxu1 }
 0x185   : > { %541 = vst [vmem:[%s221_s8] sm:$0xff] %v478_v46  ;;  %543 = vst [vmem:[%s221_s8 + $0x10] sm:$0xff] %v519_v47 }
 0x186   : > { %v480_v48 = vpop.f32.mrf.mxu0  ;;  %v521_v49 = vpop.f32.mrf.mxu1 }
 0x187   : > { %542 = vst [vmem:[%s221_s8 + $0x8] sm:$0xff] %v480_v48  ;;  %544 = vst [vmem:[%s221_s8 + $0x18] sm:$0xff] %v521_v49 }
 0x188   : > { %v482_v50 = vpop.f32.mrf.mxu0  ;;  %v523_v51 = vpop.f32.mrf.mxu1 }
 0x18a   : > { %v483_v52 = vpop.f32.mrf.mxu0  ;;  %v524_v53 = vpop.f32.mrf.mxu1 }
 0x18b PF: > { %s12_s11 = sadd.s32 1, %s796_s11   ;;  %s955_s9 = smov %s792_s10 }
 0x18c   : > { %p9_p5 = scmp.ge.s32.totalorder %s12_s11, 4   ;;  %s956_s10 = smov %s958_s12 }
 0x18e   :  { %11 = sbr.rel (!%p9_p5) target bundleno = 2 (0x2), region = 69 }

// kernel: spkbgat_forward.9
= control target key start
LH: loop header
LB: loop body
LE: loop exit
PB: predicated region body
PF: predicated region fallthrough
CT: control target
= control target key end

     0   :  { %v214_v1 = vmov 0   ;;  %s287_s1 = inlined_call_operand.vmem [shape: bf16[128,256], index: 1, kind: input, shape index: {}]   ;;  %s288_s0 = inlined_call_operand.vmem [shape: bf16[8,128], index: 0, kind: input, shape index: {}]   ;;  %s289_s2 = inlined_call_operand.vmem [shape: f32[8,256], index: 2, kind: output, shape index: {}]  }
   0x1   :  { %v190_v0 = vld [vmem:[%s287_s1 + $0x74] ss:$8 sps:$4 sm:$0xff]   ;;  %149 = vmatprep.mubr.bf16.mxu0 %v214_v1  ;;  %v192_v2 = vld [vmem:[%s287_s1 + $0x70] ss:$8 sps:$4 sm:$0xff]   ;;  %v193_v3 = vld [vmem:[%s287_s1 + $0x64] ss:$8 sps:$4 sm:$0xff]  }
   0x2   :  { %117 = vmatprep.subr.bf16.mxu0 %v190_v0  ;;  %v195_v4 = vld [vmem:[%s287_s1 + $0x60] ss:$8 sps:$4 sm:$0xff]   ;;  %v196_v5 = vld [vmem:[%s287_s1 + $0x54] ss:$8 sps:$4 sm:$0xff]   ;;  %v198_v6 = vld [vmem:[%s287_s1 + $0x50] ss:$8 sps:$4 sm:$0xff]  }
   0x3   :  { %118 = vmatpush1.bf16.msra.mxu0 %v192_v2  ;;  %v199_v7 = vld [vmem:[%s287_s1 + $0x44] ss:$8 sps:$4 sm:$0xff]   ;;  %v201_v8 = vld [vmem:[%s287_s1 + $0x40] ss:$8 sps:$4 sm:$0xff]   ;;  %v202_v9 = vld [vmem:[%s287_s1 + $0x34] ss:$8 sps:$4 sm:$0xff]  }
   0x4   :  { %119 = vmatprep.subr.bf16.mxu0 %v193_v3  ;;  %v204_v10 = vld [vmem:[%s287_s1 + $0x30] ss:$8 sps:$4 sm:$0xff]   ;;  %v205_v11 = vld [vmem:[%s287_s1 + $0x24] ss:$8 sps:$4 sm:$0xff]   ;;  %v207_v12 = vld [vmem:[%s287_s1 + $0x20] ss:$8 sps:$4 sm:$0xff]  }
   0x5   :  { %v208_v13 = vld [vmem:[%s287_s1 + $0x14] ss:$8 sps:$4 sm:$0xff]   ;;  %v210_v14 = vld [vmem:[%s287_s1 + $0x10] ss:$8 sps:$4 sm:$0xff]   ;;  %v211_v15 = vld [vmem:[%s287_s1 + $0x4] ss:$8 sps:$4 sm:$0xff]  }
   0x6   :  { %v213_v16 = vld [vmem:[%s287_s1] ss:$8 sps:$4 sm:$0xff]  }
   0x7   :  { %120 = vmatpush1.bf16.msra.mxu0 %v195_v4  ;;  %v18_v17 = vld [vmem:[%s288_s0] sm:$0xf] }
   0x8   :  { %121 = vmatprep.subr.bf16.mxu0 %v196_v5 }
   0xb   :  { %122 = vmatpush1.bf16.msra.mxu0 %v198_v6 }
   0xc   :  { %123 = vmatprep.subr.bf16.mxu0 %v199_v7 }
   0xf   :  { %124 = vmatpush1.bf16.msra.mxu0 %v201_v8 }
  0x10   :  { %125 = vmatprep.subr.bf16.mxu0 %v202_v9 }
  0x13   :  { %126 = vmatpush1.bf16.msra.mxu0 %v204_v10 }
  0x14   :  { %127 = vmatprep.subr.bf16.mxu0 %v205_v11 }
  0x17   :  { %128 = vmatpush1.bf16.msra.mxu0 %v207_v12 }
  0x18   :  { %129 = vmatprep.subr.bf16.mxu0 %v208_v13 }
  0x1b   :  { %130 = vmatpush1.bf16.msra.mxu0 %v210_v14 }
  0x1c   :  { %131 = vmatprep.subr.bf16.mxu0 %v211_v15 }
  0x1f   :  { %132 = vmatpush1.bf16.msra.mxu0 %v213_v16 }
  0x22   :  { %150 = vmatmul.mubr.bf16.vlgmr.msra.gmra.mxu0 %v18_v17 }
  0xe2   :  { %v151_v18 = vpop.f32.mrf.mxu0 }
  0xe3   :  { %167 = vst [vmem:[%s289_s2] sm:$0xff] %v151_v18 }
  0xe4   :  { %v153_v19 = vpop.f32.mrf.mxu0 }
  0xe5   :  { %168 = vst [vmem:[%s289_s2 + $0x8] sm:$0xff] %v153_v19 }
  0xe6   :  { %v155_v20 = vpop.f32.mrf.mxu0 }
  0xe8   :  { %v156_v21 = vpop.f32.mrf.mxu0 }

// kernel: spkbgat_forward.12
= control target key start
LH: loop header
LB: loop body
LE: loop exit
PB: predicated region body
PF: predicated region fallthrough
CT: control target
= control target key end

     0   :  { %s606_s9 = smov 0   ;;  %s608_s10 = smov 0   ;;  %s691_s0 = inlined_call_operand.vmem [shape: bf16[16,128], index: 0, kind: input, shape index: {}]   ;;  %s692_s1 = inlined_call_operand.vmem [shape: bf16[128,256], index: 1, kind: input, shape index: {}]   ;;  %s693_s2 = inlined_call_operand.vmem [shape: f32[16,256], index: 2, kind: output, shape index: {}]  }
   0x1   :  { %s610_s11 = smov 0  }
   0x2 LB: > { %s31_s12 = sadd.s32 1, %s584_s10  ;;  %p494_p0 = scmp.ge.s32.totalorder %s588_s11, 1  ;;  %s588_s11 = sphi %s610_s11, %s12_s11   ;;  %s584_s10 = sphi %s608_s10, %s695_s10   ;;  %s580_s9 = sphi %s606_s9, %s694_s9  }
   0x3   : > { %p33_p1 = scmp.ge.s32.totalorder %s31_s12, 2  ;;  %p156_p2 = scmp.lt.s32.totalorder %s588_s11, 3 }
   0x5   : > { %s697_s12 = smov (%p33_p1, %s31_s12), 0  ;;  %p157_p3 = pnand %p494_p0, %p156_p2 }
   0x6   : > { %p194_p4 = scmp.lt.s32.totalorder (!%p157_p3), %s580_s9, 1 }
   0x7   : > { %160 = sbr.rel (%p157_p3) target bundleno = 244 (0xf4), region = 28 }
   0xc   : > { %v542_v0 = vld [vmem:[%s692_s1 + $0x74] ss:$8 sps:$4 sm:$0xff]   ;;  %v544_v1 = vld [vmem:[%s692_s1 + $0x70] ss:$8 sps:$4 sm:$0xff]   ;;  %v590_v2 = vmov 0   ;;  %s699_s9 = smov (!%p194_p4, %s580_s9), 1 }
   0xd   : > { %361 = vmatprep.mubr.bf16.mxu0 %v590_v2  ;;  %329 = vmatprep.subr.bf16.mxu0 %v542_v0  ;;  %v545_v3 = vld [vmem:[%s692_s1 + $0x64] ss:$8 sps:$4 sm:$0xff]   ;;  %v547_v4 = vld [vmem:[%s692_s1 + $0x60] ss:$8 sps:$4 sm:$0xff]   ;;  %v548_v5 = vld [vmem:[%s692_s1 + $0x54] ss:$8 sps:$4 sm:$0xff]  }
   0xe   : > { %330 = vmatpush1.bf16.msra.mxu0 %v544_v1  ;;  %v550_v6 = vld [vmem:[%s692_s1 + $0x50] ss:$8 sps:$4 sm:$0xff]   ;;  %v551_v7 = vld [vmem:[%s692_s1 + $0x44] ss:$8 sps:$4 sm:$0xff]   ;;  %v553_v8 = vld [vmem:[%s692_s1 + $0x40] ss:$8 sps:$4 sm:$0xff]  }
   0xf   : > { %331 = vmatprep.subr.bf16.mxu0 %v545_v3  ;;  %v554_v9 = vld [vmem:[%s692_s1 + $0x34] ss:$8 sps:$4 sm:$0xff]   ;;  %v556_v10 = vld [vmem:[%s692_s1 + $0x30] ss:$8 sps:$4 sm:$0xff]   ;;  %v557_v11 = vld [vmem:[%s692_s1 + $0x24] ss:$8 sps:$4 sm:$0xff]  }
  0x10   : > { %v559_v12 = vld [vmem:[%s692_s1 + $0x20] ss:$8 sps:$4 sm:$0xff]   ;;  %v560_v13 = vld [vmem:[%s692_s1 + $0x14] ss:$8 sps:$4 sm:$0xff]   ;;  %v562_v14 = vld [vmem:[%s692_s1 + $0x10] ss:$8 sps:$4 sm:$0xff]  }
  0x11   : > { %v563_v15 = vld [vmem:[%s692_s1 + $0x4] ss:$8 sps:$4 sm:$0xff]   ;;  %s495_s19 = sshll.u32 %s699_s9, 2  ;;  %v565_v16 = vld [vmem:[%s692_s1] ss:$8 sps:$4 sm:$0xff]   ;;  %s516_s25 = sshll.u32 %s699_s9, 4 }
  0x12   : > { %332 = vmatpush1.bf16.msra.mxu0 %v547_v4  ;;  %s200_s24 = scalar_lea.vmem %s691_s0, %s495_s19  ;;  %s221_s28 = scalar_lea.vmem %s693_s2, %s516_s25 }
  0x13   : > { %333 = vmatprep.subr.bf16.mxu0 %v548_v5  ;;  %v230_v17 = vld [vmem:[%s200_s24] sm:$0xf] }
  0x16   : > { %334 = vmatpush1.bf16.msra.mxu0 %v550_v6 }
  0x17   : > { %335 = vmatprep.subr.bf16.mxu0 %v551_v7 }
  0x1a   : > { %336 = vmatpush1.bf16.msra.mxu0 %v553_v8 }
  0x1b   : > { %337 = vmatprep.subr.bf16.mxu0 %v554_v9 }
  0x1e   : > { %338 = vmatpush1.bf16.msra.mxu0 %v556_v10 }
  0x1f   : > { %339 = vmatprep.subr.bf16.mxu0 %v557_v11 }
  0x22   : > { %340 = vmatpush1.bf16.msra.mxu0 %v559_v12 }
  0x23   : > { %341 = vmatprep.subr.bf16.mxu0 %v560_v13 }
  0x26   : > { %342 = vmatpush1.bf16.msra.mxu0 %v562_v14 }
  0x27   : > { %343 = vmatprep.subr.bf16.mxu0 %v563_v15 }
  0x2a   : > { %344 = vmatpush1.bf16.msra.mxu0 %v565_v16 }
  0x2d   : > { %362 = vmatmul.mubr.bf16.vlgmr.msra.gmra.mxu0 %v230_v17 }
  0xed   : > { %v363_v18 = vpop.f32.mrf.mxu0 }
  0xee   : > { %379 = vst [vmem:[%s221_s28] sm:$0xff] %v363_v18 }
  0xef   : > { %v365_v19 = vpop.f32.mrf.mxu0 }
  0xf0   : > { %380 = vst [vmem:[%s221_s28 + $0x8] sm:$0xff] %v365_v19 }
  0xf1   : > { %v367_v20 = vpop.f32.mrf.mxu0 }
  0xf3   : > { %v368_v21 = vpop.f32.mrf.mxu0 }
  0xf4 PF: > { %s12_s11 = sadd.s32 1, %s588_s11   ;;  %s694_s9 = smov %s584_s10 }
  0xf5   : > { %p9_p5 = scmp.ge.s32.totalorder %s12_s11, 4   ;;  %s695_s10 = smov %s697_s12 }
  0xf7   :  { %11 = sbr.rel (!%p9_p5) target bundleno = 2 (0x2), region = 69 }

// kernel: spkbgat_forward.11
= control target key start
LH: loop header
LB: loop body
LE: loop exit
PB: predicated region body
PF: predicated region fallthrough
CT: control target
= control target key end

     0   :  { %v181_v0 = vmov 0.0   ;;  %vm182_vm0 = vmmov 0   ;;  %s228_s1 = inlined_call_operand.vmem [shape: bf16[128,128], index: 1, kind: input, shape index: {}]   ;;  %s229_s0 = inlined_call_operand.vmem [shape: bf16[8,128], index: 0, kind: input, shape index: {}]   ;;  %s230_s2 = inlined_call_operand.vmem [shape: f32[8,128], index: 2, kind: output, shape index: {}]  }
   0x1   :  { %151 = vmatprep.subr.bf16.mxu0 %v181_v0  ;;  %v173_v1 = vld [vmem:[%s228_s1 + $0x38] sm:$0xff]   ;;  %167 = vmatprep.mubr.msk.bf16.mxu0 %vm182_vm0, %v181_v0  ;;  %v174_v2 = vld [vmem:[%s228_s1 + $0x30] sm:$0xff]   ;;  %v175_v3 = vld [vmem:[%s228_s1 + $0x28] sm:$0xff]  }
   0x2   :  { %152 = vmatpush3.bf16.msra.mxu0 %v173_v1  ;;  %v176_v4 = vld [vmem:[%s228_s1 + $0x20] sm:$0xff]   ;;  %v177_v5 = vld [vmem:[%s228_s1 + $0x18] sm:$0xff]   ;;  %v178_v6 = vld [vmem:[%s228_s1 + $0x10] sm:$0xff]  }
   0x3   :  { %153 = vmatprep.subr.bf16.mxu0 %v181_v0  ;;  %v179_v7 = vld [vmem:[%s228_s1 + $0x8] sm:$0xff]   ;;  %v180_v8 = vld [vmem:[%s228_s1] sm:$0xff]  }
   0x4   :  { %v17_v9 = vld [vmem:[%s229_s0] sm:$0xf] }
   0x6   :  { %154 = vmatpush3.bf16.msra.mxu0 %v174_v2 }
   0x7   :  { %155 = vmatprep.subr.bf16.mxu0 %v181_v0 }
   0xa   :  { %156 = vmatpush3.bf16.msra.mxu0 %v175_v3 }
   0xb   :  { %157 = vmatprep.subr.bf16.mxu0 %v181_v0 }
   0xe   :  { %158 = vmatpush3.bf16.msra.mxu0 %v176_v4 }
   0xf   :  { %159 = vmatprep.subr.bf16.mxu0 %v181_v0 }
  0x12   :  { %160 = vmatpush3.bf16.msra.mxu0 %v177_v5 }
  0x13   :  { %161 = vmatprep.subr.bf16.mxu0 %v181_v0 }
  0x16   :  { %162 = vmatpush3.bf16.msra.mxu0 %v178_v6 }
  0x17   :  { %163 = vmatprep.subr.bf16.mxu0 %v181_v0 }
  0x1a   :  { %164 = vmatpush3.bf16.msra.mxu0 %v179_v7 }
  0x1b   :  { %165 = vmatprep.subr.bf16.mxu0 %v181_v0 }
  0x1e   :  { %166 = vmatpush3.bf16.msra.mxu0 %v180_v8 }
  0x21   :  { %168 = vmatmul.mubr.bf16.vlgmr.msra.gmra.mxu0 %v17_v9 }
  0xe1   :  { %v117_v10 = vpop.f32.mrf.mxu0 }
  0xe2   :  { %129 = vst [vmem:[%s230_s2] sm:$0xff] %v117_v10 }
  0xe3   :  { %v169_v11 = vpop.f32.mrf.mxu0 }
  0xe5   :  { %v120_v12 = vpop.f32.mrf.mxu0 }
  0xe7   :  { %v170_v13 = vpop.f32.mrf.mxu0 }

// kernel: spkbgat_forward.10
= control target key start
LH: loop header
LB: loop body
LE: loop exit
PB: predicated region body
PF: predicated region fallthrough
CT: control target
= control target key end

     0   :  { %s2329_s0 = inlined_call_operand.vmem [shape: s32[2], index: 0, kind: input, shape index: {}]   ;;  %s2330_s2 = inlined_call_operand.vmem [shape: s32[1,128], index: 2, kind: input, shape index: {}]   ;;  %s2331_s3 = inlined_call_operand.vmem [shape: bf16[128,256], index: 3, kind: input, shape index: {}]   ;;  %s2332_s4 = inlined_call_operand.vmem [shape: bf16[256,2], index: 4, kind: input, shape index: {}]   ;;  %s2333_s5 = inlined_call_operand.vmem [shape: f32[16,256], index: 5, kind: output, shape index: {}]   ;;  %s2334_s1 = inlined_call_operand.vmem [shape: s32[2], index: 1, kind: input, shape index: {}]  }
   0x1   :  { %s10_s20 = sshll.u32 %s2329_s0, 4  ;;  %s14_s23 = sshll.u32 %s2334_s1, 4  ;;  %s11_s20 = int_to_ptr.vmem [resolvable:$true] %s10_s20  ;;  %s15_s23 = int_to_ptr.vmem [resolvable:$true] %s14_s23 }
   0x2   :  { %s1864_s24 = scalar_lea.vmem %s11_s20, 16  ;;  %p1869_p1 = scmp.lt.s32.totalorder %s11_s20, %s11_s20 }
   0x3   :  { %p1865_p0 = scmp.ne.s32.totalorder %s11_s20, %s1864_s24  ;;  %p1870_p2 = scmp.lt.s32.totalorder %s1864_s24, %s1864_s24 }
   0x5   :  { %p1871_p3 = por %p1870_p2, %p1869_p1 }
   0x7   :  { %p1872_p4 = pnand %p1871_p3, %p1865_p0 }
   0x9   :  { %1875 = shalt.err (!%p1872_p4)  }
   0xa   :  { %s1914_s25 = smov [#allocation6]   ;;  %s1876_s26 = scalar_lea.vmem %s15_s23, 16 }
   0xb   :  { %13 = dma.vmem_to_smem %s11_s20, 16, %s1914_s25, [#allocation5] }
   0xc   :  { %p1877_p5 = scmp.ne.s32.totalorder %s15_s23, %s1876_s26  ;;  %p1881_p6 = scmp.lt.s32.totalorder %s15_s23, %s15_s23 }
   0xd   :  { %p1882_p7 = scmp.lt.s32.totalorder %s1876_s26, %s1876_s26 }
   0xf   :  { %p1883_p8 = por %p1882_p7, %p1881_p6 }
  0x11   :  { %p1884_p9 = pnand %p1883_p8, %p1877_p5 }
  0x13   :  { %1887 = shalt.err (!%p1884_p9)  }
  0x14   :  { %s1915_s0 = smov [#allocation7]  }
  0x15   :  { %17 = dma.vmem_to_smem %s15_s23, 16, %s1915_s0, [#allocation5] }
  0x16   :  { %1900 = dma.done.wait [#allocation5], 32 }
  0x17   :  { %1901 = vsyncadd [#allocation5], 4294967264 }
  0x18   :  { %19 = sfence }
  0x19   :  { %s1960_s1 = smov 0   ;;  %s1962_s27 = smov 0  }
  0x1a   :  { %s1964_s28 = smov 0  }
  0x1b LB: > { %s37_s29 = sadd.s32 1, %s1908_s27  ;;  %p1468_p10 = scmp.ge.s32.totalorder %s1912_s28, 1  ;;  %s1912_s28 = sphi %s1964_s28, %s25_s28   ;;  %s1908_s27 = sphi %s1962_s27, %s2338_s27   ;;  %s1904_s1 = sphi %s1960_s1, %s2337_s1  }
  0x1c   : > { %p39_p11 = scmp.ge.s32.totalorder %s37_s29, 2  ;;  %p235_p12 = scmp.lt.s32.totalorder %s1912_s28, 3 }
  0x1e   : > { %s2340_s29 = smov (%p39_p11, %s37_s29), 0  ;;  %p236_p13 = pnand %p1468_p10, %p235_p12 }
  0x1f   : > { %p321_p0 = scmp.lt.s32.totalorder (!%p236_p13), %s1904_s1, 1  ;;  %s280_s30 = sld [smem:[#allocation7 + %s1904_s1]] (!%p236_p13) }
  0x20   : > { %239 = sbr.rel (%p236_p13) target bundleno = 958 (0x3be), region = 32  ;;  %s299_s6 = sld [smem:[#allocation7 + %s1904_s1]] (!%p236_p13) }
  0x21   : > { %s335_s8 = sld [smem:[#allocation7 + %s1904_s1]] (!%p236_p13) }
  0x22   : > { %s279_s9 = sld [smem:[#allocation6 + %s1904_s1]] (!%p236_p13) }
  0x23   : > { %s298_s15 = sld [smem:[#allocation6 + %s1904_s1]] (!%p236_p13) }
  0x25   : > { %vm333_vm0 = vcmask 15360   ;;  %v1916_v0 = vmov 0.0   ;;  %s322_s7 = scalar_select %p321_p0, %s1904_s1, 1 }
  0x26   : > { %331 = vst [vmem:[#allocation2] sm:$0xff] %v1916_v0  ;;  %332 = vst [vmem:[#allocation2 + $0x8] sm:$0xff] %v1916_v0  ;;  %s1469_s11 = sadd.s32 4294967295, %s280_s30  ;;  %s1471_s16 = sadd.s32 4294967295, %s299_s6 }
  0x27   : > { %334 = vst.msk [vmem:[#allocation3] sm:$0xff] %vm333_vm0, %v1916_v0  ;;  %s1589_s10 = sshll.u32 %s322_s7, 4  ;;  %p282_p1 = scmp.gt.s32.totalorder %s1469_s11, 0 }
  0x28   : > { %s1990_s14 = scalar_lea.vmem %s2333_s5, %s1589_s10  ;;  %p301_p2 = scmp.gt.s32.totalorder %s1471_s16, 0 }
  0x29   : > { %s2342_s11 = smov (!%p282_p1, %s1469_s11), 0  ;;  %p1479_p5 = scmp.le.s32.totalorder %s335_s8, 0 }
  0x2a   : > { %s2344_s11 = smov (%p282_p1, %s2342_s11), 0  ;;  %s2346_s16 = smov (!%p301_p2, %s1471_s16), 0 }
  0x2b   : > { %s286_s17 = sadd.s32 %s2344_s11, %s279_s9  ;;  %s2348_s16 = smov (%p301_p2, %s2346_s16), 0 }
  0x2c   : > { %p287_p3 = scmp.lt.s32.totalorder %s286_s17, 0  ;;  %s305_s18 = sadd.s32 %s2348_s16, %s298_s15 }
  0x2d   : > { %s1473_s22 = sshll.u32 %s305_s18, 4 }
  0x2e   : > { %s2350_s17 = smov (!%p287_p3, %s286_s17), 0  ;;  %p307_p4 = scmp.lt.s32.totalorder %s1473_s22, 15 }
  0x2f   : > { %s289_s21 = scalar_lea.vmem %s2330_s2, %s2350_s17  ;;  %339 = sbr.rel (%p1479_p5) target bundleno = 785 (0x311), region = 40 }
  0x30   : > { %s2352_s22 = smov (!%p307_p4, %s1473_s22), 15 }
  0x31   : > { %s1588_s23 = sshll.u32 %s2352_s22, 3 }
  0x32   : > { %s2002_s26 = scalar_lea.vmem %s2331_s3, %s1588_s23 }
  0x34   : > { %v1766_v1 = vld [vmem:[%s2332_s4 + $0x78] sm:$0xff]   ;;  %v1768_v3 = vld [vmem:[%s2332_s4 + $0x70] sm:$0xff]   ;;  %v1770_v5 = vld [vmem:[%s2332_s4 + $0x68] sm:$0xff]   ;;  %v1917_v49 = vmov 0   ;;  %v1918_v50 = vmov 1  }
  0x35   : > { %v1767_v2 = vld [vmem:[%s2332_s4 + $0x38] sm:$0xff]   ;;  %1622 = vmatprep.subr.bf16.mxu0 %v1766_v1  ;;  %v1769_v4 = vld [vmem:[%s2332_s4 + $0x30] sm:$0xff]   ;;  %v1771_v6 = vld [vmem:[%s2332_s4 + $0x28] sm:$0xff]   ;;  %1749 = vset.pattern.permute.xlu1 %v1917_v49 }
  0x36   : > { %1623 = vmatpush3.bf16.msra.mxu0 %v1767_v2  ;;  %v1772_v7 = vld [vmem:[%s2332_s4 + $0x60] sm:$0xff]   ;;  %v1774_v9 = vld [vmem:[%s2332_s4 + $0x58] sm:$0xff]   ;;  %v1776_v11 = vld [vmem:[%s2332_s4 + $0x50] sm:$0xff]   ;;  %1284 = vmatprep.mubr.bf16.mxu1 %v1917_v49 }
  0x37   : > { %1624 = vmatprep.subr.bf16.mxu0 %v1768_v3  ;;  %v1773_v8 = vld [vmem:[%s2332_s4 + $0x20] sm:$0xff]   ;;  %v1775_v10 = vld [vmem:[%s2332_s4 + $0x18] sm:$0xff]   ;;  %v2041_v13 = vld [vmem:[%s2002_s26 + $0x8] sm:$0xff]  ;;  %1751 = vset.pattern.permute.xlu0 %v1918_v50 }
  0x38   : > { %v2038_v12 = vld [vmem:[%s2002_s26] sm:$0xff]  ;;  %v1777_v15 = vld [vmem:[%s2332_s4 + $0x10] sm:$0xff]   ;;  %v1778_v16 = vld [vmem:[%s2332_s4 + $0x48] sm:$0xff]  }
  0x39   : > { %v1481_v14 = vcombine.high %v2038_v12, %v2041_v13  ;;  %v1779_v17 = vld [vmem:[%s2332_s4 + $0x8] sm:$0xff]   ;;  %v1780_v18 = vld [vmem:[%s2332_s4 + $0x40] sm:$0xff]   ;;  %v2061_v20 = vld [vmem:[%s2002_s26 + $0x10] sm:$0xff]  ;;  %v1480_v22 = vcombine.low %v2038_v12, %v2041_v13 }
  0x3a   : > { %1625 = vmatpush3.bf16.msra.mxu0 %v1769_v4  ;;  %v1781_v19 = vld [vmem:[%s2332_s4] sm:$0xff]   ;;  %v2064_v21 = vld [vmem:[%s2002_s26 + $0x18] sm:$0xff]  ;;  %v2074_v25 = vld [vmem:[%s2002_s26 + $0x28] sm:$0xff] }
  0x3b   : > { %1626 = vmatprep.subr.bf16.mxu0 %v1770_v5  ;;  %628 = vmatprep.mubr.bf16.mxu0 %v1481_v14  ;;  %v1483_v23 = vcombine.high %v2061_v20, %v2064_v21  ;;  %v2071_v24 = vld [vmem:[%s2002_s26 + $0x20] sm:$0xff]  ;;  %v1482_v26 = vcombine.low %v2061_v20, %v2064_v21  ;;  %v2081_v28 = vld [vmem:[%s2002_s26 + $0x30] sm:$0xff]  ;;  %v2084_v29 = vld [vmem:[%s2002_s26 + $0x38] sm:$0xff] }
  0x3c   : > { %v1485_v27 = vcombine.high %v2071_v24, %v2074_v25  ;;  %v1484_v30 = vcombine.low %v2071_v24, %v2074_v25  ;;  %v1487_v31 = vcombine.high %v2081_v28, %v2084_v29  ;;  %v2091_v32 = vld [vmem:[%s2002_s26 + $0x40] sm:$0xff]  ;;  %v2094_v33 = vld [vmem:[%s2002_s26 + $0x48] sm:$0xff]  ;;  %v1486_v34 = vcombine.low %v2081_v28, %v2084_v29  ;;  %v2101_v36 = vld [vmem:[%s2002_s26 + $0x50] sm:$0xff] }
  0x3d   : > { %v1489_v35 = vcombine.high %v2091_v32, %v2094_v33  ;;  %v2104_v37 = vld [vmem:[%s2002_s26 + $0x58] sm:$0xff]  ;;  %v1488_v38 = vcombine.low %v2091_v32, %v2094_v33  ;;  %v2111_v40 = vld [vmem:[%s2002_s26 + $0x60] sm:$0xff]  ;;  %v2114_v41 = vld [vmem:[%s2002_s26 + $0x68] sm:$0xff] }
  0x3e   : > { %1627 = vmatpush3.bf16.msra.mxu0 %v1771_v6  ;;  %v1491_v39 = vcombine.high %v2101_v36, %v2104_v37  ;;  %v1490_v42 = vcombine.low %v2101_v36, %v2104_v37  ;;  %v1493_v43 = vcombine.high %v2111_v40, %v2114_v41  ;;  %v2121_v44 = vld [vmem:[%s2002_s26 + $0x70] sm:$0xff]  ;;  %v2124_v45 = vld [vmem:[%s2002_s26 + $0x78] sm:$0xff]  ;;  %v1492_v46 = vcombine.low %v2111_v40, %v2114_v41  ;;  %s1512_s26 = sshll.u32 %s1904_s1, 3 }
  0x3f   : > { %1628 = vmatprep.subr.bf16.mxu0 %v1772_v7  ;;  %v1495_v47 = vcombine.high %v2121_v44, %v2124_v45  ;;  %v1494_v48 = vcombine.low %v2121_v44, %v2124_v45 }
  0x42   : > { %1629 = vmatpush3.bf16.msra.mxu0 %v1773_v8 }
  0x43   : > { %1630 = vmatprep.subr.bf16.mxu0 %v1774_v9 }
  0x46   : > { %1631 = vmatpush3.bf16.msra.mxu0 %v1775_v10 }
  0x47   : > { %1632 = vmatprep.subr.bf16.mxu0 %v1776_v11 }
  0x4a   : > { %1633 = vmatpush3.bf16.msra.mxu0 %v1777_v15 }
  0x4b   : > { %1634 = vmatprep.subr.bf16.mxu0 %v1778_v16 }
  0x4e   : > { %1635 = vmatpush3.bf16.msra.mxu0 %v1779_v17 }
  0x4f   : > { %1636 = vmatprep.subr.bf16.mxu0 %v1780_v18 }
  0x52   : > { %1637 = vmatpush3.bf16.msra.mxu0 %v1781_v19 }
  0x55   : > { %629 = vmatmul.mubr.bf16.vlgmr.msra.gmra.mxu0 %v1480_v22 }
  0x56   : > { %636 = vmatprep.mubr.bf16.mxu0 %v1483_v23 }
  0x5d   : > { %637 = vmatmul.mubr.bf16.gmra.mxu0 %v1482_v26 }
  0x5e   : > { %644 = vmatprep.mubr.bf16.mxu0 %v1485_v27 }
  0x65   : > { %645 = vmatmul.mubr.bf16.gmra.mxu0 %v1484_v30 }
  0x66   : > { %652 = vmatprep.mubr.bf16.mxu0 %v1487_v31 }
  0x6d   : > { %653 = vmatmul.mubr.bf16.gmra.mxu0 %v1486_v34 }
  0x6e   : > { %660 = vmatprep.mubr.bf16.mxu0 %v1489_v35 }
  0x75   : > { %661 = vmatmul.mubr.bf16.gmra.mxu0 %v1488_v38 }
  0x76   : > { %668 = vmatprep.mubr.bf16.mxu0 %v1491_v39 }
  0x7d   : > { %669 = vmatmul.mubr.bf16.gmra.mxu0 %v1490_v42 }
  0x7e   : > { %676 = vmatprep.mubr.bf16.mxu0 %v1493_v43 }
  0x85   : > { %677 = vmatmul.mubr.bf16.gmra.mxu0 %v1492_v46 }
  0x86   : > { %684 = vmatprep.mubr.bf16.mxu0 %v1495_v47 }
  0x8d   : > { %685 = vmatmul.mubr.bf16.gmra.mxu0 %v1494_v48 }
 0x115   : > { %v1638_v51 = vpop.f32.mrf.mxu0 }
 0x117   : > { %v1639_v52 = vpop.f32.mrf.mxu0 }
 0x118   : > { %v2135_v53 = vadd.f32 %v1639_v52, %v1638_v51 }
 0x119   : > { %v1641_v54 = vpop.f32.mrf.mxu0 }
 0x11a   : > { %vm693_vm14 = vcmp.gt.f32.partialorder %v2135_v53, 0.0 }
 0x11b   : > { %v1642_v55 = vpop.f32.mrf.mxu0 }
 0x11c   : > { %v2137_v56 = vadd.f32 %v1642_v55, %v1641_v54 }
 0x11d   : > { %v1644_v57 = vpop.f32.mrf.mxu0 }
 0x11f   : > { %v1645_v58 = vpop.f32.mrf.mxu0 }
 0x120   : > { %v2139_v59 = vadd.f32 %v1645_v58, %v1644_v57 }
 0x121   : > { %v1647_v60 = vpop.f32.mrf.mxu0 }
 0x122   : > { %vm695_vm15 = vcmp.gt.f32.partialorder %v2139_v59, 0.0 }
 0x123   : > { %v1648_v61 = vpop.f32.mrf.mxu0 }
 0x124   : > { %v2141_v62 = vadd.f32 %v1648_v61, %v1647_v60 }
 0x125   : > { %v1650_v63 = vpop.f32.mrf.mxu0 }
 0x126   : > { %vm696_vm13 = vcmp.gt.f32.partialorder %v2141_v62, 0.0 }
 0x127   : > { %v1651_v0 = vpop.f32.mrf.mxu0 }
 0x128   : > { %v1652_v46 = vadd.f32 %v1651_v0, %v1650_v63 }
 0x129   : > { %v2143_v1 = vpop.f32.mrf.mxu0 }
 0x12a   : > { %v713_v60 = vmul.f32 0.2, %v1652_v46  ;;  %vm697_vm6 = vcmp.gt.f32.partialorder %v1652_v46, 0.0 }
 0x12b   : > { %v2145_v2 = vpop.f32.mrf.mxu0 }
 0x12d   : > { %v1656_v3 = vpop.f32.mrf.mxu0 }
 0x12f   : > { %v1657_v4 = vpop.f32.mrf.mxu0 }
 0x130   : > { %v1658_v5 = vadd.f32 %v1657_v4, %v1656_v3 }
 0x131   : > { %v1659_v6 = vpop.f32.mrf.mxu0 }
 0x132   : > { %vm699_vm1 = vcmp.gt.f32.partialorder %v1658_v5, 0.0  ;;  %v715_v7 = vmul.f32 0.2, %v1658_v5 }
 0x133   : > { %v1660_v8 = vpop.f32.mrf.mxu0 }
 0x134   : > { %v731_v9 = vsel %vm699_vm1, %v1658_v5, %v715_v7  ;;  %v1661_v10 = vadd.f32 %v1660_v8, %v1659_v6  ;;  %v729_v8 = vsel %vm697_vm6, %v1652_v46, %v713_v60  ;;  %vm694_vm1 = vcmp.gt.f32.partialorder %v2137_v56, 0.0 }
 0x135   : > { %v747_v11 = vmax.f32 %v731_v9, -80.0  ;;  %v1662_v14 = vpop.f32.mrf.mxu0 }
 0x136   : > { %vm700_vm2 = vcmp.gt.f32.partialorder %v1661_v10, 0.0  ;;  %v716_v15 = vmul.f32 0.2, %v1661_v10 }
 0x137   : > { %v763_v16 = vsub.f32 0.0, %v747_v11  ;;  %v1663_v17 = vpop.f32.mrf.mxu0 }
 0x138   : > { %v732_v18 = vsel %vm700_vm2, %v1661_v10, %v716_v15  ;;  %v1664_v19 = vadd.f32 %v1663_v17, %v1662_v14 }
 0x139   : > { %v785_v22 = vmul.f32 1.442695, %v763_v16  ;;  %v748_v23 = vmax.f32 %v732_v18, -80.0  ;;  %v1665_v26 = vpop.f32.mrf.mxu0 }
 0x13a   : > { %vm701_vm3 = vcmp.gt.f32.partialorder %v1664_v19, 0.0  ;;  %v717_v27 = vmul.f32 0.2, %v1664_v19 }
 0x13b   : > { %1822 = vpow2.f32 %v785_v22  ;;  %v764_v30 = vsub.f32 0.0, %v748_v23  ;;  %v1666_v31 = vpop.f32.mrf.mxu0 }
 0x13c   : > { %v733_v34 = vsel %vm701_vm3, %v1664_v19, %v717_v27  ;;  %v1667_v35 = vadd.f32 %v1666_v31, %v1665_v26  ;;  %v745_v19 = vmax.f32 %v729_v8, -80.0 }
 0x13d   : > { %v787_v38 = vmul.f32 1.442695, %v764_v30  ;;  %v749_v39 = vmax.f32 %v733_v34, -80.0  ;;  %v1668_v42 = vpop.f32.mrf.mxu0 }
 0x13e   : > { %vm702_vm4 = vcmp.gt.f32.partialorder %v1667_v35, 0.0  ;;  %v718_v43 = vmul.f32 0.2, %v1667_v35 }
 0x13f   : > { %1824 = vpow2.f32 %v787_v38  ;;  %v765_v47 = vsub.f32 0.0, %v749_v39  ;;  %v1669_v48 = vpop.f32.mrf.mxu0 }
 0x140   : > { %v734_v51 = vsel %vm702_vm4, %v1667_v35, %v718_v43  ;;  %v1670_v52 = vadd.f32 %v1669_v48, %v1668_v42  ;;  %v761_v42 = vsub.f32 0.0, %v745_v19  ;;  %v1655_v19 = vadd.f32 %v2145_v2, %v2143_v1 }
 0x141   : > { %v789_v54 = vmul.f32 1.442695, %v765_v47  ;;  %v750_v55 = vmax.f32 %v734_v51, -80.0  ;;  %v1671_v57 = vpop.f32.mrf.mxu0  ;;  %vm1921_vm4 = vmmov 0  }
 0x142   : > { %vm703_vm5 = vcmp.gt.f32.partialorder %v1670_v52, 0.0  ;;  %v719_v58 = vmul.f32 0.2, %v1670_v52  ;;  %vm698_vm12 = vcmp.gt.f32.partialorder %v1655_v19, 0.0 }
 0x143   : > { %1826 = vpow2.f32 %v789_v54  ;;  %v766_v61 = vsub.f32 0.0, %v750_v55  ;;  %v1672_v3 = vpop.f32.mrf.mxu0 }
 0x144   : > { %v735_v4 = vsel %vm703_vm5, %v1670_v52, %v719_v58  ;;  %v1673_v5 = vadd.f32 %v1672_v3, %v1671_v57  ;;  %v781_v58 = vmul.f32 1.442695, %v761_v42 }
 0x145   : > { %v791_v6 = vmul.f32 1.442695, %v766_v61  ;;  %v751_v7 = vmax.f32 %v735_v4, -80.0  ;;  %v1674_v63 = vpop.f32.mrf.mxu0 }
 0x146   : > { %vm704_vm7 = vcmp.gt.f32.partialorder %v1673_v5, 0.0  ;;  %v720_v0 = vmul.f32 0.2, %v1673_v5 }
 0x147   : > { %1828 = vpow2.f32 %v791_v6  ;;  %v767_v9 = vsub.f32 0.0, %v751_v7  ;;  %v1675_v10 = vpop.f32.mrf.mxu0 }
 0x148   : > { %v2147_v11 = vpop.eup %1822  ;;  %v736_v14 = vsel %vm704_vm7, %v1673_v5, %v720_v0  ;;  %v1676_v15 = vadd.f32 %v1675_v10, %v1674_v63 }
 0x149   : > { %v793_v16 = vmul.f32 1.442695, %v767_v9  ;;  %v752_v17 = vmax.f32 %v736_v14, -80.0  ;;  %850 = vperm.xlu1 %1749, %v2147_v11   ;;  %v1677_v18 = vpop.f32.mrf.mxu0 }
 0x14a   : > { %vm705_vm8 = vcmp.gt.f32.partialorder %v1676_v15, 0.0  ;;  %v721_v22 = vmul.f32 0.2, %v1676_v15 }
 0x14b   : > { %v768_v23 = vsub.f32 0.0, %v752_v17  ;;  %v1678_v26 = vpop.f32.mrf.mxu0  ;;  %1830 = vpow2.f32 %v793_v16 }
 0x14c   : > { %v2150_v27 = vpop.eup %1824  ;;  %v737_v30 = vsel %vm705_vm8, %v1676_v15, %v721_v22  ;;  %v1679_v31 = vadd.f32 %v1678_v26, %v1677_v18 }
 0x14d   : > { %v795_v34 = vmul.f32 1.442695, %v768_v23  ;;  %v753_v35 = vmax.f32 %v737_v30, -80.0  ;;  %1750 = vset.pattern.permute.xlu1 %v1918_v50  ;;  %v1680_v38 = vpop.f32.mrf.mxu0  ;;  %v1301_v39 = vpack.c.bf16 %v2150_v27, %v2147_v11  ;;  %v714_v30 = vmul.f32 0.2, %v1655_v19 }
 0x14e   : > { %vm706_vm9 = vcmp.gt.f32.partialorder %v1679_v31, 0.0  ;;  %v722_v43 = vmul.f32 0.2, %v1679_v31  ;;  %1019 = vperm.xlu1 %1750, %v2147_v11   ;;  %v1154_v11 = vld [vmem:[#allocation2] sm:$0xff] }
 0x14f   : > { %1832 = vpow2.f32 %v795_v34  ;;  %v769_v46 = vsub.f32 0.0, %v753_v35  ;;  %v1681_v47 = vpop.f32.mrf.mxu0  ;;  %v730_v2 = vsel %vm698_vm12, %v1655_v19, %v714_v30  ;;  %v712_v34 = vmul.f32 0.2, %v2141_v62 }
 0x150   : > { %v2156_v48 = vpop.eup %1826  ;;  %v738_v51 = vsel %vm706_vm9, %v1679_v31, %v722_v43  ;;  %v1682_v52 = vadd.f32 %v1681_v47, %v1680_v38  ;;  %v746_v38 = vmax.f32 %v730_v2, -80.0  ;;  %v709_v43 = vmul.f32 0.2, %v2135_v53 }
 0x151   : > { %v797_v54 = vmul.f32 1.442695, %v769_v46  ;;  %v754_v55 = vmax.f32 %v738_v51, -80.0  ;;  %1027 = vperm.xlu0 %1751, %v2156_v48   ;;  %v1683_v57 = vpop.f32.mrf.mxu0  ;;  %v728_v46 = vsel %vm696_vm13, %v2141_v62, %v712_v34  ;;  %v711_v47 = vmul.f32 0.2, %v2139_v59 }
 0x152   : > { %vm707_vm10 = vcmp.gt.f32.partialorder %v1682_v52, 0.0  ;;  %v723_v60 = vmul.f32 0.2, %v1682_v52  ;;  %1023 = vperm.xlu1 %1750, %v2150_v27   ;;  %v762_v51 = vsub.f32 0.0, %v746_v38  ;;  %v368_v30 = vunpack.c.l.bf16 %v2081_v28 }
 0x153   : > { %1834 = vpow2.f32 %v797_v54  ;;  %v770_v61 = vsub.f32 0.0, %v754_v55  ;;  %v1684_v3 = vpop.f32.mrf.mxu0  ;;  %v744_v54 = vmax.f32 %v728_v46, -80.0  ;;  %v725_v55 = vsel %vm693_vm14, %v2135_v53, %v709_v43 }
 0x154   : > { %v2160_v4 = vpop.eup %1828  ;;  %v739_v5 = vsel %vm707_vm10, %v1682_v52, %v723_v60  ;;  %v1685_v6 = vadd.f32 %v1684_v3, %v1683_v57  ;;  %1836 = vpow2.f32 %v781_v58  ;;  %v727_v57 = vsel %vm695_vm15, %v2139_v59, %v711_v47 }
 0x155   : > { %v799_v7 = vmul.f32 1.442695, %v770_v61  ;;  %v755_v63 = vmax.f32 %v739_v5, -80.0  ;;  %v1302_v0 = vpack.c.bf16 %v2160_v4, %v2156_v48  ;;  %v783_v58 = vmul.f32 1.442695, %v762_v51 }
 0x156   : > { %vm708_vm11 = vcmp.gt.f32.partialorder %v1685_v6, 0.0  ;;  %v724_v8 = vmul.f32 0.2, %v1685_v6  ;;  %1752 = vset.pattern.permute.xlu1 %v1917_v49  ;;  %v741_v60 = vmax.f32 %v725_v55, -80.0  ;;  %v760_v61 = vsub.f32 0.0, %v744_v54 }
 0x157   : > { %1838 = vpow2.f32 %v799_v7  ;;  %v771_v9 = vsub.f32 0.0, %v755_v63  ;;  %865 = vperm.xlu1 %1752, %v2160_v4   ;;  %v743_v3 = vmax.f32 %v727_v57, -80.0  ;;  %v710_v7 = vmul.f32 0.2, %v2137_v56 }
 0x158   : > { %v740_v10 = vsel %vm708_vm11, %v1685_v6, %v724_v8  ;;  %v2166_v16 = vpop.eup %1830  ;;  %v757_v53 = vsub.f32 0.0, %v741_v60  ;;  %v779_v5 = vmul.f32 1.442695, %v760_v61  ;;  %v369_v38 = vunpack.c.h.bf16 %v2081_v28 }
 0x159   : > { %v801_v14 = vmul.f32 1.442695, %v771_v9  ;;  %v756_v15 = vmax.f32 %v740_v10, -80.0  ;;  %v759_v59 = vsub.f32 0.0, %v743_v3  ;;  %v726_v8 = vsel %vm694_vm1, %v2137_v56, %v710_v7 }
 0x15a   : > { %v773_v6 = vmul.f32 1.442695, %v757_v53  ;;  %v742_v9 = vmax.f32 %v726_v8, -80.0  ;;  %v373_v47 = vunpack.c.h.bf16 %v2091_v32  ;;  %v374_v61 = vunpack.c.l.bf16 %v2094_v33 }
 0x15b   : > { %1840 = vpow2.f32 %v801_v14  ;;  %v772_v17 = vsub.f32 0.0, %v756_v15  ;;  %1753 = vset.pattern.permute.xlu1 %v1918_v50  ;;  %v777_v63 = vmul.f32 1.442695, %v759_v59  ;;  %v376_v8 = vunpack.c.l.bf16 %v2101_v36 }
 0x15c   : > { %v2169_v18 = vpop.eup %1832  ;;  %1031 = vperm.xlu1 %1753, %v2160_v4   ;;  %v758_v14 = vsub.f32 0.0, %v742_v9 }
 0x15d   : > { %v803_v22 = vmul.f32 1.442695, %v772_v17  ;;  %v1303_v23 = vpack.c.bf16 %v2169_v18, %v2166_v16 }
 0x15e   : > { %v775_v56 = vmul.f32 1.442695, %v758_v14 }
 0x15f   : > { %1842 = vpow2.f32 %v803_v22 }
 0x160   : > { %v2176_v26 = vpop.eup %1834  ;;  %1754 = vset.pattern.permute.xlu1 %v1917_v49  ;;  %1844 = vpow2.f32 %v783_v58 }
 0x161   : > { %1043 = vperm.xlu0 %1751, %v2176_v26   ;;  %870 = vperm.xlu1 %1754, %v2166_v16   ;;  %v2181_v31 = vpop.eup %1836  ;;  %1846 = vpow2.f32 %v779_v5  ;;  %v375_v5 = vunpack.c.h.bf16 %v2094_v33 }
 0x162   : > { %1848 = vpow2.f32 %v773_v6 }
 0x163   : > { %1850 = vpow2.f32 %v777_v63  ;;  %v381_v63 = vunpack.c.h.bf16 %v2111_v40 }
 0x164   : > { %v2183_v1 = vpop.eup %1838  ;;  %1852 = vpow2.f32 %v775_v56 }
 0x165   : > { %1755 = vset.pattern.permute.xlu1 %v1918_v50  ;;  %1011 = vperm.xlu0 %1751, %v2181_v31   ;;  %v1304_v35 = vpack.c.bf16 %v2183_v1, %v2176_v26 }
 0x166   : > { %1035 = vperm.xlu1 %1755, %v2166_v16  }
 0x168   : > { %v2192_v42 = vpop.eup %1840 }
 0x169   : > { %1759 = vset.pattern.permute.xlu0 %v1917_v49 }
 0x16a   : > { %1039 = vperm.xlu1 %1755, %v2169_v18   ;;  %890 = vperm.xlu0 %1759, %v2192_v42  }
 0x16c   : > { %v2202_v52 = vpop.eup %1842 }
 0x16d   : > { %v1305_v62 = vpack.c.bf16 %v2202_v52, %v2192_v42  ;;  %v2222_v10 = vpop.eup %1844 }
 0x16e   : > { %1756 = vset.pattern.permute.xlu1 %v1917_v49  ;;  %895 = vperm.xlu0 %1759, %v2202_v52   ;;  %v2227_v15 = vpop.eup %1846 }
 0x16f   : > { %885 = vperm.xlu1 %1756, %v2183_v1   ;;  %v2232_v17 = vpop.eup %1848 }
 0x170   : > { %v2234_v19 = vpop.eup %1850 }
 0x171   : > { %v2244_v22 = vpop.eup %1852  ;;  %v1299_v16 = vpack.c.bf16 %v2227_v15, %v2234_v19 }
 0x172   : > { %880 = vperm.xlu0 %1759, %v2176_v26   ;;  %v1300_v26 = vpack.c.bf16 %v2222_v10, %v2181_v31 }
 0x173   : > { %1757 = vset.pattern.permute.xlu1 %v1918_v50 }
 0x174   : > { %1047 = vperm.xlu1 %1757, %v2183_v1   ;;  %v1297_v1 = vld [vmem:[#allocation3] sm:$0xff] }
 0x176   : > { %875 = vperm.xlu0 %1759, %v2169_v18  }
 0x178   : > { %1051 = vperm.xlu1 %1757, %v2192_v42  }
 0x17a   : > { %860 = vperm.xlu0 %1759, %v2156_v48   ;;  %v1298_v48 = vpack.c.bf16 %v2244_v22, %v2232_v17 }
 0x17c   : > { %1055 = vperm.xlu1 %1757, %v2202_v52  }
 0x17e   : > { %855 = vperm.xlu0 %1759, %v2150_v27  }
 0x180   : > { %1758 = vset.pattern.permute.xlu1 %v1917_v49 }
 0x181   : > { %845 = vperm.xlu1 %1758, %v2222_v10  }
 0x182   : > { %840 = vperm.xlu0 %1759, %v2181_v31  }
 0x185   : > { %1760 = vset.pattern.permute.xlu1 %v1918_v50 }
 0x186   : > { %1015 = vperm.xlu1 %1760, %v2222_v10   ;;  %835 = vperm.xlu0 %1759, %v2227_v15  }
 0x18a   : > { %1761 = vset.pattern.permute.xlu1 %v1917_v49  ;;  %820 = vperm.xlu0 %1759, %v2232_v17  }
 0x18b   : > { %830 = vperm.xlu1 %1761, %v2234_v19  }
 0x18e   : > { %1764 = vset.pattern.permute.xlu0 %v1918_v50 }
 0x18f   : > { %1762 = vset.pattern.permute.xlu1 %v1918_v50  ;;  %995 = vperm.xlu0 %1764, %v2232_v17  }
 0x190   : > { %1003 = vperm.xlu1 %1762, %v2234_v19  }
 0x194   : > { %1007 = vperm.xlu1 %1762, %v2227_v15  }
 0x198   : > { %1763 = vset.pattern.permute.xlu1 %v1917_v49  ;;  %v371_v49 = vunpack.c.h.bf16 %v2084_v29 }
 0x199   : > { %825 = vperm.xlu1 %1763, %v2244_v22  }
 0x19d   : > { %1765 = vset.pattern.permute.xlu1 %v1918_v50 }
 0x19e   : > { %999 = vperm.xlu1 %1765, %v2244_v22  }
 0x1c4   : > { %v851_v2 = vpop.permute.xlu1 %850 }
 0x1c5   : > { %v904_v34 = vmul.f32 %v851_v2, %v368_v30 }
 0x1c7   : > { %v1596_v43 = vpack.c.bf16 %v904_v34, %v904_v34  ;;  %v365_v34 = vunpack.c.h.bf16 %v2071_v24 }
 0x1c9   : > { %984 = vst [vmem:[#allocation4 + $0x30] sm:$0xf] %v1596_v43  ;;  %v1020_v46 = vpop.permute.xlu1 %1019 }
 0x1ca   : > { %v1064_v51 = vmul.f32 %v1020_v46, %v369_v38  ;;  %v377_v38 = vunpack.c.h.bf16 %v2101_v36 }
 0x1cc   : > { %v1612_v54 = vpack.c.bf16 %v1064_v51, %v1064_v51  ;;  %v1028_v55 = vpop.permute.xlu0 %1027 }
 0x1cd   : > { %v1066_v57 = vmul.f32 %v1028_v55, %v373_v47  ;;  %v1024_v50 = vpop.permute.xlu1 %1023  ;;  %v384_v55 = vunpack.c.l.bf16 %v2121_v44 }
 0x1ce   : > { %1144 = vst [vmem:[#allocation4 + $0x34] sm:$0xf] %v1612_v54  ;;  %v1065_v58 = vmul.f32 %v1024_v50, %v371_v49  ;;  %v379_v54 = vunpack.c.h.bf16 %v2104_v37 }
 0x1cf   : > { %v1614_v60 = vpack.c.bf16 %v1066_v57, %v1066_v57 }
 0x1d0   : > { %v1613_v3 = vpack.c.bf16 %v1065_v58, %v1065_v58 }
 0x1d1   : > { %1146 = vst [vmem:[#allocation4 + $0x44] sm:$0xf] %v1614_v60 }
 0x1d2   : > { %1145 = vst [vmem:[#allocation4 + $0x3c] sm:$0xf] %v1613_v3  ;;  %v866_v28 = vpop.permute.xlu1 %865  ;;  %v386_v3 = vunpack.c.l.bf16 %v2124_v45 }
 0x1d3   : > { %v907_v53 = vmul.f32 %v866_v28, %v374_v61  ;;  %v382_v28 = vunpack.c.l.bf16 %v2114_v41 }
 0x1d5   : > { %v1599_v59 = vpack.c.bf16 %v907_v53, %v907_v53 }
 0x1d7   : > { %987 = vst [vmem:[#allocation4 + $0x48] sm:$0xf] %v1599_v59  ;;  %v1032_v6 = vpop.permute.xlu1 %1031 }
 0x1d8   : > { %v1067_v7 = vmul.f32 %v1032_v6, %v375_v5 }
 0x1da   : > { %v1615_v9 = vpack.c.bf16 %v1067_v7, %v1067_v7 }
 0x1dc   : > { %1147 = vst [vmem:[#allocation4 + $0x4c] sm:$0xf] %v1615_v9  ;;  %v1044_v14 = vpop.permute.xlu0 %1043  ;;  %v871_v56 = vpop.permute.xlu1 %870 }
 0x1dd   : > { %v1070_v30 = vmul.f32 %v1044_v14, %v381_v63  ;;  %v908_v2 = vmul.f32 %v871_v56, %v376_v8  ;;  %v380_v63 = vunpack.c.l.bf16 %v2111_v40  ;;  %v383_v14 = vunpack.c.h.bf16 %v2114_v41 }
 0x1df   : > { %v1618_v43 = vpack.c.bf16 %v1070_v30, %v1070_v30  ;;  %v1600_v33 = vpack.c.bf16 %v908_v2, %v908_v2 }
 0x1e0   : > { %v1012_v46 = vpop.permute.xlu0 %1011 }
 0x1e1   : > { %1150 = vst [vmem:[#allocation4 + $0x64] sm:$0xf] %v1618_v43  ;;  %988 = vst [vmem:[#allocation4 + $0x50] sm:$0xf] %v1600_v33  ;;  %v1062_v47 = vmul.f32 %v1012_v46, %v365_v34  ;;  %v1036_v51 = vpop.permute.xlu1 %1035  ;;  %v378_v34 = vunpack.c.l.bf16 %v2104_v37  ;;  %v385_v46 = vunpack.c.h.bf16 %v2121_v44 }
 0x1e2   : > { %v1068_v49 = vmul.f32 %v1036_v51, %v377_v38 }
 0x1e3   : > { %v1610_v57 = vpack.c.bf16 %v1062_v47, %v1062_v47 }
 0x1e4   : > { %v1616_v50 = vpack.c.bf16 %v1068_v49, %v1068_v49  ;;  %v372_v49 = vunpack.c.l.bf16 %v2091_v32 }
 0x1e5   : > { %1142 = vst [vmem:[#allocation4 + $0x24] sm:$0xf] %v1610_v57  ;;  %v1040_v58 = vpop.permute.xlu1 %1039  ;;  %v891_v60 = vpop.permute.xlu0 %890  ;;  %v387_v57 = vunpack.c.h.bf16 %v2124_v45 }
 0x1e6   : > { %1148 = vst [vmem:[#allocation4 + $0x54] sm:$0xf] %v1616_v50  ;;  %v1069_v61 = vmul.f32 %v1040_v58, %v379_v54  ;;  %v912_v36 = vmul.f32 %v891_v60, %v384_v55  ;;  %v370_v60 = vunpack.c.l.bf16 %v2084_v29  ;;  %v367_v29 = vunpack.c.h.bf16 %v2074_v25 }
 0x1e8   : > { %v1617_v53 = vpack.c.bf16 %v1069_v61, %v1069_v61  ;;  %v1604_v5 = vpack.c.bf16 %v912_v36, %v912_v36 }
 0x1e9   : > { %v896_v59 = vpop.permute.xlu0 %895 }
 0x1ea   : > { %1149 = vst [vmem:[#allocation4 + $0x5c] sm:$0xf] %v1617_v53  ;;  %992 = vst [vmem:[#allocation4 + $0x70] sm:$0xf] %v1604_v5  ;;  %v913_v6 = vmul.f32 %v896_v59, %v386_v3  ;;  %v886_v7 = vpop.permute.xlu1 %885  ;;  %v364_v5 = vunpack.c.l.bf16 %v2071_v24  ;;  %v356_v24 = vunpack.c.l.bf16 %v2038_v12 }
 0x1eb   : > { %v911_v8 = vmul.f32 %v886_v7, %v382_v28  ;;  %v366_v28 = vunpack.c.l.bf16 %v2074_v25 }
 0x1ec   : > { %v1605_v9 = vpack.c.bf16 %v913_v6, %v913_v6 }
 0x1ed   : > { %v1603_v56 = vpack.c.bf16 %v911_v8, %v911_v8  ;;  %v881_v30 = vpop.permute.xlu0 %880  ;;  %v362_v8 = vunpack.c.l.bf16 %v2064_v21 }
 0x1ee   : > { %993 = vst [vmem:[#allocation4 + $0x78] sm:$0xf] %v1605_v9  ;;  %v910_v2 = vmul.f32 %v881_v30, %v380_v63 }
 0x1ef   : > { %991 = vst [vmem:[#allocation4 + $0x68] sm:$0xf] %v1603_v56  ;;  %v1048_v38 = vpop.permute.xlu1 %1047 }
 0x1f0   : > { %v1602_v43 = vpack.c.bf16 %v910_v2, %v910_v2  ;;  %v1071_v33 = vmul.f32 %v1048_v38, %v383_v14 }
 0x1f1   : > { %v876_v47 = vpop.permute.xlu0 %875 }
 0x1f2   : > { %990 = vst [vmem:[#allocation4 + $0x60] sm:$0xf] %v1602_v43  ;;  %v1619_v51 = vpack.c.bf16 %v1071_v33, %v1071_v33  ;;  %v909_v40 = vmul.f32 %v876_v47, %v378_v34  ;;  %v360_v43 = vunpack.c.l.bf16 %v2061_v20 }
 0x1f3   : > { %v1052_v54 = vpop.permute.xlu1 %1051 }
 0x1f4   : > { %1151 = vst [vmem:[#allocation4 + $0x6c] sm:$0xf] %v1619_v51  ;;  %v1601_v41 = vpack.c.bf16 %v909_v40, %v909_v40  ;;  %v1072_v55 = vmul.f32 %v1052_v54, %v385_v46 }
 0x1f5   : > { %v861_v50 = vpop.permute.xlu0 %860  ;;  %v1800_v33 = vld [vmem:[#allocation4 + $0x70] ss:$8 sps:$4 sm:$0xff]  }
 0x1f6   : > { %989 = vst [vmem:[#allocation4 + $0x58] sm:$0xf] %v1601_v41  ;;  %v1620_v37 = vpack.c.bf16 %v1072_v55, %v1072_v55  ;;  %v906_v58 = vmul.f32 %v861_v50, %v372_v49  ;;  %v357_v41 = vunpack.c.h.bf16 %v2038_v12  ;;  %v361_v50 = vunpack.c.h.bf16 %v2061_v20 }
 0x1f7   : > { %v1056_v61 = vpop.permute.xlu1 %1055 }
 0x1f8   : > { %1152 = vst [vmem:[#allocation4 + $0x74] sm:$0xf] %v1620_v37  ;;  %v1598_v44 = vpack.c.bf16 %v906_v58, %v906_v58  ;;  %v1073_v36 = vmul.f32 %v1056_v61, %v387_v57  ;;  %v1804_v58 = vld [vmem:[#allocation4 + $0x54] ss:$8 sps:$4 sm:$0xff]  }
 0x1f9   : > { %v856_v3 = vpop.permute.xlu0 %855  ;;  %v1803_v57 = vld [vmem:[#allocation4 + $0x60] ss:$8 sps:$4 sm:$0xff]  }
 0x1fa   : > { %986 = vst [vmem:[#allocation4 + $0x40] sm:$0xf] %v1598_v44  ;;  %v1621_v32 = vpack.c.bf16 %v1073_v36, %v1073_v36  ;;  %v905_v53 = vmul.f32 %v856_v3, %v370_v60 }
 0x1fb   : > { %v1801_v25 = vld [vmem:[#allocation4 + $0x64] ss:$8 sps:$4 sm:$0xff]  }
 0x1fc   : > { %1153 = vst [vmem:[#allocation4 + $0x7c] sm:$0xf] %v1621_v32  ;;  %v1597_v45 = vpack.c.bf16 %v905_v53, %v905_v53  ;;  %v846_v59 = vpop.permute.xlu1 %845  ;;  %v1807_v53 = vld [vmem:[#allocation4 + $0x44] ss:$8 sps:$4 sm:$0xff]  }
 0x1fd   : > { %v903_v6 = vmul.f32 %v846_v59, %v366_v28  ;;  %v841_v7 = vpop.permute.xlu0 %840  ;;  %v1806_v3 = vld [vmem:[#allocation4 + $0x50] ss:$8 sps:$4 sm:$0xff]   ;;  %v363_v28 = vunpack.c.h.bf16 %v2064_v21  ;;  %v1810_v59 = vld [vmem:[#allocation4 + $0x34] ss:$8 sps:$4 sm:$0xff]  }
 0x1fe   : > { %985 = vst [vmem:[#allocation4 + $0x38] sm:$0xf] %v1597_v45  ;;  %v902_v63 = vmul.f32 %v841_v7, %v364_v5 }
 0x1ff   : > { %v1595_v9 = vpack.c.bf16 %v903_v6, %v903_v6  ;;  %v358_v6 = vunpack.c.l.bf16 %v2041_v13 }
 0x200   : > { %v1594_v14 = vpack.c.bf16 %v902_v63, %v902_v63 }
 0x201   : > { %983 = vst [vmem:[#allocation4 + $0x28] sm:$0xf] %v1595_v9  ;;  %v1016_v56 = vpop.permute.xlu1 %1015  ;;  %v836_v30 = vpop.permute.xlu0 %835  ;;  %v1809_v45 = vld [vmem:[#allocation4 + $0x40] ss:$8 sps:$4 sm:$0xff]   ;;  %v359_v9 = vunpack.c.h.bf16 %v2041_v13 }
 0x202   : > { %982 = vst [vmem:[#allocation4 + $0x20] sm:$0xf] %v1594_v14  ;;  %v1063_v2 = vmul.f32 %v1016_v56, %v367_v29  ;;  %v901_v34 = vmul.f32 %v836_v30, %v362_v8  ;;  %v1513_v13 = vld [vmem:[%s289_s21] ss:$0 sm:$0xff] }
 0x203   : > { %v1798_v38 = vld [vmem:[#allocation4 + $0x74] ss:$8 sps:$4 sm:$0xff]  }
 0x204   : > { %v1611_v46 = vpack.c.bf16 %v1063_v2, %v1063_v2  ;;  %v1593_v47 = vpack.c.bf16 %v901_v34, %v901_v34  ;;  %1252 = vmatprep.subr.bf16.mxu1 %v1798_v38  ;;  %v806_v2 = vlaneseq }
 0x205   : > { %v821_v51 = vpop.permute.xlu0 %820  ;;  %1253 = vmatpush1.bf16.msra.mxu1 %v1800_v33  ;;  %v1812_v21 = vld [vmem:[#allocation4 + $0x30] ss:$8 sps:$4 sm:$0xff]  }
 0x206   : > { %1143 = vst [vmem:[#allocation4 + $0x2c] sm:$0xf] %v1611_v46  ;;  %981 = vst [vmem:[#allocation4 + $0x18] sm:$0xf] %v1593_v47  ;;  %v898_v40 = vmul.f32 %v821_v51, %v356_v24  ;;  %v831_v49 = vpop.permute.xlu1 %830  ;;  %1254 = vmatprep.subr.bf16.mxu1 %v1801_v25  ;;  %v807_v33 = vshrl.u32 %v806_v2, 7  ;;  %v808_v46 = vstv %s1512_s26 }
 0x207   : > { %v900_v54 = vmul.f32 %v831_v49, %v360_v43  ;;  %v1919_v49 = vmov 0.0  }
 0x208   : > { %v1590_v55 = vpack.c.bf16 %v898_v40, %v898_v40  ;;  %v809_v47 = vadd.s32 %v808_v46, %v807_v33 }
 0x209   : > { %v1592_v37 = vpack.c.bf16 %v900_v54, %v900_v54  ;;  %1255 = vmatpush1.bf16.msra.mxu1 %v1803_v57  ;;  %v1815_v56 = vld [vmem:[#allocation4 + $0x20] ss:$8 sps:$4 sm:$0xff]   ;;  %v1920_v54 = vmov 1.0|1.0  }
 0x20a   : > { %978 = vst [vmem:[#allocation4] sm:$0xf] %v1590_v55  ;;  %v996_v60 = vpop.permute.xlu0 %995  ;;  %1256 = vmatprep.subr.bf16.mxu1 %v1804_v58  ;;  %vm815_vm2 = vcmp.eq.s32.totalorder %v809_v47, %v1513_v13 }
 0x20b   : > { %980 = vst [vmem:[#allocation4 + $0x10] sm:$0xf] %v1592_v37  ;;  %v1058_v61 = vmul.f32 %v996_v60, %v357_v41  ;;  %v1004_v44 = vpop.permute.xlu1 %1003  ;;  %vm2288_vm3 = vmpackc.low %vm815_vm2, %vm815_vm2 }
 0x20c   : > { %v1060_v36 = vmul.f32 %v1004_v44, %v361_v50 }
 0x20d   : > { %v1606_v32 = vpack.c.bf16 %v1058_v61, %v1058_v61  ;;  %1257 = vmatpush1.bf16.msra.mxu1 %v1806_v3  ;;  %v1813_v8 = vld [vmem:[#allocation4 + $0x24] ss:$8 sps:$4 sm:$0xff]  }
 0x20e   : > { %v1608_v12 = vpack.c.bf16 %v1060_v36, %v1060_v36  ;;  %1258 = vmatprep.subr.bf16.mxu1 %v1807_v53 }
 0x20f   : > { %1138 = vst [vmem:[#allocation4 + $0x4] sm:$0xf] %v1606_v32  ;;  %v1008_v5 = vpop.permute.xlu1 %1007 }
 0x210   : > { %1140 = vst [vmem:[#allocation4 + $0x14] sm:$0xf] %v1608_v12  ;;  %v1061_v20 = vmul.f32 %v1008_v5, %v363_v28 }
 0x211   : > { %1259 = vmatpush1.bf16.msra.mxu1 %v1809_v45 }
 0x212   : > { %v1609_v7 = vpack.c.bf16 %v1061_v20, %v1061_v20  ;;  %1260 = vmatprep.subr.bf16.mxu1 %v1810_v59  ;;  %v1818_v38 = vld [vmem:[#allocation4 + $0x10] ss:$8 sps:$4 sm:$0xff]  }
 0x214   : > { %1141 = vst [vmem:[#allocation4 + $0x1c] sm:$0xf] %v1609_v7  ;;  %v826_v63 = vpop.permute.xlu1 %825 }
 0x215   : > { %v899_v29 = vmul.f32 %v826_v63, %v358_v6  ;;  %1261 = vmatpush1.bf16.msra.mxu1 %v1812_v21 }
 0x216   : > { %1262 = vmatprep.subr.bf16.mxu1 %v1813_v8 }
 0x217   : > { %v1591_v14 = vpack.c.bf16 %v899_v29, %v899_v29 }
 0x219   : > { %979 = vst [vmem:[#allocation4 + $0x8] sm:$0xf] %v1591_v14  ;;  %v1000_v30 = vpop.permute.xlu1 %999  ;;  %1263 = vmatpush1.bf16.msra.mxu1 %v1815_v56 }
 0x21a   : > { %v1059_v34 = vmul.f32 %v1000_v30, %v359_v9 }
 0x21b   : > { %v1816_v24 = vld [vmem:[#allocation4 + $0x14] ss:$8 sps:$4 sm:$0xff]  }
 0x21c   : > { %v1607_v43 = vpack.c.bf16 %v1059_v34, %v1059_v34  ;;  %1264 = vmatprep.subr.bf16.mxu1 %v1816_v24 }
 0x21d   : > { %1265 = vmatpush1.bf16.msra.mxu1 %v1818_v38 }
 0x21e   : > { %1139 = vst [vmem:[#allocation4 + $0xc] sm:$0xf] %v1607_v43 }
 0x220   : > { %v1821_v25 = vld [vmem:[#allocation4] ss:$8 sps:$4 sm:$0xff]  }
 0x225   : > { %v1819_v51 = vld [vmem:[#allocation4 + $0x4] ss:$8 sps:$4 sm:$0xff]  }
 0x226   : > { %1266 = vmatprep.subr.bf16.mxu1 %v1819_v51 }
 0x227   : > { %1267 = vmatpush1.bf16.msra.mxu1 %v1821_v25 }
 0x228   : > { %1695 = vmatprep.subr.bf16.mxu1 %v1919_v49 }
 0x22a   : > { %1563 = vmatmul.mubr.msk.bf16.vlgmr.msra.gmra.mxu1 %vm2288_vm3, %v1920_v54 }
 0x22b   : > { %1696 = vmatpush3.bf16.msra.mxu1 %v1305_v62  ;;  %1711 = vmatprep.mubr.msk.bf16.mxu1 %vm1921_vm4, %v1919_v49 }
 0x22c   : > { %1697 = vmatprep.subr.bf16.mxu1 %v1919_v49 }
 0x22f   : > { %1698 = vmatpush3.bf16.msra.mxu1 %v1304_v35 }
 0x230   : > { %1699 = vmatprep.subr.bf16.mxu1 %v1919_v49 }
 0x233   : > { %1700 = vmatpush3.bf16.msra.mxu1 %v1303_v23 }
 0x234   : > { %1701 = vmatprep.subr.bf16.mxu1 %v1919_v49 }
 0x237   : > { %1702 = vmatpush3.bf16.msra.mxu1 %v1302_v0 }
 0x238   : > { %1703 = vmatprep.subr.bf16.mxu1 %v1919_v49 }
 0x23b   : > { %1704 = vmatpush3.bf16.msra.mxu1 %v1301_v39  ;;  %v1155_v39 = vld [vmem:[#allocation2 + $0x8] sm:$0xff] }
 0x23c   : > { %1705 = vmatprep.subr.bf16.mxu1 %v1919_v49 }
 0x23f   : > { %1706 = vmatpush3.bf16.msra.mxu1 %v1300_v26 }
 0x240   : > { %1707 = vmatprep.subr.bf16.mxu1 %v1919_v49 }
 0x243   : > { %1708 = vmatpush3.bf16.msra.mxu1 %v1299_v16 }
 0x244   : > { %1709 = vmatprep.subr.bf16.mxu1 %v1919_v49 }
 0x247   : > { %1710 = vmatpush3.bf16.msra.mxu1 %v1298_v48 }
 0x24a   : > { %1712 = vmatmul.mubr.msk.bf16.vlgmr.msra.gmra.mxu1 %vm2288_vm3, %v1920_v54 }
 0x2ea   : > { %v1286_v27 = vpop.f32.mrf.mxu1 }
 0x2eb   : > { %v1293_v4 = vadd.f32 %v1286_v27, %v1154_v11 }
 0x2ec   : > { %v1288_v0 = vpop.f32.mrf.mxu1 }
 0x2ed   : > { %1295 = vst [vmem:[#allocation2] sm:$0xff] %v1293_v4  ;;  %v1294_v18 = vadd.f32 %v1288_v0, %v1155_v39 }
 0x2ee   : > { %v1290_v23 = vpop.f32.mrf.mxu1 }
 0x2ef   : > { %1296 = vst [vmem:[#allocation2 + $0x8] sm:$0xff] %v1294_v18 }
 0x2f0   : > { %v1291_v31 = vpop.f32.mrf.mxu1 }
 0x30a   : > { %v1340_v35 = vpop.f32.mrf.mxu1 }
 0x30b   : > { %v1346_v42 = vadd.f32 %v1340_v35, %v1297_v1 }
 0x30c   : > { %v1713_v52 = vpop.f32.mrf.mxu1 }
 0x30d   : > { %1348 = vst.msk [vmem:[#allocation3] sm:$0xff] %vm333_vm0, %v1346_v42 }
 0x30e   : > { %v1343_v62 = vpop.f32.mrf.mxu1 }
 0x310   : > { %v1714_v10 = vpop.f32.mrf.mxu1 }
 0x311 PF: > { %v1922_v17 = vmov 0   ;;  %v1923_v22 = vmov 1   ;;  %v1352_v57 = vld [vmem:[#allocation2] sm:$0xff]  ;;  %v1353_v60 = vld [vmem:[#allocation2 + $0x8] sm:$0xff] }
 0x312   : > { %1854 = vset.pattern.permute.xlu0 %v1922_v17 }
 0x314   : > { %v1354_v15 = vld [vmem:[#allocation3] sm:$0xff] }
 0x315   : > { %vm1355_vm5 = vcmp.eq.f32.partialorder %v1354_v15, 0.0 }
 0x316   : > { %v1356_v19 = vsel %vm1355_vm5, 1e-12, %v1354_v15 }
 0x317   : > { %1359 = vperm.xlu0 %1854, %v1356_v19  }
 0x31b   : > { %1855 = vset.pattern.permute.xlu0 %v1923_v22 }
 0x31c   : > { %1372 = vperm.xlu0 %1855, %v1356_v19  }
 0x392   : > { %v1360_v41 = vpop.permute.xlu0 %1359 }
 0x393   : > { %1856 = vrcp.f32 %v1360_v41 }
 0x397   : > { %v1373_v55 = vpop.permute.xlu0 %1372 }
 0x398   : > { %1858 = vrcp.f32 %v1373_v55 }
 0x3a0   : > { %v1857_v50 = vpop.eup %1856 }
 0x3a1   : > { %v1363_v37 = vmul.f32 %v1857_v50, %v1352_v57 }
 0x3a3   : > { %v1365_v58 = vmin.f32 %v1363_v37, 0.0  ;;  %vm1364_vm0 = vcmp.gt.f32.partialorder %v1363_v37, 0.0 }
 0x3a5   : > { %v1859_v61 = vpop.eup %1858  ;;  %v1366_v44 = vmul.f32 1.442695, %v1365_v58 }
 0x3a6   : > { %v1376_v36 = vmul.f32 %v1859_v61, %v1353_v60 }
 0x3a7   : > { %1860 = vpow2.f32 %v1366_v44 }
 0x3a8   : > { %v1378_v3 = vmin.f32 %v1376_v36, 0.0  ;;  %vm1377_vm6 = vcmp.gt.f32.partialorder %v1376_v36, 0.0 }
 0x3aa   : > { %v1379_v28 = vmul.f32 1.442695, %v1378_v3 }
 0x3ac   : > { %1862 = vpow2.f32 %v1379_v28 }
 0x3b4   : > { %v1861_v32 = vpop.eup %1860 }
 0x3b5   : > { %v1566_v53 = vadd.f32 -1.0, %v1861_v32 }
 0x3b7   : > { %v1369_v12 = vsel %vm1364_vm0, %v1363_v37, %v1566_v53 }
 0x3b8   : > { %1370 = vst [vmem:[%s1990_s14] sm:$0xff] %v1369_v12 }
 0x3b9   : > { %v1863_v5 = vpop.eup %1862 }
 0x3ba   : > { %v1567_v20 = vadd.f32 -1.0, %v1863_v5 }
 0x3bc   : > { %v1382_v45 = vsel %vm1377_vm6, %v1376_v36, %v1567_v20 }
 0x3bd   : > { %1383 = vst [vmem:[%s1990_s14 + $0x8] sm:$0xff] %v1382_v45 }
 0x3be PF: > { %s25_s28 = sadd.s32 1, %s1912_s28   ;;  %s2337_s1 = smov %s1908_s27 }
 0x3bf   : > { %p22_p6 = scmp.ge.s32.totalorder %s25_s28, 4   ;;  %s2338_s27 = smov %s2340_s29 }
 0x3c1   :  { %24 = sbr.rel (!%p22_p6) target bundleno = 27 (0x1b), region = 77 }

// kernel: spkbgat_forward.14
= control target key start
LH: loop header
LB: loop body
LE: loop exit
PB: predicated region body
PF: predicated region fallthrough
CT: control target
= control target key end

     0   :  { %s1786_s0 = inlined_call_operand.vmem [shape: s32[2], index: 0, kind: input, shape index: {}]   ;;  %s1787_s2 = inlined_call_operand.vmem [shape: s32[1,128], index: 2, kind: input, shape index: {}]   ;;  %s1788_s3 = inlined_call_operand.vmem [shape: bf16[128,128], index: 3, kind: input, shape index: {}]   ;;  %s1789_s4 = inlined_call_operand.vmem [shape: bf16[128,1], index: 4, kind: input, shape index: {}]   ;;  %s1790_s5 = inlined_call_operand.vmem [shape: f32[16,128], index: 5, kind: output, shape index: {}]   ;;  %s1791_s1 = inlined_call_operand.vmem [shape: s32[2], index: 1, kind: input, shape index: {}]  }
   0x1   :  { %s10_s20 = sshll.u32 %s1786_s0, 4  ;;  %s14_s23 = sshll.u32 %s1791_s1, 4  ;;  %s11_s20 = int_to_ptr.vmem [resolvable:$true] %s10_s20  ;;  %s15_s23 = int_to_ptr.vmem [resolvable:$true] %s14_s23 }
   0x2   :  { %s1487_s24 = scalar_lea.vmem %s11_s20, 16  ;;  %p1492_p1 = scmp.lt.s32.totalorder %s11_s20, %s11_s20 }
   0x3   :  { %p1488_p0 = scmp.ne.s32.totalorder %s11_s20, %s1487_s24  ;;  %p1493_p2 = scmp.lt.s32.totalorder %s1487_s24, %s1487_s24 }
   0x5   :  { %p1494_p3 = por %p1493_p2, %p1492_p1 }
   0x7   :  { %p1495_p4 = pnand %p1494_p3, %p1488_p0 }
   0x9   :  { %1498 = shalt.err (!%p1495_p4)  }
   0xa   :  { %s1537_s25 = smov [#allocation6]   ;;  %s1499_s26 = scalar_lea.vmem %s15_s23, 16 }
   0xb   :  { %13 = dma.vmem_to_smem %s11_s20, 16, %s1537_s25, [#allocation5] }
   0xc   :  { %p1500_p5 = scmp.ne.s32.totalorder %s15_s23, %s1499_s26  ;;  %p1504_p6 = scmp.lt.s32.totalorder %s15_s23, %s15_s23 }
   0xd   :  { %p1505_p7 = scmp.lt.s32.totalorder %s1499_s26, %s1499_s26 }
   0xf   :  { %p1506_p8 = por %p1505_p7, %p1504_p6 }
  0x11   :  { %p1507_p9 = pnand %p1506_p8, %p1500_p5 }
  0x13   :  { %1510 = shalt.err (!%p1507_p9)  }
  0x14   :  { %s1538_s0 = smov [#allocation7]  }
  0x15   :  { %17 = dma.vmem_to_smem %s15_s23, 16, %s1538_s0, [#allocation5] }
  0x16   :  { %1523 = dma.done.wait [#allocation5], 32 }
  0x17   :  { %1524 = vsyncadd [#allocation5], 4294967264 }
  0x18   :  { %19 = sfence }
  0x19   :  { %s1581_s1 = smov 0   ;;  %s1583_s27 = smov 0  }
  0x1a   :  { %s1585_s28 = smov 0  }
  0x1b LB: > { %s37_s29 = sadd.s32 1, %s1531_s27  ;;  %p1138_p10 = scmp.ge.s32.totalorder %s1535_s28, 1  ;;  %s1535_s28 = sphi %s1585_s28, %s25_s28   ;;  %s1531_s27 = sphi %s1583_s27, %s1795_s27   ;;  %s1527_s1 = sphi %s1581_s1, %s1794_s1  }
  0x1c   : > { %p39_p11 = scmp.ge.s32.totalorder %s37_s29, 2  ;;  %p234_p12 = scmp.lt.s32.totalorder %s1535_s28, 3 }
  0x1e   : > { %s1797_s29 = smov (%p39_p11, %s37_s29), 0  ;;  %p235_p13 = pnand %p1138_p10, %p234_p12 }
  0x1f   : > { %p317_p0 = scmp.lt.s32.totalorder (!%p235_p13), %s1527_s1, 1  ;;  %s277_s30 = sld [smem:[#allocation7 + %s1527_s1]] (!%p235_p13) }
  0x20   : > { %238 = sbr.rel (%p235_p13) target bundleno = 860 (0x35c), region = 32  ;;  %s296_s6 = sld [smem:[#allocation7 + %s1527_s1]] (!%p235_p13) }
  0x21   : > { %s329_s8 = sld [smem:[#allocation7 + %s1527_s1]] (!%p235_p13) }
  0x22   : > { %s276_s9 = sld [smem:[#allocation6 + %s1527_s1]] (!%p235_p13) }
  0x23   : > { %s295_s15 = sld [smem:[#allocation6 + %s1527_s1]] (!%p235_p13) }
  0x25   : > { %vm327_vm0 = vcmask 7168   ;;  %v1539_v0 = vmov 0.0   ;;  %s318_s7 = scalar_select %p317_p0, %s1527_s1, 1 }
  0x26   : > { %326 = vst [vmem:[#allocation2] sm:$0xff] %v1539_v0  ;;  %328 = vst.msk [vmem:[#allocation3] sm:$0xff] %vm327_vm0, %v1539_v0  ;;  %s1139_s11 = sadd.s32 4294967295, %s277_s30  ;;  %s1141_s16 = sadd.s32 4294967295, %s296_s6 }
  0x27   : > { %s1145_s10 = sshll.u32 %s318_s7, 3  ;;  %p279_p1 = scmp.gt.s32.totalorder %s1139_s11, 0 }
  0x28   : > { %s1611_s14 = scalar_lea.vmem %s1790_s5, %s1145_s10  ;;  %p298_p2 = scmp.gt.s32.totalorder %s1141_s16, 0 }
  0x29   : > { %s1799_s11 = smov (!%p279_p1, %s1139_s11), 0  ;;  %p1147_p5 = scmp.le.s32.totalorder %s329_s8, 0 }
  0x2a   : > { %s1801_s11 = smov (%p279_p1, %s1799_s11), 0  ;;  %s1803_s16 = smov (!%p298_p2, %s1141_s16), 0 }
  0x2b   : > { %s283_s17 = sadd.s32 %s1801_s11, %s276_s9  ;;  %s1805_s16 = smov (%p298_p2, %s1803_s16), 0 }
  0x2c   : > { %p284_p3 = scmp.lt.s32.totalorder %s283_s17, 0  ;;  %s302_s18 = sadd.s32 %s1805_s16, %s295_s15 }
  0x2d   : > { %s1143_s22 = sshll.u32 %s302_s18, 4 }
  0x2e   : > { %s1807_s17 = smov (!%p284_p3, %s283_s17), 0  ;;  %p304_p4 = scmp.lt.s32.totalorder %s1143_s22, 15 }
  0x2f   : > { %s286_s21 = scalar_lea.vmem %s1787_s2, %s1807_s17  ;;  %333 = sbr.rel (%p1147_p5) target bundleno = 695 (0x2b7), region = 40 }
  0x30   : > { %s1809_s22 = smov (!%p304_p4, %s1143_s22), 15 }
  0x31   : > { %s1144_s23 = sshll.u32 %s1809_s22, 2 }
  0x32   : > { %s1623_s26 = scalar_lea.vmem %s1788_s3, %s1144_s23  ;;  %s1164_s23 = sshll.u32 (!%p1147_p5), %s1527_s1, 3 }
  0x34   : > { %v1418_v1 = vld [vmem:[%s1789_s4 + $0x38] sm:$0xff]   ;;  %v1419_v2 = vld [vmem:[%s1789_s4 + $0x30] sm:$0xff]   ;;  %v1420_v3 = vld [vmem:[%s1789_s4 + $0x28] sm:$0xff]   ;;  %v1540_v17 = vmov 0   ;;  %v1541_v18 = vmov 0.0  }
  0x35   : > { %1312 = vmatprep.subr.bf16.mxu0 %v1418_v1  ;;  %v1421_v4 = vld [vmem:[%s1789_s4 + $0x20] sm:$0xff]   ;;  %v1422_v6 = vld [vmem:[%s1789_s4 + $0x18] sm:$0xff]   ;;  %v1423_v7 = vld [vmem:[%s1789_s4 + $0x10] sm:$0xff]   ;;  %1416 = vset.pattern.permute.xlu0 %v1540_v17 }
  0x36   : > { %1313 = vmatpush3.bf16.msra.mxu0 %v1418_v1  ;;  %v1638_v5 = vld [vmem:[%s1623_s26] sm:$0xff]   ;;  %v1424_v8 = vld [vmem:[%s1789_s4 + $0x8] sm:$0xff]   ;;  %v1657_v11 = vld [vmem:[%s1623_s26 + $0x10] sm:$0xff]   ;;  %1417 = vset.pattern.permute.xlu1 %v1540_v17 }
  0x37   : > { %1314 = vmatprep.subr.bf16.mxu0 %v1419_v2  ;;  %1328 = vmatprep.mubr.bf16.mxu0 %v1638_v5  ;;  %v1425_v9 = vld [vmem:[%s1789_s4] sm:$0xff]   ;;  %v1654_v10 = vld [vmem:[%s1623_s26 + $0x8] sm:$0xff]   ;;  %v1662_v12 = vld [vmem:[%s1623_s26 + $0x18] sm:$0xff]  }
  0x38   : > { %v1665_v13 = vld [vmem:[%s1623_s26 + $0x20] sm:$0xff]   ;;  %v1670_v14 = vld [vmem:[%s1623_s26 + $0x28] sm:$0xff]   ;;  %v1673_v15 = vld [vmem:[%s1623_s26 + $0x30] sm:$0xff]   ;;  %1344 = vmatprep.subr.bf16.mxu1 %v1541_v18 }
  0x39   : > { %v1678_v16 = vld [vmem:[%s1623_s26 + $0x38] sm:$0xff]  }
  0x3a   : > { %1315 = vmatpush3.bf16.msra.mxu0 %v1419_v2 }
  0x3b   : > { %1316 = vmatprep.subr.bf16.mxu0 %v1420_v3 }
  0x3e   : > { %1317 = vmatpush3.bf16.msra.mxu0 %v1420_v3 }
  0x3f   : > { %1318 = vmatprep.subr.bf16.mxu0 %v1421_v4 }
  0x42   : > { %1319 = vmatpush3.bf16.msra.mxu0 %v1421_v4 }
  0x43   : > { %1320 = vmatprep.subr.bf16.mxu0 %v1422_v6 }
  0x46   : > { %1321 = vmatpush3.bf16.msra.mxu0 %v1422_v6 }
  0x47   : > { %1322 = vmatprep.subr.bf16.mxu0 %v1423_v7 }
  0x4a   : > { %1323 = vmatpush3.bf16.msra.mxu0 %v1423_v7 }
  0x4b   : > { %1324 = vmatprep.subr.bf16.mxu0 %v1424_v8 }
  0x4e   : > { %1325 = vmatpush3.bf16.msra.mxu0 %v1424_v8 }
  0x4f   : > { %1326 = vmatprep.subr.bf16.mxu0 %v1425_v9 }
  0x52   : > { %1327 = vmatpush3.bf16.msra.mxu0 %v1425_v9 }
  0x53   : > { %1364 = vmatprep.subr.bf16.mxu0 %v1541_v18 }
  0x55   : > { %1329 = vmatmul.mubr.bf16.vlgmr.msra.gmra.mxu0 %v1654_v10 }
  0x56   : > { %1332 = vmatprep.mubr.bf16.mxu0 %v1657_v11 }
  0x5d   : > { %1333 = vmatmul.mubr.bf16.gmra.mxu0 %v1662_v12 }
  0x5e   : > { %1336 = vmatprep.mubr.bf16.mxu0 %v1665_v13 }
  0x65   : > { %1337 = vmatmul.mubr.bf16.gmra.mxu0 %v1670_v14 }
  0x66   : > { %1340 = vmatprep.mubr.bf16.mxu0 %v1673_v15 }
  0x6d   : > { %1341 = vmatmul.mubr.bf16.gmra.mxu0 %v1678_v16 }
 0x115   : > { %v1683_v19 = vpop.f32.mrf.mxu0 }
 0x116   : > { %vm577_vm9 = vcmp.gt.f32.partialorder %v1683_v19, 0.0  ;;  %v593_v3 = vmul.f32 0.2, %v1683_v19 }
 0x117   : > { %v1685_v20 = vpop.f32.mrf.mxu0 }
 0x118   : > { %vm575_vm15 = vcmp.gt.f32.partialorder %v1685_v20, 0.0 }
 0x119   : > { %v1687_v21 = vpop.f32.mrf.mxu0 }
 0x11a   : > { %vm578_vm14 = vcmp.gt.f32.partialorder %v1687_v21, 0.0 }
 0x11b   : > { %v1689_v22 = vpop.f32.mrf.mxu0 }
 0x11d   : > { %v1334_v23 = vpop.f32.mrf.mxu0 }
 0x11e   : > { %v597_v31 = vmul.f32 0.2, %v1334_v23  ;;  %vm581_vm2 = vcmp.gt.f32.partialorder %v1334_v23, 0.0 }
 0x11f   : > { %v1691_v24 = vpop.f32.mrf.mxu0 }
 0x120   : > { %v1697_v37 = vsel %vm581_vm2, %v1334_v23, %v597_v31  ;;  %vm579_vm12 = vcmp.gt.f32.partialorder %v1691_v24, 0.0  ;;  %v595_v4 = vmul.f32 0.2, %v1691_v24  ;;  %v594_v31 = vmul.f32 0.2, %v1687_v21 }
 0x121   : > { %v1693_v25 = vpop.f32.mrf.mxu0  ;;  %v629_v17 = vmax.f32 %v1697_v37, -80.0 }
 0x122   : > { %vm582_vm7 = vcmp.gt.f32.partialorder %v1693_v25, 0.0  ;;  %v598_v56 = vmul.f32 0.2, %v1693_v25 }
 0x123   : > { %v1695_v26 = vpop.f32.mrf.mxu0  ;;  %v645_v37 = vsub.f32 0.0, %v629_v17 }
 0x124   : > { %v614_v23 = vsel %vm582_vm7, %v1693_v25, %v598_v56  ;;  %vm580_vm13 = vcmp.gt.f32.partialorder %v1695_v26, 0.0  ;;  %v609_v25 = vsel %vm577_vm9, %v1683_v19, %v593_v3 }
 0x125   : > { %v1338_v27 = vpop.f32.mrf.mxu0  ;;  %v667_v19 = vmul.f32 1.442695, %v645_v37  ;;  %v690_v37 = vstv %s1164_s23 }
 0x126   : > { %v601_v30 = vmul.f32 0.2, %v1338_v27  ;;  %vm585_vm1 = vcmp.gt.f32.partialorder %v1338_v27, 0.0 }
 0x127   : > { %v544_v28 = vpop.f32.mrf.mxu0 }
 0x128   : > { %v617_v35 = vsel %vm585_vm1, %v1338_v27, %v601_v30  ;;  %v599_v38 = vmul.f32 0.2, %v544_v28  ;;  %vm583_vm5 = vcmp.gt.f32.partialorder %v544_v28, 0.0  ;;  %v596_v27 = vmul.f32 0.2, %v1695_v26 }
 0x129   : > { %v1339_v29 = vpop.f32.mrf.mxu0  ;;  %v633_v42 = vmax.f32 %v617_v35, -80.0  ;;  %vm576_vm1 = vcmp.gt.f32.partialorder %v1689_v22, 0.0 }
 0x12a   : > { %v602_v33 = vmul.f32 0.2, %v1339_v29  ;;  %vm586_vm3 = vcmp.gt.f32.partialorder %v1339_v29, 0.0  ;;  %v615_v49 = vsel %vm583_vm5, %v544_v28, %v599_v38 }
 0x12b   : > { %v547_v32 = vpop.f32.mrf.mxu0  ;;  %v649_v60 = vsub.f32 0.0, %v633_v42  ;;  %v631_v61 = vmax.f32 %v615_v49, -80.0 }
 0x12c   : > { %v618_v43 = vsel %vm586_vm3, %v1339_v29, %v602_v33  ;;  %v600_v46 = vmul.f32 0.2, %v547_v32  ;;  %vm584_vm10 = vcmp.gt.f32.partialorder %v547_v32, 0.0  ;;  %v630_v33 = vmax.f32 %v614_v23, -80.0 }
 0x12d   : > { %v1342_v34 = vpop.f32.mrf.mxu0  ;;  %v634_v53 = vmax.f32 %v618_v43, -80.0  ;;  %v675_v28 = vmul.f32 1.442695, %v649_v60  ;;  %v647_v29 = vsub.f32 0.0, %v631_v61  ;;  %vm1542_vm3 = vmmov 0  }
 0x12e   : > { %vm589_vm4 = vcmp.gt.f32.partialorder %v1342_v34, 0.0  ;;  %v605_v36 = vmul.f32 0.2, %v1342_v34  ;;  %v616_v62 = vsel %vm584_vm10, %v547_v32, %v600_v46  ;;  %v611_v32 = vsel %vm579_vm12, %v1691_v24, %v595_v4  ;;  %1380 = vmatprep.mubr.msk.bf16.mxu0 %vm1542_vm3, %v1541_v18  ;;  %1360 = vmatprep.mubr.msk.bf16.mxu1 %vm1542_vm3, %v1541_v18 }
 0x12f   : > { %v560_v39 = vpop.f32.mrf.mxu0  ;;  %v650_v6 = vsub.f32 0.0, %v634_v53  ;;  %v632_v7 = vmax.f32 %v616_v62, -80.0  ;;  %v627_v38 = vmax.f32 %v611_v32, -80.0  ;;  %v610_v24 = vsel %vm578_vm14, %v1687_v21, %v594_v31 }
 0x130   : > { %v621_v40 = vsel %vm589_vm4, %v1342_v34, %v605_v36  ;;  %vm587_vm6 = vcmp.gt.f32.partialorder %v560_v39, 0.0  ;;  %v603_v41 = vmul.f32 0.2, %v560_v39  ;;  %v612_v36 = vsel %vm580_vm13, %v1695_v26, %v596_v27 }
 0x131   : > { %v637_v44 = vmax.f32 %v621_v40, -80.0  ;;  %v1343_v45 = vpop.f32.mrf.mxu0  ;;  %v677_v34 = vmul.f32 1.442695, %v650_v6  ;;  %v648_v35 = vsub.f32 0.0, %v632_v7  ;;  %v591_v40 = vmul.f32 0.2, %v1685_v20 }
 0x132   : > { %v619_v47 = vsel %vm587_vm6, %v560_v39, %v603_v41  ;;  %vm590_vm8 = vcmp.gt.f32.partialorder %v1343_v45, 0.0  ;;  %v606_v48 = vmul.f32 0.2, %v1343_v45  ;;  %v671_v39 = vmul.f32 1.442695, %v647_v29 }
 0x133   : > { %v653_v50 = vsub.f32 0.0, %v637_v44  ;;  %v635_v51 = vmax.f32 %v619_v47, -80.0  ;;  %v563_v52 = vpop.f32.mrf.mxu0  ;;  %v646_v41 = vsub.f32 0.0, %v630_v33  ;;  %v628_v42 = vmax.f32 %v612_v36, -80.0 }
 0x134   : > { %v622_v54 = vsel %vm590_vm8, %v1343_v45, %v606_v48  ;;  %vm588_vm11 = vcmp.gt.f32.partialorder %v563_v52, 0.0  ;;  %v604_v55 = vmul.f32 0.2, %v563_v52  ;;  %v673_v43 = vmul.f32 1.442695, %v648_v35 }
 0x135   : > { %v683_v57 = vmul.f32 1.442695, %v653_v50  ;;  %v651_v58 = vsub.f32 0.0, %v635_v51  ;;  %v638_v59 = vmax.f32 %v622_v54, -80.0  ;;  %v625_v44 = vmax.f32 %v609_v25, -80.0 }
 0x136   : > { %v620_v63 = vsel %vm588_vm11, %v563_v52, %v604_v55  ;;  %v592_v45 = vmul.f32 0.2, %v1689_v22  ;;  %v643_v26 = vsub.f32 0.0, %v627_v38  ;;  %v607_v47 = vsel %vm575_vm15, %v1685_v20, %v591_v40 }
 0x137   : > { %1450 = vpow2.f32 %v683_v57  ;;  %v679_v0 = vmul.f32 1.442695, %v651_v58  ;;  %v654_v1 = vsub.f32 0.0, %v638_v59  ;;  %v636_v2 = vmax.f32 %v620_v63, -80.0 }
 0x138   : > { %v626_v48 = vmax.f32 %v610_v24, -80.0  ;;  %v669_v49 = vmul.f32 1.442695, %v646_v41  ;;  %v644_v50 = vsub.f32 0.0, %v628_v42  ;;  %v608_v51 = vsel %vm576_vm1, %v1689_v22, %v592_v45 }
 0x139   : > { %1452 = vpow2.f32 %v679_v0  ;;  %v685_v8 = vmul.f32 1.442695, %v654_v1  ;;  %v652_v9 = vsub.f32 0.0, %v636_v2  ;;  %v641_v52 = vsub.f32 0.0, %v625_v44 }
 0x13a   : > { %v623_v53 = vmax.f32 %v607_v47, -80.0  ;;  %v663_v54 = vmul.f32 1.442695, %v643_v26  ;;  %v642_v56 = vsub.f32 0.0, %v626_v48  ;;  %v624_v57 = vmax.f32 %v608_v51, -80.0 }
 0x13b   : > { %1454 = vpow2.f32 %v685_v8  ;;  %v681_v30 = vmul.f32 1.442695, %v652_v9  ;;  %v665_v58 = vmul.f32 1.442695, %v644_v50  ;;  %v659_v60 = vmul.f32 1.442695, %v641_v52 }
 0x13c   : > { %v639_v61 = vsub.f32 0.0, %v623_v53  ;;  %v661_v22 = vmul.f32 1.442695, %v642_v56  ;;  %v640_v63 = vsub.f32 0.0, %v624_v57  ;;  %v688_v35 = vlaneseq }
 0x13d   : > { %1456 = vpow2.f32 %v681_v30  ;;  %v1543_v24 = vmov 1.0|1.0   ;;  %v364_v42 = vunpack.c.l.bf16 %v1678_v16  ;;  %v362_v45 = vunpack.c.l.bf16 %v1673_v15 }
 0x13e   : > { %1458 = vpow2.f32 %v675_v28  ;;  %v655_v2 = vmul.f32 1.442695, %v639_v61  ;;  %v657_v4 = vmul.f32 1.442695, %v640_v63  ;;  %v689_v36 = vshrl.u32 %v688_v35, 7 }
 0x13f   : > { %1460 = vpow2.f32 %v677_v34  ;;  %v361_v52 = vunpack.c.h.bf16 %v1670_v14  ;;  %v359_v57 = vunpack.c.h.bf16 %v1665_v13 }
 0x140   : > { %1462 = vpow2.f32 %v671_v39  ;;  %v691_v38 = vadd.s32 %v690_v37, %v689_v36  ;;  %v1165_v39 = vld [vmem:[%s286_s21] ss:$0 sm:$0xff] }
 0x141   : > { %1464 = vpow2.f32 %v673_v43  ;;  %v365_v43 = vunpack.c.h.bf16 %v1678_v16 }
 0x142   : > { %1466 = vpow2.f32 %v667_v19  ;;  %vm697_vm2 = vcmp.eq.s32.totalorder %v691_v38, %v1165_v39  ;;  %v363_v19 = vunpack.c.h.bf16 %v1673_v15  ;;  %v358_v15 = vunpack.c.l.bf16 %v1665_v13 }
 0x143   : > { %1468 = vpow2.f32 %v669_v49  ;;  %vm1741_vm4 = vmpackc.low %vm697_vm2, %vm697_vm2  ;;  %v360_v49 = vunpack.c.l.bf16 %v1670_v14  ;;  %v357_v14 = vunpack.c.h.bf16 %v1662_v12  ;;  %v354_v13 = vunpack.c.l.bf16 %v1657_v11 }
 0x144   : > { %v1451_v46 = vpop.eup %1450  ;;  %1470 = vpow2.f32 %v663_v54 }
 0x145   : > { %772 = vperm.xlu0 %1416, %v1451_v46   ;;  %1472 = vpow2.f32 %v665_v58 }
 0x146   : > { %v1453_v21 = vpop.eup %1452  ;;  %1474 = vpow2.f32 %v659_v60 }
 0x147   : > { %762 = vperm.xlu1 %1417, %v1453_v21   ;;  %1476 = vpow2.f32 %v661_v22 }
 0x148   : > { %v1455_v55 = vpop.eup %1454  ;;  %1478 = vpow2.f32 %v655_v2 }
 0x149   : > { %777 = vperm.xlu0 %1416, %v1455_v55   ;;  %v991_v20 = vpack.c.bf16 %v1455_v55, %v1451_v46  ;;  %1480 = vpow2.f32 %v657_v4  ;;  %v355_v4 = vunpack.c.h.bf16 %v1657_v11  ;;  %v350_v11 = vunpack.c.l.bf16 %v1638_v5 }
 0x14a   : > { %v1457_v59 = vpop.eup %1456 }
 0x14b   : > { %1365 = vmatpush3.bf16.msra.mxu0 %v991_v20  ;;  %767 = vperm.xlu1 %1417, %v1457_v59   ;;  %v1459_v62 = vpop.eup %1458  ;;  %v990_v0 = vpack.c.bf16 %v1457_v59, %v1453_v21 }
 0x14c   : > { %1366 = vmatprep.subr.bf16.mxu0 %v1541_v18  ;;  %v1461_v1 = vpop.eup %1460 }
 0x14d   : > { %752 = vperm.xlu0 %1416, %v1459_v62   ;;  %v1463_v3 = vpop.eup %1462  ;;  %v989_v6 = vpack.c.bf16 %v1461_v1, %v1459_v62  ;;  %v356_v62 = vunpack.c.l.bf16 %v1662_v12 }
 0x14e   : > { %v1465_v7 = vpop.eup %1464 }
 0x14f   : > { %757 = vperm.xlu1 %1417, %v1461_v1   ;;  %1367 = vmatpush3.bf16.msra.mxu0 %v990_v0  ;;  %v1467_v8 = vpop.eup %1466  ;;  %v988_v9 = vpack.c.bf16 %v1465_v7, %v1463_v3 }
 0x150   : > { %1368 = vmatprep.subr.bf16.mxu0 %v1541_v18  ;;  %v1469_v17 = vpop.eup %1468 }
 0x151   : > { %742 = vperm.xlu0 %1416, %v1463_v3   ;;  %v1471_v23 = vpop.eup %1470  ;;  %v987_v27 = vpack.c.bf16 %v1469_v17, %v1467_v8 }
 0x152   : > { %v1473_v28 = vpop.eup %1472 }
 0x153   : > { %747 = vperm.xlu1 %1417, %v1465_v7   ;;  %1369 = vmatpush3.bf16.msra.mxu0 %v989_v6  ;;  %v1475_v29 = vpop.eup %1474  ;;  %v986_v30 = vpack.c.bf16 %v1473_v28, %v1471_v23 }
 0x154   : > { %1370 = vmatprep.subr.bf16.mxu0 %v1541_v18  ;;  %v1477_v31 = vpop.eup %1476 }
 0x155   : > { %732 = vperm.xlu0 %1416, %v1467_v8   ;;  %v1479_v32 = vpop.eup %1478  ;;  %v985_v33 = vpack.c.bf16 %v1477_v31, %v1475_v29 }
 0x156   : > { %v1481_v34 = vpop.eup %1480 }
 0x157   : > { %737 = vperm.xlu1 %1417, %v1469_v17   ;;  %1371 = vmatpush3.bf16.msra.mxu0 %v988_v9  ;;  %v984_v25 = vpack.c.bf16 %v1481_v34, %v1479_v32 }
 0x158   : > { %1372 = vmatprep.subr.bf16.mxu0 %v1541_v18 }
 0x159   : > { %722 = vperm.xlu0 %1416, %v1471_v23   ;;  %v352_v23 = vunpack.c.l.bf16 %v1654_v10 }
 0x15b   : > { %727 = vperm.xlu1 %1417, %v1473_v28   ;;  %1373 = vmatpush3.bf16.msra.mxu0 %v987_v27  ;;  %v353_v27 = vunpack.c.h.bf16 %v1654_v10 }
 0x15c   : > { %1374 = vmatprep.subr.bf16.mxu0 %v1541_v18 }
 0x15d   : > { %712 = vperm.xlu0 %1416, %v1475_v29  }
 0x15f   : > { %717 = vperm.xlu1 %1417, %v1477_v31   ;;  %1375 = vmatpush3.bf16.msra.mxu0 %v986_v30 }
 0x160   : > { %1376 = vmatprep.subr.bf16.mxu0 %v1541_v18 }
 0x161   : > { %702 = vperm.xlu0 %1416, %v1479_v32   ;;  %v351_v32 = vunpack.c.h.bf16 %v1638_v5 }
 0x163   : > { %707 = vperm.xlu1 %1417, %v1481_v34   ;;  %1377 = vmatpush3.bf16.msra.mxu0 %v985_v33 }
 0x164   : > { %1378 = vmatprep.subr.bf16.mxu0 %v1541_v18 }
 0x167   : > { %1379 = vmatpush3.bf16.msra.mxu0 %v984_v25 }
 0x16a   : > { %1381 = vmatmul.mubr.msk.bf16.vlgmr.msra.gmra.mxu0 %vm1741_vm4, %v1543_v24 }
 0x1c0   : > { %v773_v41 = vpop.permute.xlu0 %772 }
 0x1c1   : > { %v794_v46 = vmul.f32 %v773_v41, %v364_v42 }
 0x1c2   : > { %v763_v44 = vpop.permute.xlu1 %762 }
 0x1c3   : > { %v792_v50 = vmul.f32 %v763_v44, %v362_v45  ;;  %v983_v44 = vld [vmem:[#allocation3] sm:$0xff] }
 0x1c4   : > { %v778_v26 = vpop.permute.xlu0 %777 }
 0x1c5   : > { %v795_v47 = vmul.f32 %v778_v26, %v365_v43 }
 0x1c6   : > { %v768_v48 = vpop.permute.xlu1 %767 }
 0x1c7   : > { %v1269_v21 = vpack.c.bf16 %v795_v47, %v794_v46  ;;  %v793_v51 = vmul.f32 %v768_v48, %v363_v19  ;;  %v876_v48 = vld [vmem:[#allocation2] sm:$0xff] }
 0x1c8   : > { %v753_v53 = vpop.permute.xlu0 %752 }
 0x1c9   : > { %1277 = vst [vmem:[#allocation4 + $0x38] sm:$0xff] %v1269_v21   ;;  %v1264_v54 = vpack.c.bf16 %v793_v51, %v792_v50  ;;  %v790_v55 = vmul.f32 %v753_v53, %v360_v49 }
 0x1ca   : > { %v758_v16 = vpop.permute.xlu1 %757 }
 0x1cb   : > { %1276 = vst [vmem:[#allocation4 + $0x30] sm:$0xff] %v1264_v54   ;;  %v791_v56 = vmul.f32 %v758_v16, %v361_v52 }
 0x1cc   : > { %v743_v58 = vpop.permute.xlu0 %742 }
 0x1cd   : > { %v1259_v20 = vpack.c.bf16 %v791_v56, %v790_v55  ;;  %v788_v60 = vmul.f32 %v743_v58, %v358_v15 }
 0x1ce   : > { %v748_v59 = vpop.permute.xlu1 %747 }
 0x1cf   : > { %1275 = vst [vmem:[#allocation4 + $0x28] sm:$0xff] %v1259_v20   ;;  %v789_v61 = vmul.f32 %v748_v59, %v359_v57 }
 0x1d0   : > { %v733_v22 = vpop.permute.xlu0 %732  ;;  %v1434_v63 = vld [vmem:[#allocation4 + $0x38] sm:$0xff]  }
 0x1d1   : > { %v1254_v0 = vpack.c.bf16 %v789_v61, %v788_v60  ;;  %1345 = vmatpush3.bf16.msra.mxu1 %v1434_v63  ;;  %v786_v2 = vmul.f32 %v733_v22, %v356_v62 }
 0x1d2   : > { %v738_v1 = vpop.permute.xlu1 %737  ;;  %1346 = vmatprep.subr.bf16.mxu1 %v1541_v18  ;;  %v1435_v7 = vld [vmem:[#allocation4 + $0x30] sm:$0xff]  }
 0x1d3   : > { %1274 = vst [vmem:[#allocation4 + $0x20] sm:$0xff] %v1254_v0   ;;  %v787_v3 = vmul.f32 %v738_v1, %v357_v14 }
 0x1d4   : > { %v723_v6 = vpop.permute.xlu0 %722 }
 0x1d5   : > { %v1249_v8 = vpack.c.bf16 %v787_v3, %v786_v2  ;;  %1347 = vmatpush3.bf16.msra.mxu1 %v1435_v7  ;;  %v784_v12 = vmul.f32 %v723_v6, %v354_v13 }
 0x1d6   : > { %v728_v9 = vpop.permute.xlu1 %727  ;;  %1348 = vmatprep.subr.bf16.mxu1 %v1541_v18  ;;  %v1436_v29 = vld [vmem:[#allocation4 + $0x28] sm:$0xff]  }
 0x1d7   : > { %1273 = vst [vmem:[#allocation4 + $0x18] sm:$0xff] %v1249_v8   ;;  %v785_v17 = vmul.f32 %v728_v9, %v355_v4 }
 0x1d8   : > { %v713_v28 = vpop.permute.xlu0 %712 }
 0x1d9   : > { %v1244_v30 = vpack.c.bf16 %v785_v17, %v784_v12  ;;  %1349 = vmatpush3.bf16.msra.mxu1 %v1436_v29  ;;  %v782_v33 = vmul.f32 %v713_v28, %v352_v23 }
 0x1da   : > { %v718_v31 = vpop.permute.xlu1 %717  ;;  %1350 = vmatprep.subr.bf16.mxu1 %v1541_v18  ;;  %v1437_v25 = vld [vmem:[#allocation4 + $0x20] sm:$0xff]  }
 0x1db   : > { %1272 = vst [vmem:[#allocation4 + $0x10] sm:$0xff] %v1244_v30   ;;  %v783_v34 = vmul.f32 %v718_v31, %v353_v27 }
 0x1dc   : > { %v703_v35 = vpop.permute.xlu0 %702 }
 0x1dd   : > { %v1239_v36 = vpack.c.bf16 %v783_v34, %v782_v33  ;;  %1351 = vmatpush3.bf16.msra.mxu1 %v1437_v25  ;;  %v780_v10 = vmul.f32 %v703_v35, %v350_v11 }
 0x1de   : > { %v708_v37 = vpop.permute.xlu1 %707  ;;  %1352 = vmatprep.subr.bf16.mxu1 %v1541_v18  ;;  %v1438_v39 = vld [vmem:[#allocation4 + $0x18] sm:$0xff]  }
 0x1df   : > { %1271 = vst [vmem:[#allocation4 + $0x8] sm:$0xff] %v1239_v36   ;;  %v781_v38 = vmul.f32 %v708_v37, %v351_v32 }
 0x1e1   : > { %v1234_v41 = vpack.c.bf16 %v781_v38, %v780_v10  ;;  %1353 = vmatpush3.bf16.msra.mxu1 %v1438_v39 }
 0x1e2   : > { %1354 = vmatprep.subr.bf16.mxu1 %v1541_v18  ;;  %v1439_v5 = vld [vmem:[#allocation4 + $0x10] sm:$0xff]  }
 0x1e3   : > { %1235 = vst [vmem:[#allocation4] sm:$0xff] %v1234_v41  }
 0x1e5   : > { %1355 = vmatpush3.bf16.msra.mxu1 %v1439_v5 }
 0x1e6   : > { %1356 = vmatprep.subr.bf16.mxu1 %v1541_v18  ;;  %v1440_v42 = vld [vmem:[#allocation4 + $0x8] sm:$0xff]  }
 0x1e9   : > { %1357 = vmatpush3.bf16.msra.mxu1 %v1440_v42 }
 0x1ea   : > { %1358 = vmatprep.subr.bf16.mxu1 %v1541_v18  ;;  %v1441_v43 = vld [vmem:[#allocation4] sm:$0xff]  }
 0x1ed   : > { %1359 = vmatpush3.bf16.msra.mxu1 %v1441_v43 }
 0x1f0   : > { %1361 = vmatmul.mubr.msk.bf16.vlgmr.msra.gmra.mxu1 %vm1741_vm4, %v1543_v24 }
 0x22a   : > { %v1026_v45 = vpop.f32.mrf.mxu0 }
 0x22b   : > { %v1032_v19 = vadd.f32 %v1026_v45, %v983_v44 }
 0x22c   : > { %v1382_v26 = vpop.f32.mrf.mxu0 }
 0x22d   : > { %1034 = vst.msk [vmem:[#allocation3] sm:$0xff] %vm327_vm0, %v1032_v19 }
 0x22e   : > { %v1029_v46 = vpop.f32.mrf.mxu0 }
 0x230   : > { %v1383_v47 = vpop.f32.mrf.mxu0 }
 0x2b0   : > { %v975_v49 = vpop.f32.mrf.mxu1 }
 0x2b1   : > { %v981_v50 = vadd.f32 %v975_v49, %v876_v48 }
 0x2b2   : > { %v1362_v21 = vpop.f32.mrf.mxu1 }
 0x2b3   : > { %982 = vst [vmem:[#allocation2] sm:$0xff] %v981_v50 }
 0x2b4   : > { %v978_v18 = vpop.f32.mrf.mxu1 }
 0x2b6   : > { %v1363_v51 = vpop.f32.mrf.mxu1 }
 0x2b7 PF: > { %v1039_v52 = vld [vmem:[#allocation3] sm:$0xff]  ;;  %v1544_v53 = vmov 0  }
 0x2b8   : > { %1482 = vset.pattern.permute.xlu0 %v1544_v53  ;;  %vm1040_vm5 = vcmp.eq.f32.partialorder %v1039_v52, 0.0 }
 0x2b9   : > { %v1041_v40 = vsel %vm1040_vm5, 1e-12, %v1039_v52 }
 0x2ba   : > { %1044 = vperm.xlu0 %1482, %v1041_v40   ;;  %v1038_v54 = vld [vmem:[#allocation2] sm:$0xff] }
 0x335   : > { %v1045_v24 = vpop.permute.xlu0 %1044 }
 0x336   : > { %1483 = vrcp.f32 %v1045_v24 }
 0x343   : > { %v1484_v16 = vpop.eup %1483 }
 0x344   : > { %v1048_v55 = vmul.f32 %v1484_v16, %v1038_v54 }
 0x346   : > { %v1050_v56 = vmin.f32 %v1048_v55, 0.0  ;;  %vm1049_vm0 = vcmp.gt.f32.partialorder %v1048_v55, 0.0 }
 0x348   : > { %v1051_v15 = vmul.f32 1.442695, %v1050_v56 }
 0x34a   : > { %1485 = vpow2.f32 %v1051_v15 }
 0x357   : > { %v1486_v57 = vpop.eup %1485 }
 0x358   : > { %v1194_v58 = vadd.f32 -1.0, %v1486_v57 }
 0x35a   : > { %v1054_v20 = vsel %vm1049_vm0, %v1048_v55, %v1194_v58 }
 0x35b   : > { %1055 = vst [vmem:[%s1611_s14] sm:$0xff] %v1054_v20 }
 0x35c PF: > { %s25_s28 = sadd.s32 1, %s1535_s28   ;;  %s1794_s1 = smov %s1531_s27 }
 0x35d   : > { %p22_p6 = scmp.ge.s32.totalorder %s25_s28, 4   ;;  %s1795_s27 = smov %s1797_s29 }
 0x35f   :  { %24 = sbr.rel (!%p22_p6) target bundleno = 27 (0x1b), region = 77 }

// kernel: spkbgat_forward.15
= control target key start
LH: loop header
LB: loop body
LE: loop exit
PB: predicated region body
PF: predicated region fallthrough
CT: control target
= control target key end

     0   :  { %9 = vsyncpa [#allocation4], 0  ;;  %s917_s0 = inlined_call_operand.vmem [shape: bf16[16,128], index: 0, kind: input, shape index: {}]   ;;  %s918_s1 = inlined_call_operand.vmem [shape: bf16[128,128], index: 1, kind: input, shape index: {}]   ;;  %s919_s2 = inlined_call_operand.vmem [shape: f32[16,1], index: 2, kind: input, shape index: {}]   ;;  %s920_s3 = inlined_call_operand.vmem [shape: f32[16,128], index: 3, kind: input, shape index: {}]   ;;  %s921_s4 = inlined_call_operand.hbm [shape: f32[16,128], index: 4, kind: output, shape index: {}]  }
   0x1   :  { %11 = vsyncpa [#allocation4 + $0x1], 0  ;;  %s784_s15 = smov 0   ;;  %s786_s16 = smov 0  }
   0x2   :  { %s788_s17 = smov 0   ;;  %s790_s18 = smov 0  }
   0x3   :  { %s792_s19 = smov 0   ;;  %s794_s20 = smov 0  }
   0x4 LB: > { %s551_s21 = sadd.s32 4294967295, %s753_s20   ;;  %s552_s22 = sadd.s32 4294967294, %s753_s20   ;;  %s753_s20 = sphi %s794_s20, %s17_s20   ;;  %s749_s19 = sphi %s792_s19, %s928_s19   ;;  %s745_s18 = sphi %s790_s18, %s927_s18   ;;  %s741_s17 = sphi %s788_s17, %s926_s17   ;;  %s737_s16 = sphi %s786_s16, %s925_s16   ;;  %s733_s15 = sphi %s784_s15, %s924_s15  }
   0x5   : > { %s29_s23 = sadd.s32 1, %s749_s19  ;;  %s142_s24 = sadd.s32 1, %s741_s17 }
   0x6   : > { %p31_p0 = scmp.ge.s32.totalorder %s29_s23, 2  ;;  %p152_p1 = scmp.ne.s32.totalorder %s741_s17, %s737_s16 }
   0x7   : > { %p153_p2 = scmp.eq.s32.totalorder %s551_s21, 1  ;;  %p158_p3 = scmp.ne.s32.totalorder %s737_s16, %s733_s15 }
   0x8   : > { %s930_s23 = smov (%p31_p0, %s29_s23), 0  ;;  %p159_p5 = scmp.eq.s32.totalorder %s552_s22, 1 }
   0x9   : > { %p824_p4 = por %p153_p2, %p152_p1  ;;  %s139_s26 = ssub.s32 %s749_s19, %s930_s23 }
   0xa   : > { %p556_p6 = scmp.ge.s32.totalorder %s753_s20, 1  ;;  %p140_p7 = scmp.eq.s32.totalorder %s139_s26, 0 }
   0xb   : > { %p831_p8 = por %p159_p5, %p158_p3  ;;  %p210_p9 = scmp.lt.s32.totalorder %s753_s20, 3 }
   0xc   : > { %s837_s28 = scalar_select %p140_p7, %s741_s17, %s142_s24  }
   0xd   : > { %p211_p10 = pnand %p556_p6, %p210_p9 }
   0xe   : > { %p251_p11 = scmp.lt.s32.totalorder (!%p211_p10), %s745_s18, 1  ;;  %s248_s21 = sand.u32 (!%p211_p10), 1, %s737_s16  }
   0xf   : > { %214 = sbr.rel (%p211_p10) target bundleno = 589 (0x24d), region = 36  ;;  %s557_s22 = sshll.u32 (!%p211_p10), %s248_s21, 3 }
  0x10   : > { %s570_s24 = sshll.u32 (!%p211_p10), %s745_s18, 7  ;;  %s250_s26 = scalar_lea.vmem (!%p211_p10), [#allocation3], %s557_s22 }
  0x11   : > { %s429_s8 = scalar_lea.sflag (!%p211_p10), [#allocation4], %s248_s21  ;;  %s758_s10 = smov (!%p211_p10), [#allocation3]  }
  0x12   : > { %s681_s11 = sshll.u32 (!%p211_p10), %s758_s10, 4  ;;  %s682_s11 = int_to_ptr.vmem [resolvable:$false] %s681_s11 }
  0x14   : > { %s841_s29 = scalar_select %p251_p11, %s745_s18, 1  ;;  %v661_v3 = vld [vmem:[%s918_s1 + $0x38] sm:$0xff]   ;;  %v755_v4 = vmov 0.0   ;;  %v662_v5 = vld [vmem:[%s918_s1 + $0x30] sm:$0xff]   ;;  %v663_v6 = vld [vmem:[%s918_s1 + $0x28] sm:$0xff]   ;;  %vm756_vm0 = vmmov 0  }
  0x15   : > { %582 = vmatprep.subr.bf16.mxu0 %v755_v4  ;;  %v664_v7 = vld [vmem:[%s918_s1 + $0x20] sm:$0xff]   ;;  %v665_v8 = vld [vmem:[%s918_s1 + $0x18] sm:$0xff]   ;;  %598 = vmatprep.mubr.msk.bf16.mxu0 %vm756_vm0, %v755_v4  ;;  %v666_v9 = vld [vmem:[%s918_s1 + $0x10] sm:$0xff]   ;;  %v757_v12 = vmov 0   ;;  %s683_s18 = scalar_lea.vmem %s682_s11, 256 }
  0x16   : > { %s558_s30 = sshll.u32 %s841_s29, 2  ;;  %583 = vmatpush3.bf16.msra.mxu0 %v661_v3  ;;  %v667_v10 = vld [vmem:[%s918_s1 + $0x8] sm:$0xff]   ;;  %v668_v11 = vld [vmem:[%s918_s1] sm:$0xff]   ;;  %s559_s9 = sshll.u32 %s841_s29, 3  ;;  %660 = vset.pattern.permute.xlu0 %v757_v12 }
  0x17   : > { %s257_s7 = scalar_lea.vmem %s917_s0, %s558_s30  ;;  %584 = vmatprep.subr.bf16.mxu0 %v755_v4  ;;  %s267_s12 = scalar_lea.vmem %s919_s2, %s559_s9 }
  0x18   : > { %v278_v0 = vld [vmem:[%s257_s7] sm:$0xf]  ;;  %s271_s14 = scalar_lea.vmem %s920_s3, %s559_s9  ;;  %s442_s30 = sshll.u32 %s250_s26, 4  ;;  %s443_s30 = int_to_ptr.vmem [resolvable:$true] %s442_s30 }
  0x19   : > { %v279_v1 = vunpack.c.l.bf16 %v278_v0  ;;  %v405_v13 = vld [vmem:[%s267_s12] sm:$0xff]  ;;  %s440_s7 = scalar_lea.hbm %s921_s4, %s570_s24  ;;  %s677_s9 = scalar_lea.vmem %s443_s30, 128 }
  0x1a   : > { %585 = vmatpush3.bf16.msra.mxu0 %v662_v5  ;;  %v406_v24 = vld [vmem:[%s271_s14] sm:$0xff]  ;;  %p678_p12 = scmp.ne.s32.totalorder %s443_s30, %s677_s9  ;;  %p684_p1 = scmp.lt.s32.totalorder %s443_s30, %s682_s11 }
  0x1b   : > { %v280_v2 = vmul.f32 %v279_v1, %v279_v1  ;;  %586 = vmatprep.subr.bf16.mxu0 %v755_v4  ;;  %p685_p2 = scmp.lt.s32.totalorder %s683_s18, %s677_s9 }
  0x1c   : > { %p679_p13 = pnand %p678_p12, %p824_p4 }
  0x1d   : > { %281 = vadd.xlane.f32.xlu0 %v280_v2  ;;  %p686_p3 = por %p685_p2, %p684_p1 }
  0x1e   : > { %587 = vmatpush3.bf16.msra.mxu0 %v663_v6  ;;  %p680_p0 = pneg %p679_p13 }
  0x1f   : > { %588 = vmatprep.subr.bf16.mxu0 %v755_v4 }
  0x20   : > { %p687_p5 = pnand %p686_p3, %p680_p0 }
  0x22   : > { %589 = vmatpush3.bf16.msra.mxu0 %v664_v7 }
  0x23   : > { %590 = vmatprep.subr.bf16.mxu0 %v755_v4 }
  0x26   : > { %591 = vmatpush3.bf16.msra.mxu0 %v665_v8 }
  0x27   : > { %592 = vmatprep.subr.bf16.mxu0 %v755_v4 }
  0x2a   : > { %593 = vmatpush3.bf16.msra.mxu0 %v666_v9 }
  0x2b   : > { %594 = vmatprep.subr.bf16.mxu0 %v755_v4 }
  0x2e   : > { %595 = vmatpush3.bf16.msra.mxu0 %v667_v10 }
  0x2f   : > { %596 = vmatprep.subr.bf16.mxu0 %v755_v4 }
  0x32   : > { %597 = vmatpush3.bf16.msra.mxu0 %v668_v11 }
  0x33   : > { %409 = vperm.xlu0 %660, %v405_v13  }
  0xa6   : > { %v282_v14 = vpop.xlane.xlu0 %281 }
  0xa7   : > { %669 = vrsqrt.f32 %v282_v14  ;;  %vm285_vm1 = vcmp.eq.f32.partialorder %v282_v14, inf  ;;  %v288_v17 = vand.u32 2147483648, %v282_v14  ;;  %vm287_vm2 = vcmp.eq.f32.partialorder %v282_v14, 0.0 }
  0xae   : > { %v410_v25 = vpop.permute.xlu0 %409 }
  0xaf   : > { %v412_v26 = vmul.f32 %v410_v25, %v406_v24 }
  0xb4   : > { %v670_v15 = vpop.eup %669 }
  0xb5   : > { %v284_v16 = vmul.f32 %v670_v15, %v282_v14 }
  0xb7   : > { %v286_v18 = vsel %vm285_vm1, %v282_v14, %v284_v16 }
  0xb8   : > { %v289_v19 = vsel %vm287_vm2, %v288_v17, %v286_v18 }
  0xb9   : > { %v290_v20 = vmax.f32 %v289_v19, 1e-12 }
  0xbb   : > { %671 = vrcp.f32 %v290_v20 }
  0xc8   : > { %v672_v21 = vpop.eup %671 }
  0xc9   : > { %v292_v22 = vmul.f32 %v672_v21, %v279_v1 }
  0xcb   : > { %v293_v23 = vpack.c.bf16 %v292_v22, %v292_v22 }
  0xcd   : > { %599 = vmatmul.mubr.bf16.vlgmr.msra.gmra.mxu0 %v293_v23 }
 0x18d   : > { %v393_v27 = vpop.f32.mrf.mxu0 }
 0x18e   : > { %v413_v28 = vadd.f32 %v412_v26, %v393_v27 }
 0x18f   : > { %v600_v29 = vpop.f32.mrf.mxu0 }
 0x190   : > { %v414_v30 = vmul.f32 %v413_v28, %v413_v28 }
 0x191   : > { %v396_v31 = vpop.f32.mrf.mxu0 }
 0x192   : > { %415 = vadd.xlane.f32.xlu1 %v414_v30 }
 0x193   : > { %v601_v32 = vpop.f32.mrf.mxu0 }
 0x21b   : > { %v416_v33 = vpop.xlane.xlu1 %415 }
 0x21c   : > { %673 = vrsqrt.f32 %v416_v33  ;;  %vm419_vm3 = vcmp.eq.f32.partialorder %v416_v33, inf  ;;  %v422_v36 = vand.u32 2147483648, %v416_v33  ;;  %vm421_vm4 = vcmp.eq.f32.partialorder %v416_v33, 0.0 }
 0x229   : > { %v674_v34 = vpop.eup %673 }
 0x22a   : > { %v418_v35 = vmul.f32 %v674_v34, %v416_v33 }
 0x22c   : > { %v420_v37 = vsel %vm419_vm3, %v416_v33, %v418_v35 }
 0x22d   : > { %v423_v38 = vsel %vm421_vm4, %v422_v36, %v420_v37 }
 0x22e   : > { %v424_v39 = vmax.f32 %v423_v38, 1e-12 }
 0x230   : > { %675 = vrcp.f32 %v424_v39 }
 0x23d   : > { %v676_v40 = vpop.eup %675 }
 0x23e   : > { %v426_v41 = vmul.f32 %v676_v40, %v413_v28 }
 0x240   : > { %427 = vst [vmem:[%s250_s26] sm:$0xff] %v426_v41 }
 0x241   : > { %690 = shalt.err (!%p687_p5)
}
 0x242   : > { %s691_s12 = scalar_lea.hbm %s440_s7, 128  ;;  %s695_s14 = scalar_lea.hbm %s921_s4, 256 }
 0x243   : > { %p692_p6 = scmp.ne.s32.totalorder %s440_s7, %s691_s12  ;;  %p696_p10 = scmp.lt.s32.totalorder %s440_s7, %s921_s4 }
 0x244   : > { %p697_p11 = scmp.lt.s32.totalorder %s695_s14, %s691_s12 }
 0x245   : > { %p693_p7 = pnand %p692_p6, %p824_p4 }
 0x246   : > { %p698_p12 = por %p697_p11, %p696_p10 }
 0x247   : > { %p694_p9 = pneg %p693_p7 }
 0x249   : > { %p699_p13 = pnand %p698_p12, %p694_p9 }
 0x24b   : > { %702 = shalt.err (!%p699_p13)
}
 0x24c   : > { %602 = dma.vmem_to_hbm [thread:$0]  (%p824_p4), %s443_s30, 128, %s440_s7, %s429_s8  }
 0x24d PF: > { %p608_p0 = scmp.ge.s32.totalorder %s753_s20, 2  ;;  %s454_s24 = sand.u32 1, %s733_s15  }
 0x24e   : > { %s455_s26 = scalar_lea.sflag [#allocation4], %s454_s24 }
 0x24f   : > { %p605_p1 = pnand %p608_p0, %p831_p8 }
 0x251   : > { %p606_p2 = pneg %p605_p1 }
 0x253   : > { %728 = dma.done.wait (%p606_p2), %s455_s26, 128  }
 0x254   : > { %730 = vsyncadd (%p606_p2), %s455_s26, 4294967168  ;;  %s17_s20 = sadd.s32 1, %s753_s20   ;;  %s924_s15 = smov %s737_s16 }
 0x255   : > { %p14_p3 = scmp.ge.s32.totalorder %s17_s20, 4   ;;  %s925_s16 = smov %s741_s17 }
 0x256   : > { %s926_s17 = smov %s837_s28  ;;  %s927_s18 = smov %s749_s19 }
 0x257   : > { %s928_s19 = smov %s930_s23  ;;  %16 = sbr.rel (!%p14_p3) target bundleno = 4 (0x4), region = 88 }
 0x25c   :  { %460 = vsyncpa [#allocation4], 1 }
 0x25d   :  { %462 = vsyncpa [#allocation4 + $0x1], 1 }

</bundles_post_ra>
